<compile_context>
chip_gen: v5e
topology: v5e:2x2
jax: 0.10.0
libtpu: 0.0.40
codegen_flags: <defaults>
</compile_context>

<pallas_src>
import functools

import jax
import jax.numpy as jnp
from jax.experimental import pallas as pl
from jax.experimental.pallas import tpu as pltpu

# ---- model dims (N_states = N_states + 3; pick a small base state count) ----
N_STATES_BASE = 29
IN_FEATURES = N_STATES_BASE + 3          # 32  (multiple of 8 -> no K padding)
H1 = 8192
H2 = 1024
OUT_FEATURES = 3
NEG_SLOPE = 0.01                         # torch.nn.LeakyReLU default
BATCH_PAD = 8                            # sublane tile


def _round_up(x, m):
    return (x + m - 1) // m * m


def linear_kernel(x_ref, w_ref, b_ref, o_ref, acc_ref, *, negative_slope, apply_act):
    """One (Bp, tn) output tile, accumulated over the K grid axis (last axis)."""
    k = pl.program_id(1)

    @pl.when(k == 0)
    def _():
        acc_ref[...] = jnp.zeros_like(acc_ref)

    acc_ref[...] += jnp.dot(
        x_ref[...], w_ref[...], preferred_element_type=jnp.float32
    )

    @pl.when(k == pl.num_programs(1) - 1)
    def _():
        y = acc_ref[...] + b_ref[...]
        if apply_act:
            y = jnp.where(y >= 0.0, y, negative_slope * y)
        o_ref[...] = y.astype(o_ref.dtype)


def _pick_tiles(K, N):
    """Pick (tk, tn).

    - Keep the whole K when it is small (fc1: K=32, no padding, single K step).
    - Large K (fc2: 8192) -> tk=2048 so the double-buffered weight tile
      (2 x 4 MiB) fits comfortably in every generation's scoped VMEM.
    - Keep >= 2 N blocks so the 'parallel' grid axis lets megacore / v7x's
      two TensorCores split the (HBM-bound) weight streaming.
    """
    tk = K if K <= 2048 else 2048
    assert K % tk == 0
    if N >= 1024:
        tn = max(512, N // 2)                      # >= 2 parallel blocks
        while tk * tn * 4 > 8 * 1024 * 1024:       # cap W tile at 8 MiB
            tn //= 2
    else:
        tn = N
    assert N % tn == 0 and tn % 128 == 0
    return tk, tn


def pallas_linear(x, w, b, *, apply_act):
    """y = leaky_relu?(x @ w + b) for already TPU-aligned shapes.

    x: (Bp, K) f32 with Bp % 8 == 0; w: (K, N) with K % 8 == 0, N % 128 == 0;
    b: (1, N).  The (large) weights are streamed tile-by-tile straight from
    their original HBM buffers — no per-call padded copies.
    """
    Bp, K = x.shape
    Kw, N = w.shape
    assert K == Kw and b.shape == (1, N)
    assert Bp % 8 == 0 and K % 8 == 0 and N % 128 == 0

    tk, tn = _pick_tiles(K, N)
    kernel = functools.partial(
        linear_kernel, negative_slope=NEG_SLOPE, apply_act=apply_act
    )

    return pl.pallas_call(
        kernel,
        out_shape=jax.ShapeDtypeStruct((Bp, N), jnp.float32),
        grid_spec=pltpu.PrefetchScalarGridSpec(
            num_scalar_prefetch=0,
            grid=(N // tn, K // tk),
            in_specs=[
                pl.BlockSpec((Bp, tk), lambda j, k: (0, k)),   # x (tiny)
                pl.BlockSpec((tk, tn), lambda j, k: (k, j)),   # w (HBM-bound stream)
                pl.BlockSpec((1, tn), lambda j, k: (0, j)),    # b
            ],
            out_specs=pl.BlockSpec((Bp, tn), lambda j, k: (0, j)),
            scratch_shapes=[pltpu.VMEM((Bp, tn), jnp.float32)],
        ),
        compiler_params=pltpu.CompilerParams(
            dimension_semantics=("parallel", "arbitrary"),
            vmem_limit_bytes=32 * 1024 * 1024,
        ),
    )(x, w, b)


def init_params(key):
    """Deterministic synthetic parameters matching TradingNet.__init__ shapes.

    Weights are stored (in, out); biases are stored as (1, out) so they are
    kernel-ready with zero per-call reshapes/pads. Kept in f32 to preserve the
    module's numerics (bf16 weights would be the next ~2x lever if allowed).
    """
    ks = jax.random.split(key, 6)

    def lin(kw, kb, fan_in, fan_out):
        bound = 1.0 / jnp.sqrt(jnp.float32(fan_in))
        w = jax.random.uniform(kw, (fan_in, fan_out), jnp.float32, -bound, bound)
        b = jax.random.uniform(kb, (1, fan_out), jnp.float32, -bound, bound)
        return w, b

    w1, b1 = lin(ks[0], ks[1], IN_FEATURES, H1)
    w2, b2 = lin(ks[2], ks[3], H1, H2)
    w3, b3 = lin(ks[4], ks[5], H2, OUT_FEATURES)
    return (w1, b1), (w2, b2), (w3, b3)


@jax.jit
def trading_net_forward(x, params):
    (w1, b1), (w2, b2), (w3, b3) = params
    B = x.shape[0]

    # Pad only the tiny activation batch to the 8-row sublane tile; the padded
    # rows are garbage-but-harmless and are sliced off at the end.
    Bp = _round_up(max(B, BATCH_PAD), BATCH_PAD)
    xp = jnp.zeros((Bp, x.shape[1]), jnp.float32).at[:B, :].set(x)

    h = pallas_linear(xp, w1, b1, apply_act=True)   # fc1 + LeakyReLU  (Bp, 8192)
    h = pallas_linear(h, w2, b2, apply_act=True)    # fc2 + LeakyReLU  (Bp, 1024)

    # fc3 (1024 -> 3): lane-sparse output; a dedicated Pallas kernel would force
    # ~40x padded weight traffic + masked stores + an extra launch, so it is
    # computed with plain XLA (per the performance review).
    out = h @ w3 + b3                               # (Bp, 3)
    return out[:B]


if __name__ == "__main__":
    key = jax.random.PRNGKey(0)
    kx, kp = jax.random.split(key)

    batch = 2
    x = jax.random.normal(kx, (batch, IN_FEATURES), jnp.float32)
    params = init_params(kp)

    out = trading_net_forward(x, params)
    out = jax.block_until_ready(out)

    # Pure-JAX reference check.
    (w1, b1), (w2, b2), (w3, b3) = params

    def leaky(v):
        return jnp.where(v >= 0.0, v, NEG_SLOPE * v)

    ref = leaky(x @ w1 + b1)
    ref = leaky(ref @ w2 + b2)
    ref = ref @ w3 + b3

    assert out.shape == (batch, OUT_FEATURES), out.shape
    assert jnp.allclose(out, ref, atol=1e-3, rtol=1e-3), (out, ref)
    print("KERNEL_OK")
</pallas_src>

<mosaic_0001>
module attributes {stable_mosaic.version = 11 : i64} {
  func.func @linear_kernel(%arg0: i32, %arg1: i32, %arg2: memref<8x2048xf32, #tpu.memory_space<vmem>>, %arg3: memref<2048x512xf32, #tpu.memory_space<vmem>>, %arg4: memref<1x512xf32, #tpu.memory_space<vmem>>, %arg5: memref<8x512xf32, #tpu.memory_space<vmem>>, %arg6: memref<8x512xf32, #tpu.memory_space<vmem>>) attributes {dimension_semantics = [#tpu.dimension_semantics<parallel>, #tpu.dimension_semantics<arbitrary>], iteration_bounds = array<i64: 2, 4>, scalar_prefetch = 0 : i64, scratch_operands = 1 : i64, tpu.core_type = #tpu.core_type<tc>, window_params = [{transform_indices = @transform_0, window_bounds = array<i64: 8, 2048>}, {transform_indices = @transform_1, window_bounds = array<i64: 2048, 512>}, {transform_indices = @transform_2, window_bounds = array<i64: 1, 512>}, {transform_indices = @transform_3, window_bounds = array<i64: 8, 512>}]} {
    %c0_i32 = arith.constant 0 : i32
    %0 = arith.cmpi eq, %arg1, %c0_i32 : i32
    %1 = arith.extui %0 : i1 to i32
    %c0_i32_0 = arith.constant 0 : i32
    %2 = arith.cmpi ne, %1, %c0_i32_0 : i32
    scf.if %2 {
      %cst_9 = arith.constant 0.000000e+00 : f32
      %12 = vector.broadcast %cst_9 : f32 to vector<8x512xf32>
      %c0_10 = arith.constant 0 : index
      %c0_11 = arith.constant 0 : index
      %13 = vector.load %arg6[%c0_10, %c0_11] : memref<8x512xf32, #tpu.memory_space<vmem>>, vector<8x512xf32>
      tpu.vector_store %arg6[%c0_10, %c0_11], %12 {strides = array<i32>} : memref<8x512xf32, #tpu.memory_space<vmem>>, vector<8x512xf32>,
    } else {
    }
    %c0 = arith.constant 0 : index
    %c0_1 = arith.constant 0 : index
    %3 = vector.load %arg6[%c0, %c0_1] : memref<8x512xf32, #tpu.memory_space<vmem>>, vector<8x512xf32>
    %c0_2 = arith.constant 0 : index
    %c0_3 = arith.constant 0 : index
    %4 = vector.load %arg2[%c0_2, %c0_3] : memref<8x2048xf32, #tpu.memory_space<vmem>>, vector<8x2048xf32>
    %c0_4 = arith.constant 0 : index
    %c0_5 = arith.constant 0 : index
    %5 = vector.load %arg3[%c0_4, %c0_5] : memref<2048x512xf32, #tpu.memory_space<vmem>>, vector<2048x512xf32>
    %cst = arith.constant dense<0.000000e+00> : vector<8x512xf32>
    %6 = tpu.matmul %4, %5, %cst {dimension_numbers = #tpu.dot_dimension_numbers<[1], [0], [0], [1], [0, 0, 1, 1], [], []>} : vector<8x2048xf32>, vector<2048x512xf32>, vector<8x512xf32> -> vector<8x512xf32>
    %7 = arith.addf %3, %6 : vector<8x512xf32>
    %c0_6 = arith.constant 0 : index
    %c0_7 = arith.constant 0 : index
    %8 = vector.load %arg6[%c0_6, %c0_7] : memref<8x512xf32, #tpu.memory_space<vmem>>, vector<8x512xf32>
    tpu.vector_store %arg6[%c0_6, %c0_7], %7 {strides = array<i32>} : memref<8x512xf32, #tpu.memory_space<vmem>>, vector<8x512xf32>,
    %c3_i32 = arith.constant 3 : i32
    %9 = arith.cmpi eq, %arg1, %c3_i32 : i32
    %10 = arith.extui %9 : i1 to i32
    %c0_i32_8 = arith.constant 0 : i32
    %11 = arith.cmpi ne, %10, %c0_i32_8 : i32
    scf.if %11 {
      %c0_9 = arith.constant 0 : index
      %c0_10 = arith.constant 0 : index
      %12 = vector.load %arg6[%c0_9, %c0_10] : memref<8x512xf32, #tpu.memory_space<vmem>>, vector<8x512xf32>
      %c0_11 = arith.constant 0 : index
      %c0_12 = arith.constant 0 : index
      %13 = vector.load %arg4[%c0_11, %c0_12] : memref<1x512xf32, #tpu.memory_space<vmem>>, vector<1x512xf32>
      %14 = vector.broadcast %13 : vector<1x512xf32> to vector<8x512xf32>
      %15 = arith.addf %12, %14 : vector<8x512xf32>
      %cst_13 = arith.constant 0.000000e+00 : f32
      %16 = vector.broadcast %cst_13 : f32 to vector<8x512xf32>
      %17 = arith.cmpf oge, %15, %16 : vector<8x512xf32>
      %cst_14 = arith.constant 0.00999999977 : f32
      %18 = vector.broadcast %cst_14 : f32 to vector<8x512xf32>
      %19 = arith.mulf %18, %15 : vector<8x512xf32>
      %20 = arith.select %17, %15, %19 : vector<8x512xi1>, vector<8x512xf32>
      %c0_15 = arith.constant 0 : index
      %c0_16 = arith.constant 0 : index
      %21 = vector.load %arg5[%c0_15, %c0_16] : memref<8x512xf32, #tpu.memory_space<vmem>>, vector<8x512xf32>
      tpu.vector_store %arg5[%c0_15, %c0_16], %20 {strides = array<i32>} : memref<8x512xf32, #tpu.memory_space<vmem>>, vector<8x512xf32>,
    } else {
    }
    return
  }
  func.func @transform_0(%arg0: i32, %arg1: i32) -> (i32, i32) {
    %c0_i32 = arith.constant 0 : i32
    %c0_i32_0 = arith.constant 0 : i32
    return %c0_i32, %arg1 : i32, i32
  }
  func.func @transform_1(%arg0: i32, %arg1: i32) -> (i32, i32) {
    %c0_i32 = arith.constant 0 : i32
    return %arg1, %arg0 : i32, i32
  }
  func.func @transform_2(%arg0: i32, %arg1: i32) -> (i32, i32) {
    %c0_i32 = arith.constant 0 : i32
    %c0_i32_0 = arith.constant 0 : i32
    return %c0_i32, %arg0 : i32, i32
  }
  func.func @transform_3(%arg0: i32, %arg1: i32) -> (i32, i32) {
    %c0_i32 = arith.constant 0 : i32
    %c0_i32_0 = arith.constant 0 : i32
    return %c0_i32, %arg0 : i32, i32
  }
}

module attributes {stable_mosaic.version = 11 : i64} {
  func.func @linear_kernel(%arg0: i32, %arg1: i32, %arg2: memref<8x32xf32, #tpu.memory_space<vmem>>, %arg3: memref<32x4096xf32, #tpu.memory_space<vmem>>, %arg4: memref<1x4096xf32, #tpu.memory_space<vmem>>, %arg5: memref<8x4096xf32, #tpu.memory_space<vmem>>, %arg6: memref<8x4096xf32, #tpu.memory_space<vmem>>) attributes {dimension_semantics = [#tpu.dimension_semantics<parallel>, #tpu.dimension_semantics<arbitrary>], iteration_bounds = array<i64: 2, 1>, scalar_prefetch = 0 : i64, scratch_operands = 1 : i64, tpu.core_type = #tpu.core_type<tc>, window_params = [{transform_indices = @transform_0, window_bounds = array<i64: 8, 32>}, {transform_indices = @transform_1, window_bounds = array<i64: 32, 4096>}, {transform_indices = @transform_2, window_bounds = array<i64: 1, 4096>}, {transform_indices = @transform_3, window_bounds = array<i64: 8, 4096>}]} {
    %c0_i32 = arith.constant 0 : i32
    %0 = arith.cmpi eq, %arg1, %c0_i32 : i32
    %1 = arith.extui %0 : i1 to i32
    %c0_i32_0 = arith.constant 0 : i32
    %2 = arith.cmpi ne, %1, %c0_i32_0 : i32
    scf.if %2 {
      %cst_10 = arith.constant 0.000000e+00 : f32
      %12 = vector.broadcast %cst_10 : f32 to vector<8x4096xf32>
      %c0_11 = arith.constant 0 : index
      %c0_12 = arith.constant 0 : index
      %13 = vector.load %arg6[%c0_11, %c0_12] : memref<8x4096xf32, #tpu.memory_space<vmem>>, vector<8x4096xf32>
      tpu.vector_store %arg6[%c0_11, %c0_12], %12 {strides = array<i32>} : memref<8x4096xf32, #tpu.memory_space<vmem>>, vector<8x4096xf32>,
    } else {
    }
    %c0 = arith.constant 0 : index
    %c0_1 = arith.constant 0 : index
    %3 = vector.load %arg6[%c0, %c0_1] : memref<8x4096xf32, #tpu.memory_space<vmem>>, vector<8x4096xf32>
    %c0_2 = arith.constant 0 : index
    %c0_3 = arith.constant 0 : index
    %4 = vector.load %arg2[%c0_2, %c0_3] : memref<8x32xf32, #tpu.memory_space<vmem>>, vector<8x32xf32>
    %c0_4 = arith.constant 0 : index
    %c0_5 = arith.constant 0 : index
    %5 = vector.load %arg3[%c0_4, %c0_5] : memref<32x4096xf32, #tpu.memory_space<vmem>>, vector<32x4096xf32>
    %cst = arith.constant dense<0.000000e+00> : vector<8x4096xf32>
    %6 = tpu.matmul %4, %5, %cst {dimension_numbers = #tpu.dot_dimension_numbers<[1], [0], [0], [1], [0, 0, 1, 1], [], []>} : vector<8x32xf32>, vector<32x4096xf32>, vector<8x4096xf32> -> vector<8x4096xf32>
    %7 = arith.addf %3, %6 : vector<8x4096xf32>
    %c0_6 = arith.constant 0 : index
    %c0_7 = arith.constant 0 : index
    %8 = vector.load %arg6[%c0_6, %c0_7] : memref<8x4096xf32, #tpu.memory_space<vmem>>, vector<8x4096xf32>
    tpu.vector_store %arg6[%c0_6, %c0_7], %7 {strides = array<i32>} : memref<8x4096xf32, #tpu.memory_space<vmem>>, vector<8x4096xf32>,
    %c0_i32_8 = arith.constant 0 : i32
    %9 = arith.cmpi eq, %arg1, %c0_i32_8 : i32
    %10 = arith.extui %9 : i1 to i32
    %c0_i32_9 = arith.constant 0 : i32
    %11 = arith.cmpi ne, %10, %c0_i32_9 : i32
    scf.if %11 {
      %c0_10 = arith.constant 0 : index
      %c0_11 = arith.constant 0 : index
      %12 = vector.load %arg6[%c0_10, %c0_11] : memref<8x4096xf32, #tpu.memory_space<vmem>>, vector<8x4096xf32>
      %c0_12 = arith.constant 0 : index
      %c0_13 = arith.constant 0 : index
      %13 = vector.load %arg4[%c0_12, %c0_13] : memref<1x4096xf32, #tpu.memory_space<vmem>>, vector<1x4096xf32>
      %14 = vector.broadcast %13 : vector<1x4096xf32> to vector<8x4096xf32>
      %15 = arith.addf %12, %14 : vector<8x4096xf32>
      %cst_14 = arith.constant 0.000000e+00 : f32
      %16 = vector.broadcast %cst_14 : f32 to vector<8x4096xf32>
      %17 = arith.cmpf oge, %15, %16 : vector<8x4096xf32>
      %cst_15 = arith.constant 0.00999999977 : f32
      %18 = vector.broadcast %cst_15 : f32 to vector<8x4096xf32>
      %19 = arith.mulf %18, %15 : vector<8x4096xf32>
      %20 = arith.select %17, %15, %19 : vector<8x4096xi1>, vector<8x4096xf32>
      %c0_16 = arith.constant 0 : index
      %c0_17 = arith.constant 0 : index
      %21 = vector.load %arg5[%c0_16, %c0_17] : memref<8x4096xf32, #tpu.memory_space<vmem>>, vector<8x4096xf32>
      tpu.vector_store %arg5[%c0_16, %c0_17], %20 {strides = array<i32>} : memref<8x4096xf32, #tpu.memory_space<vmem>>, vector<8x4096xf32>,
    } else {
    }
    return
  }
  func.func @transform_0(%arg0: i32, %arg1: i32) -> (i32, i32) {
    %c0_i32 = arith.constant 0 : i32
    %c0_i32_0 = arith.constant 0 : i32
    return %c0_i32, %arg1 : i32, i32
  }
  func.func @transform_1(%arg0: i32, %arg1: i32) -> (i32, i32) {
    %c0_i32 = arith.constant 0 : i32
    return %arg1, %arg0 : i32, i32
  }
  func.func @transform_2(%arg0: i32, %arg1: i32) -> (i32, i32) {
    %c0_i32 = arith.constant 0 : i32
    %c0_i32_0 = arith.constant 0 : i32
    return %c0_i32, %arg0 : i32, i32
  }
  func.func @transform_3(%arg0: i32, %arg1: i32) -> (i32, i32) {
    %c0_i32 = arith.constant 0 : i32
    %c0_i32_0 = arith.constant 0 : i32
    return %c0_i32, %arg0 : i32, i32
  }
}

</mosaic_0001>

<bundles_post_ra>
// kernel: trading_net_forward.2
= control target key start
LH: loop header
LB: loop body
LE: loop exit
PB: predicated region body
PF: predicated region fallthrough
CT: control target
= control target key end

     0   :  { %8 = vsyncpa [#allocation4], 0  ;;  %s2159_s0 = inlined_call_operand.vmem [shape: f32[8,32], index: 0, kind: input, shape index: {}]   ;;  %s2160_s1 = inlined_call_operand.hbm [shape: f32[32,8192], index: 1, kind: input, shape index: {}]   ;;  %s2161_s2 = inlined_call_operand.hbm [shape: f32[1,8192], index: 2, kind: input, shape index: {}]   ;;  %s2162_s3 = inlined_call_operand.vmem [shape: f32[8,8192], index: 3, kind: output, shape index: {}]  }
   0x1   :  { %10 = vsyncpa [#allocation4 + $0x1], 0 }
   0x2   :  { %11 = vsyncpa [#allocation6], 0 }
   0x3   :  { %13 = vsyncpa [#allocation6 + $0x1], 0  ;;  %s1811_s12 = smov 0   ;;  %s1813_s13 = smov 0  }
   0x4   :  { %s1815_s14 = smov 0   ;;  %s1817_s15 = smov 0  }
   0x5   :  { %s1819_s16 = smov 0   ;;  %s1821_s17 = smov 0  }
   0x6 LB: > { %s1559_s18 = sadd.s32 4294967295, %s1786_s17   ;;  %s31_s19 = sadd.s32 1, %s1782_s16  ;;  %s1786_s17 = sphi %s1821_s17, %s19_s17   ;;  %s1782_s16 = sphi %s1819_s16, %s2170_s16   ;;  %s1778_s15 = sphi %s1817_s15, %s2169_s15   ;;  %s1774_s14 = sphi %s1815_s14, %s2168_s14   ;;  %s1770_s13 = sphi %s1813_s13, %s2167_s13   ;;  %s1766_s12 = sphi %s1811_s12, %s2166_s12  }
   0x7   : > { %p33_p0 = scmp.ge.s32.totalorder %s31_s19, 2  ;;  %s66_s20 = sadd.s32 1, %s1774_s14 }
   0x8   : > { %p73_p1 = scmp.ne.s32.totalorder %s1774_s14, %s1770_s13  ;;  %p74_p2 = scmp.eq.s32.totalorder %s1786_s17, 0 }
   0x9   : > { %s2172_s19 = smov (%p33_p0, %s31_s19), 0  ;;  %p79_p4 = scmp.ne.s32.totalorder %s1770_s13, %s1766_s12 }
   0xa   : > { %p1847_p3 = por %p74_p2, %p73_p1  ;;  %s62_s22 = ssub.s32 %s1782_s16, %s2172_s19 }
   0xb   : > { %p80_p5 = scmp.eq.s32.totalorder %s1559_s18, 0  ;;  %p64_p6 = scmp.eq.s32.totalorder %s62_s22, 0 }
   0xc   : > { %p1620_p8 = scmp.lt.s32.totalorder %s1786_s17, 2  ;;  %s1863_s25 = sand.u32 1, %s1774_s14  }
   0xd   : > { %p1854_p7 = por %p80_p5, %p79_p4  ;;  %s1608_s26 = sshll.u32 %s1782_s16, 8 }
   0xe   : > { %s1860_s24 = scalar_select %p64_p6, %s1774_s14, %s66_s20  }
   0xf   : > { %s1564_s27 = sshll.u32 %s1863_s25, 10  ;;  %s174_s30 = scalar_lea.hbm %s2160_s1, %s1608_s26 }
  0x10   : > { %s175_s4 = sshll.u32 %s174_s30, 4  ;;  %s166_s5 = scalar_lea.vmem [#allocation3], %s1564_s27  ;;  %s176_s4 = int_to_ptr.hbm [resolvable:$true] %s175_s4 }
  0x11   : > { %s177_s6 = sshll.u32 %s166_s5, 4  ;;  %p1872_p9 = pnand %p1620_p8, %p1847_p3  ;;  %s178_s6 = int_to_ptr.vmem [resolvable:$true] %s177_s6 }
  0x12   : > { %p1569_p10 = scmp.ge.s32.totalorder %s1786_s17, 1  ;;  %s163_s8 = scalar_lea.sflag [#allocation4], %s1863_s25 }
  0x13   : > { %s1788_s9 = smov 8192   ;;  %s1789_s10 = smov 4096  }
  0x14   : > { %s1790_s11 = smov 256   ;;  %p204_p11 = scmp.lt.s32.totalorder %s1786_s17, 3 }
  0x15   : > { %1616 = dma.hbm_to_vmem [thread:$0]  (!%p1872_p9), %s176_s4, 16384, %s178_s6, %s163_s8, %s1788_s9, %s1789_s10, %s1790_s11  }
  0x16   : > { %s1567_s12 = sshll.u32 %s1863_s25, 5  ;;  %s1568_s18 = sshll.u32 %s1782_s16, 5 }
  0x17   : > { %p205_p12 = pnand %p1569_p10, %p204_p11  ;;  %s195_s22 = scalar_lea.hbm %s2161_s2, %s1568_s18 }
  0x18   : > { %s191_s26 = scalar_lea.vmem [#allocation5], %s1567_s12  ;;  %s197_s28 = sshll.u32 %s195_s22, 4  ;;  %s198_s28 = int_to_ptr.hbm [resolvable:$true] %s197_s28 }
  0x19   : > { %s199_s27 = sshll.u32 %s191_s26, 4  ;;  %s188_s29 = scalar_lea.sflag [#allocation6], %s1863_s25  ;;  %s200_s27 = int_to_ptr.vmem [resolvable:$true] %s199_s27 }
  0x1a   : > { %1619 = dma.hbm_to_vmem [thread:$0]  (!%p1872_p9), %s198_s28, 512, %s200_s27, %s188_s29  }
  0x1b   : > { %208 = sbr.rel (%p205_p12) target bundleno = 252 (0xfc), region = 32  ;;  %s210_s30 = sand.u32 (!%p205_p12), 1, %s1770_s13  }
  0x1c   : > { %s1570_s4 = sshll.u32 (!%p205_p12), %s210_s30, 10  ;;  %s211_s5 = scalar_lea.sflag (!%p205_p12), [#allocation4], %s210_s30 }
  0x1d   : > { %s1890_s6 = scalar_lea.vmem (!%p205_p12), [#allocation3], %s1570_s4 }
  0x20   : > { %1757 = dma.done.wait (%p1854_p7), %s211_s5, 16384  }
  0x21   : > { %1759 = vsyncadd (%p1854_p7), %s211_s5, 4294950912  ;;  %s1571_s8 = sshll.u32 %s210_s30, 5  ;;  %s221_s9 = scalar_lea.sflag [#allocation6], %s210_s30 }
  0x22   : > { %s1896_s10 = scalar_lea.vmem [#allocation5], %s1571_s8 }
  0x23   : > { %1761 = dma.done.wait (%p1854_p7), %s221_s9, 512  }
  0x24   : > { %1763 = vsyncadd (%p1854_p7), %s221_s9, 4294966784  ;;  %v437_v0 = vld [vmem:[%s1890_s6 + $0x310] sm:$0xff]  ;;  %v438_v1 = vld [vmem:[%s1890_s6 + $0x318] sm:$0xff]  ;;  %vm467_vm0 = vcmask 261120   ;;  %s1572_s7 = sshll.u32 %s1778_s15, 5 }
  0x25   : > { %v405_v2 = vld [vmem:[%s1890_s6 + $0x210] sm:$0xff]  ;;  %523 = vmatpush.msra.mxu2 %v437_v0  ;;  %543 = vmatpush.msra.mxu3 %v438_v1  ;;  %v406_v3 = vld [vmem:[%s1890_s6 + $0x218] sm:$0xff]  ;;  %v435_v4 = vld [vmem:[%s1890_s6 + $0x300] sm:$0xff]  ;;  %p265_p13 = scmp.lt.s32.totalorder %s1572_s7, 63 }
  0x26   : > { %v436_v5 = vld [vmem:[%s1890_s6 + $0x308] sm:$0xff]  ;;  %483 = vmatpush.msra.mxu0 %v435_v4  ;;  %v373_v6 = vld [vmem:[%s1890_s6 + $0x110] sm:$0xff]  ;;  %v374_v7 = vld [vmem:[%s1890_s6 + $0x118] sm:$0xff] }
  0x27   : > { %503 = vmatpush.msra.mxu1 %v436_v5  ;;  %v403_v8 = vld [vmem:[%s1890_s6 + $0x200] sm:$0xff]  ;;  %524 = vmatpush.msra.mxu2 %v405_v2  ;;  %v404_v9 = vld [vmem:[%s1890_s6 + $0x208] sm:$0xff]  ;;  %v341_v10 = vld [vmem:[%s1890_s6 + $0x10] sm:$0xff]  ;;  %s2174_s7 = smov (!%p265_p13, %s1572_s7), 63 }
  0x28   : > { %544 = vmatpush.msra.mxu3 %v406_v3  ;;  %484 = vmatpush.msra.mxu0 %v403_v8  ;;  %v342_v11 = vld [vmem:[%s1890_s6 + $0x18] sm:$0xff]  ;;  %v1917_v12 = vld [vmem:[%s2159_s0] sm:$0xff]  ;;  %v372_v14 = vld [vmem:[%s1890_s6 + $0x108] sm:$0xff]  ;;  %s1573_s11 = sshll.u32 %s2174_s7, 3 }
  0x29   : > { %504 = vmatpush.msra.mxu1 %v404_v9  ;;  %525 = vmatpush.msra.mxu2 %v373_v6  ;;  %v371_v13 = vld [vmem:[%s1890_s6 + $0x100] sm:$0xff]  ;;  %v441_v15 = vld [vmem:[%s1890_s6 + $0x330] sm:$0xff]  ;;  %v442_v16 = vld [vmem:[%s1890_s6 + $0x338] sm:$0xff]  ;;  %s2104_s20 = scalar_lea.vmem %s2162_s3, %s1573_s11 }
  0x2a   : > { %545 = vmatpush.msra.mxu3 %v374_v7  ;;  %485 = vmatpush.msra.mxu0 %v371_v13  ;;  %v339_v17 = vld [vmem:[%s1890_s6] sm:$0xff]  ;;  %v340_v18 = vld [vmem:[%s1890_s6 + $0x8] sm:$0xff]  ;;  %v409_v19 = vld [vmem:[%s1890_s6 + $0x230] sm:$0xff] }
  0x2b   : > { %505 = vmatpush.msra.mxu1 %v372_v14  ;;  %526 = vmatpush.msra.mxu2 %v341_v10  ;;  %v410_v20 = vld [vmem:[%s1890_s6 + $0x238] sm:$0xff]  ;;  %v377_v21 = vld [vmem:[%s1890_s6 + $0x130] sm:$0xff]  ;;  %v439_v23 = vld [vmem:[%s1890_s6 + $0x320] sm:$0xff] }
  0x2c   : > { %546 = vmatpush.msra.mxu3 %v342_v11  ;;  %1576 = vmatmul.msk.f32.vlgmr.msra.gmra.mxu2 %vm467_vm0, %v1917_v12  ;;  %v378_v22 = vld [vmem:[%s1890_s6 + $0x138] sm:$0xff]  ;;  %v440_v24 = vld [vmem:[%s1890_s6 + $0x328] sm:$0xff]  ;;  %v345_v25 = vld [vmem:[%s1890_s6 + $0x30] sm:$0xff] }
  0x2d   : > { %1577 = vmatmul.msk.f32.vlgmr.msra.gmra.mxu3 %vm467_vm0, %v1917_v12  ;;  %603 = vmatpush.msrb.mxu2 %v441_v15  ;;  %v346_v26 = vld [vmem:[%s1890_s6 + $0x38] sm:$0xff]  ;;  %v407_v27 = vld [vmem:[%s1890_s6 + $0x220] sm:$0xff]  ;;  %v408_v28 = vld [vmem:[%s1890_s6 + $0x228] sm:$0xff] }
  0x2e   : > { %623 = vmatpush.msrb.mxu3 %v442_v16  ;;  %486 = vmatpush.msra.mxu0 %v339_v17  ;;  %v445_v29 = vld [vmem:[%s1890_s6 + $0x350] sm:$0xff]  ;;  %v446_v30 = vld [vmem:[%s1890_s6 + $0x358] sm:$0xff]  ;;  %v375_v31 = vld [vmem:[%s1890_s6 + $0x120] sm:$0xff] }
  0x2f   : > { %506 = vmatpush.msra.mxu1 %v340_v18  ;;  %604 = vmatpush.msrb.mxu2 %v409_v19  ;;  %v376_v32 = vld [vmem:[%s1890_s6 + $0x128] sm:$0xff]  ;;  %v413_v33 = vld [vmem:[%s1890_s6 + $0x250] sm:$0xff]  ;;  %v414_v34 = vld [vmem:[%s1890_s6 + $0x258] sm:$0xff] }
  0x30   : > { %624 = vmatpush.msrb.mxu3 %v410_v20  ;;  %1574 = vmatmul.msk.f32.vlgmr.msra.gmra.mxu0 %vm467_vm0, %v1917_v12  ;;  %v343_v35 = vld [vmem:[%s1890_s6 + $0x20] sm:$0xff]  ;;  %v344_v36 = vld [vmem:[%s1890_s6 + $0x28] sm:$0xff]  ;;  %v381_v37 = vld [vmem:[%s1890_s6 + $0x150] sm:$0xff] }
  0x31   : > { %1575 = vmatmul.msk.f32.vlgmr.msra.gmra.mxu1 %vm467_vm0, %v1917_v12  ;;  %605 = vmatpush.msrb.mxu2 %v377_v21  ;;  %v382_v38 = vld [vmem:[%s1890_s6 + $0x158] sm:$0xff]  ;;  %v443_v39 = vld [vmem:[%s1890_s6 + $0x340] sm:$0xff]  ;;  %v444_v40 = vld [vmem:[%s1890_s6 + $0x348] sm:$0xff] }
  0x32   : > { %625 = vmatpush.msrb.mxu3 %v378_v22  ;;  %563 = vmatpush.msrb.mxu0 %v439_v23  ;;  %v349_v41 = vld [vmem:[%s1890_s6 + $0x50] sm:$0xff]  ;;  %v350_v42 = vld [vmem:[%s1890_s6 + $0x58] sm:$0xff]  ;;  %v411_v43 = vld [vmem:[%s1890_s6 + $0x240] sm:$0xff] }
  0x33   : > { %583 = vmatpush.msrb.mxu1 %v440_v24  ;;  %606 = vmatpush.msrb.mxu2 %v345_v25  ;;  %v412_v44 = vld [vmem:[%s1890_s6 + $0x248] sm:$0xff]  ;;  %v449_v45 = vld [vmem:[%s1890_s6 + $0x370] sm:$0xff]  ;;  %v450_v46 = vld [vmem:[%s1890_s6 + $0x378] sm:$0xff] }
  0x34   : > { %626 = vmatpush.msrb.mxu3 %v346_v26  ;;  %564 = vmatpush.msrb.mxu0 %v407_v27  ;;  %v379_v47 = vld [vmem:[%s1890_s6 + $0x140] sm:$0xff]  ;;  %v380_v48 = vld [vmem:[%s1890_s6 + $0x148] sm:$0xff]  ;;  %v417_v49 = vld [vmem:[%s1890_s6 + $0x270] sm:$0xff] }
  0x35   : > { %584 = vmatpush.msrb.mxu1 %v408_v28  ;;  %1580 = vmatmul.msk.f32.vlgmr.msrb.gmra.mxu2 %vm467_vm0, %v1917_v12  ;;  %v418_v50 = vld [vmem:[%s1890_s6 + $0x278] sm:$0xff]  ;;  %v347_v51 = vld [vmem:[%s1890_s6 + $0x40] sm:$0xff]  ;;  %v348_v52 = vld [vmem:[%s1890_s6 + $0x48] sm:$0xff] }
  0x36   : > { %1581 = vmatmul.msk.f32.vlgmr.msrb.gmra.mxu3 %vm467_vm0, %v1917_v12  ;;  %683 = vmatpush.msra.mxu2 %v445_v29  ;;  %v385_v53 = vld [vmem:[%s1890_s6 + $0x170] sm:$0xff]  ;;  %v386_v54 = vld [vmem:[%s1890_s6 + $0x178] sm:$0xff]  ;;  %v447_v55 = vld [vmem:[%s1890_s6 + $0x360] sm:$0xff] }
  0x37   : > { %703 = vmatpush.msra.mxu3 %v446_v30  ;;  %565 = vmatpush.msrb.mxu0 %v375_v31  ;;  %v448_v56 = vld [vmem:[%s1890_s6 + $0x368] sm:$0xff]  ;;  %v353_v57 = vld [vmem:[%s1890_s6 + $0x70] sm:$0xff]  ;;  %v354_v58 = vld [vmem:[%s1890_s6 + $0x78] sm:$0xff] }
  0x38   : > { %585 = vmatpush.msrb.mxu1 %v376_v32  ;;  %684 = vmatpush.msra.mxu2 %v413_v33  ;;  %v415_v59 = vld [vmem:[%s1890_s6 + $0x260] sm:$0xff]  ;;  %v416_v60 = vld [vmem:[%s1890_s6 + $0x268] sm:$0xff]  ;;  %v453_v61 = vld [vmem:[%s1890_s6 + $0x390] sm:$0xff] }
  0x39   : > { %704 = vmatpush.msra.mxu3 %v414_v34  ;;  %566 = vmatpush.msrb.mxu0 %v343_v35  ;;  %v454_v62 = vld [vmem:[%s1890_s6 + $0x398] sm:$0xff]  ;;  %v383_v63 = vld [vmem:[%s1890_s6 + $0x160] sm:$0xff]  ;;  %v384_v0 = vld [vmem:[%s1890_s6 + $0x168] sm:$0xff] }
  0x3a   : > { %586 = vmatpush.msrb.mxu1 %v344_v36  ;;  %1578 = vmatmul.msk.f32.vlgmr.msrb.gmra.mxu0 %vm467_vm0, %v1917_v12  ;;  %v421_v1 = vld [vmem:[%s1890_s6 + $0x290] sm:$0xff]  ;;  %v422_v2 = vld [vmem:[%s1890_s6 + $0x298] sm:$0xff]  ;;  %v351_v3 = vld [vmem:[%s1890_s6 + $0x60] sm:$0xff] }
  0x3b   : > { %1579 = vmatmul.msk.f32.vlgmr.msrb.gmra.mxu1 %vm467_vm0, %v1917_v12  ;;  %685 = vmatpush.msra.mxu2 %v381_v37  ;;  %v352_v4 = vld [vmem:[%s1890_s6 + $0x68] sm:$0xff]  ;;  %v389_v5 = vld [vmem:[%s1890_s6 + $0x190] sm:$0xff]  ;;  %v390_v6 = vld [vmem:[%s1890_s6 + $0x198] sm:$0xff] }
  0x3c   : > { %705 = vmatpush.msra.mxu3 %v382_v38  ;;  %643 = vmatpush.msra.mxu0 %v443_v39  ;;  %v451_v7 = vld [vmem:[%s1890_s6 + $0x380] sm:$0xff]  ;;  %v452_v8 = vld [vmem:[%s1890_s6 + $0x388] sm:$0xff]  ;;  %v357_v9 = vld [vmem:[%s1890_s6 + $0x90] sm:$0xff] }
  0x3d   : > { %663 = vmatpush.msra.mxu1 %v444_v40  ;;  %686 = vmatpush.msra.mxu2 %v349_v41  ;;  %v358_v10 = vld [vmem:[%s1890_s6 + $0x98] sm:$0xff]  ;;  %v419_v11 = vld [vmem:[%s1890_s6 + $0x280] sm:$0xff]  ;;  %v420_v13 = vld [vmem:[%s1890_s6 + $0x288] sm:$0xff] }
  0x3e   : > { %706 = vmatpush.msra.mxu3 %v350_v42  ;;  %644 = vmatpush.msra.mxu0 %v411_v43  ;;  %v457_v14 = vld [vmem:[%s1890_s6 + $0x3b0] sm:$0xff]  ;;  %v458_v15 = vld [vmem:[%s1890_s6 + $0x3b8] sm:$0xff]  ;;  %v387_v16 = vld [vmem:[%s1890_s6 + $0x180] sm:$0xff] }
  0x3f   : > { %664 = vmatpush.msra.mxu1 %v412_v44  ;;  %1584 = vmatmul.msk.f32.vlgmr.msra.gmra.mxu2 %vm467_vm0, %v1917_v12  ;;  %v388_v17 = vld [vmem:[%s1890_s6 + $0x188] sm:$0xff]  ;;  %v425_v18 = vld [vmem:[%s1890_s6 + $0x2b0] sm:$0xff]  ;;  %v426_v19 = vld [vmem:[%s1890_s6 + $0x2b8] sm:$0xff] }
  0x40   : > { %1585 = vmatmul.msk.f32.vlgmr.msra.gmra.mxu3 %vm467_vm0, %v1917_v12  ;;  %763 = vmatpush.msrb.mxu2 %v449_v45  ;;  %v355_v20 = vld [vmem:[%s1890_s6 + $0x80] sm:$0xff]  ;;  %v356_v21 = vld [vmem:[%s1890_s6 + $0x88] sm:$0xff]  ;;  %v393_v22 = vld [vmem:[%s1890_s6 + $0x1b0] sm:$0xff] }
  0x41   : > { %783 = vmatpush.msrb.mxu3 %v450_v46  ;;  %645 = vmatpush.msra.mxu0 %v379_v47  ;;  %v394_v23 = vld [vmem:[%s1890_s6 + $0x1b8] sm:$0xff]  ;;  %v455_v24 = vld [vmem:[%s1890_s6 + $0x3a0] sm:$0xff]  ;;  %v456_v25 = vld [vmem:[%s1890_s6 + $0x3a8] sm:$0xff] }
  0x42   : > { %665 = vmatpush.msra.mxu1 %v380_v48  ;;  %764 = vmatpush.msrb.mxu2 %v417_v49  ;;  %v361_v26 = vld [vmem:[%s1890_s6 + $0xb0] sm:$0xff]  ;;  %v362_v27 = vld [vmem:[%s1890_s6 + $0xb8] sm:$0xff]  ;;  %v423_v28 = vld [vmem:[%s1890_s6 + $0x2a0] sm:$0xff] }
  0x43   : > { %784 = vmatpush.msrb.mxu3 %v418_v50  ;;  %646 = vmatpush.msra.mxu0 %v347_v51  ;;  %v424_v29 = vld [vmem:[%s1890_s6 + $0x2a8] sm:$0xff]  ;;  %v461_v30 = vld [vmem:[%s1890_s6 + $0x3d0] sm:$0xff]  ;;  %v462_v31 = vld [vmem:[%s1890_s6 + $0x3d8] sm:$0xff] }
  0x44   : > { %666 = vmatpush.msra.mxu1 %v348_v52  ;;  %1582 = vmatmul.msk.f32.vlgmr.msra.gmra.mxu0 %vm467_vm0, %v1917_v12  ;;  %v391_v32 = vld [vmem:[%s1890_s6 + $0x1a0] sm:$0xff]  ;;  %v392_v33 = vld [vmem:[%s1890_s6 + $0x1a8] sm:$0xff]  ;;  %v429_v34 = vld [vmem:[%s1890_s6 + $0x2d0] sm:$0xff] }
  0x45   : > { %1583 = vmatmul.msk.f32.vlgmr.msra.gmra.mxu1 %vm467_vm0, %v1917_v12  ;;  %765 = vmatpush.msrb.mxu2 %v385_v53  ;;  %v430_v35 = vld [vmem:[%s1890_s6 + $0x2d8] sm:$0xff]  ;;  %v359_v36 = vld [vmem:[%s1890_s6 + $0xa0] sm:$0xff]  ;;  %v360_v37 = vld [vmem:[%s1890_s6 + $0xa8] sm:$0xff] }
  0x46   : > { %785 = vmatpush.msrb.mxu3 %v386_v54  ;;  %723 = vmatpush.msrb.mxu0 %v447_v55  ;;  %v397_v38 = vld [vmem:[%s1890_s6 + $0x1d0] sm:$0xff]  ;;  %v398_v39 = vld [vmem:[%s1890_s6 + $0x1d8] sm:$0xff]  ;;  %v459_v40 = vld [vmem:[%s1890_s6 + $0x3c0] sm:$0xff] }
  0x47   : > { %743 = vmatpush.msrb.mxu1 %v448_v56  ;;  %766 = vmatpush.msrb.mxu2 %v353_v57  ;;  %v460_v41 = vld [vmem:[%s1890_s6 + $0x3c8] sm:$0xff]  ;;  %v365_v42 = vld [vmem:[%s1890_s6 + $0xd0] sm:$0xff]  ;;  %v366_v43 = vld [vmem:[%s1890_s6 + $0xd8] sm:$0xff] }
  0x48   : > { %786 = vmatpush.msrb.mxu3 %v354_v58  ;;  %724 = vmatpush.msrb.mxu0 %v415_v59  ;;  %v427_v44 = vld [vmem:[%s1890_s6 + $0x2c0] sm:$0xff]  ;;  %v428_v45 = vld [vmem:[%s1890_s6 + $0x2c8] sm:$0xff]  ;;  %v465_v46 = vld [vmem:[%s1890_s6 + $0x3f0] sm:$0xff] }
  0x49   : > { %744 = vmatpush.msrb.mxu1 %v416_v60  ;;  %1588 = vmatmul.msk.f32.vlgmr.msrb.gmra.mxu2 %vm467_vm0, %v1917_v12  ;;  %v466_v47 = vld [vmem:[%s1890_s6 + $0x3f8] sm:$0xff]  ;;  %v395_v48 = vld [vmem:[%s1890_s6 + $0x1c0] sm:$0xff]  ;;  %v396_v49 = vld [vmem:[%s1890_s6 + $0x1c8] sm:$0xff] }
  0x4a   : > { %1589 = vmatmul.msk.f32.vlgmr.msrb.gmra.mxu3 %vm467_vm0, %v1917_v12  ;;  %843 = vmatpush.msra.mxu2 %v453_v61  ;;  %v433_v50 = vld [vmem:[%s1890_s6 + $0x2f0] sm:$0xff]  ;;  %v434_v51 = vld [vmem:[%s1890_s6 + $0x2f8] sm:$0xff]  ;;  %v363_v52 = vld [vmem:[%s1890_s6 + $0xc0] sm:$0xff] }
  0x4b   : > { %863 = vmatpush.msra.mxu3 %v454_v62  ;;  %725 = vmatpush.msrb.mxu0 %v383_v63  ;;  %v364_v53 = vld [vmem:[%s1890_s6 + $0xc8] sm:$0xff]  ;;  %v401_v54 = vld [vmem:[%s1890_s6 + $0x1f0] sm:$0xff]  ;;  %v402_v55 = vld [vmem:[%s1890_s6 + $0x1f8] sm:$0xff] }
  0x4c   : > { %745 = vmatpush.msrb.mxu1 %v384_v0  ;;  %844 = vmatpush.msra.mxu2 %v421_v1  ;;  %v463_v56 = vld [vmem:[%s1890_s6 + $0x3e0] sm:$0xff]  ;;  %v464_v57 = vld [vmem:[%s1890_s6 + $0x3e8] sm:$0xff]  ;;  %v369_v58 = vld [vmem:[%s1890_s6 + $0xf0] sm:$0xff] }
  0x4d   : > { %864 = vmatpush.msra.mxu3 %v422_v2  ;;  %726 = vmatpush.msrb.mxu0 %v351_v3  ;;  %v370_v59 = vld [vmem:[%s1890_s6 + $0xf8] sm:$0xff]  ;;  %v431_v60 = vld [vmem:[%s1890_s6 + $0x2e0] sm:$0xff]  ;;  %v432_v61 = vld [vmem:[%s1890_s6 + $0x2e8] sm:$0xff] }
  0x4e   : > { %746 = vmatpush.msrb.mxu1 %v352_v4  ;;  %1586 = vmatmul.msk.f32.vlgmr.msrb.gmra.mxu0 %vm467_vm0, %v1917_v12  ;;  %v399_v62 = vld [vmem:[%s1890_s6 + $0x1e0] sm:$0xff]  ;;  %v400_v63 = vld [vmem:[%s1890_s6 + $0x1e8] sm:$0xff] }
  0x4f   : > { %1587 = vmatmul.msk.f32.vlgmr.msrb.gmra.mxu1 %vm467_vm0, %v1917_v12  ;;  %845 = vmatpush.msra.mxu2 %v389_v5  ;;  %v367_v0 = vld [vmem:[%s1890_s6 + $0xe0] sm:$0xff]  ;;  %v368_v1 = vld [vmem:[%s1890_s6 + $0xe8] sm:$0xff] }
  0x50   : > { %865 = vmatpush.msra.mxu3 %v390_v6  ;;  %803 = vmatpush.msra.mxu0 %v451_v7  ;;  %v1210_v2 = vld [vmem:[%s1896_s10] sm:$0xff] }
  0x51   : > { %823 = vmatpush.msra.mxu1 %v452_v8  ;;  %846 = vmatpush.msra.mxu2 %v357_v9  ;;  %v1218_v3 = vperm.slane %v1210_v2, 0  ;;  %v1219_v4 = vperm.slane %v1210_v2, 1  ;;  %v1220_v7 = vperm.slane %v1210_v2, 2  ;;  %v1221_v8 = vperm.slane %v1210_v2, 3 }
  0x52   : > { %866 = vmatpush.msra.mxu3 %v358_v10  ;;  %804 = vmatpush.msra.mxu0 %v419_v11 }
  0x53   : > { %824 = vmatpush.msra.mxu1 %v420_v13  ;;  %1592 = vmatmul.msk.f32.vlgmr.msra.gmra.mxu2 %vm467_vm0, %v1917_v12 }
  0x54   : > { %1593 = vmatmul.msk.f32.vlgmr.msra.gmra.mxu3 %vm467_vm0, %v1917_v12  ;;  %923 = vmatpush.msrb.mxu2 %v457_v14 }
  0x55   : > { %943 = vmatpush.msrb.mxu3 %v458_v15  ;;  %805 = vmatpush.msra.mxu0 %v387_v16 }
  0x56   : > { %825 = vmatpush.msra.mxu1 %v388_v17  ;;  %924 = vmatpush.msrb.mxu2 %v425_v18 }
  0x57   : > { %944 = vmatpush.msrb.mxu3 %v426_v19  ;;  %806 = vmatpush.msra.mxu0 %v355_v20 }
  0x58   : > { %826 = vmatpush.msra.mxu1 %v356_v21  ;;  %1590 = vmatmul.msk.f32.vlgmr.msra.gmra.mxu0 %vm467_vm0, %v1917_v12  ;;  %v1222_v21 = vperm.slane %v1210_v2, 4 }
  0x59   : > { %1591 = vmatmul.msk.f32.vlgmr.msra.gmra.mxu1 %vm467_vm0, %v1917_v12  ;;  %925 = vmatpush.msrb.mxu2 %v393_v22  ;;  %v1223_v22 = vperm.slane %v1210_v2, 5 }
  0x5a   : > { %945 = vmatpush.msrb.mxu3 %v394_v23  ;;  %883 = vmatpush.msrb.mxu0 %v455_v24 }
  0x5b   : > { %903 = vmatpush.msrb.mxu1 %v456_v25  ;;  %926 = vmatpush.msrb.mxu2 %v361_v26  ;;  %v1224_v25 = vperm.slane %v1210_v2, 6  ;;  %v1225_v26 = vperm.slane %v1210_v2, 7 }
  0x5c   : > { %946 = vmatpush.msrb.mxu3 %v362_v27  ;;  %884 = vmatpush.msrb.mxu0 %v423_v28 }
  0x5d   : > { %904 = vmatpush.msrb.mxu1 %v424_v29  ;;  %1596 = vmatmul.msk.f32.vlgmr.msrb.gmra.mxu2 %vm467_vm0, %v1917_v12 }
  0x5e   : > { %1597 = vmatmul.msk.f32.vlgmr.msrb.gmra.mxu3 %vm467_vm0, %v1917_v12  ;;  %1003 = vmatpush.msra.mxu2 %v461_v30 }
  0x5f   : > { %1023 = vmatpush.msra.mxu3 %v462_v31  ;;  %885 = vmatpush.msrb.mxu0 %v391_v32 }
  0x60   : > { %905 = vmatpush.msrb.mxu1 %v392_v33  ;;  %1004 = vmatpush.msra.mxu2 %v429_v34 }
  0x61   : > { %1024 = vmatpush.msra.mxu3 %v430_v35  ;;  %886 = vmatpush.msrb.mxu0 %v359_v36  ;;  %v1211_v35 = vld [vmem:[%s1896_s10 + $0x8] sm:$0xff] }
  0x62   : > { %906 = vmatpush.msrb.mxu1 %v360_v37  ;;  %1594 = vmatmul.msk.f32.vlgmr.msrb.gmra.mxu0 %vm467_vm0, %v1917_v12  ;;  %v1232_v2 = vperm.slane %v1211_v35, 6 }
  0x63   : > { %1595 = vmatmul.msk.f32.vlgmr.msrb.gmra.mxu1 %vm467_vm0, %v1917_v12  ;;  %1005 = vmatpush.msra.mxu2 %v397_v38 }
  0x64   : > { %1025 = vmatpush.msra.mxu3 %v398_v39  ;;  %963 = vmatpush.msra.mxu0 %v459_v40 }
  0x65   : > { %983 = vmatpush.msra.mxu1 %v460_v41  ;;  %1006 = vmatpush.msra.mxu2 %v365_v42 }
  0x66   : > { %1026 = vmatpush.msra.mxu3 %v366_v43  ;;  %964 = vmatpush.msra.mxu0 %v427_v44  ;;  %v1226_v44 = vperm.slane %v1211_v35, 0 }
  0x67   : > { %984 = vmatpush.msra.mxu1 %v428_v45  ;;  %1600 = vmatmul.msk.f32.vlgmr.msra.gmra.mxu2 %vm467_vm0, %v1917_v12  ;;  %v1227_v45 = vperm.slane %v1211_v35, 1 }
  0x68   : > { %1601 = vmatmul.msk.f32.vlgmr.msra.gmra.mxu3 %vm467_vm0, %v1917_v12  ;;  %1083 = vmatpush.msrb.mxu2 %v465_v46  ;;  %v1228_v46 = vperm.slane %v1211_v35, 2 }
  0x69   : > { %1103 = vmatpush.msrb.mxu3 %v466_v47  ;;  %965 = vmatpush.msra.mxu0 %v395_v48  ;;  %v1229_v47 = vperm.slane %v1211_v35, 3 }
  0x6a   : > { %985 = vmatpush.msra.mxu1 %v396_v49  ;;  %1084 = vmatpush.msrb.mxu2 %v433_v50 }
  0x6b   : > { %1104 = vmatpush.msrb.mxu3 %v434_v51  ;;  %966 = vmatpush.msra.mxu0 %v363_v52 }
  0x6c   : > { %986 = vmatpush.msra.mxu1 %v364_v53  ;;  %1598 = vmatmul.msk.f32.vlgmr.msra.gmra.mxu0 %vm467_vm0, %v1917_v12 }
  0x6d   : > { %1599 = vmatmul.msk.f32.vlgmr.msra.gmra.mxu1 %vm467_vm0, %v1917_v12  ;;  %1085 = vmatpush.msrb.mxu2 %v401_v54 }
  0x6e   : > { %1105 = vmatpush.msrb.mxu3 %v402_v55  ;;  %1043 = vmatpush.msrb.mxu0 %v463_v56 }
  0x6f   : > { %1063 = vmatpush.msrb.mxu1 %v464_v57  ;;  %1086 = vmatpush.msrb.mxu2 %v369_v58 }
  0x70   : > { %1106 = vmatpush.msrb.mxu3 %v370_v59  ;;  %1044 = vmatpush.msrb.mxu0 %v431_v60 }
  0x71   : > { %1064 = vmatpush.msrb.mxu1 %v432_v61  ;;  %1604 = vmatmul.msk.f32.vlgmr.msrb.gmra.mxu2 %vm467_vm0, %v1917_v12 }
  0x72   : > { %1605 = vmatmul.msk.f32.vlgmr.msrb.gmra.mxu3 %vm467_vm0, %v1917_v12  ;;  %1045 = vmatpush.msrb.mxu0 %v399_v62 }
  0x73   : > { %1065 = vmatpush.msrb.mxu1 %v400_v63 }
  0x74   : > { %1046 = vmatpush.msrb.mxu0 %v367_v0  ;;  %v1230_v0 = vperm.slane %v1211_v35, 4 }
  0x75   : > { %1066 = vmatpush.msrb.mxu1 %v368_v1  ;;  %1602 = vmatmul.msk.f32.vlgmr.msrb.gmra.mxu0 %vm467_vm0, %v1917_v12  ;;  %v1231_v1 = vperm.slane %v1211_v35, 5 }
  0x76   : > { %1603 = vmatmul.msk.f32.vlgmr.msrb.gmra.mxu1 %vm467_vm0, %v1917_v12 }
  0xad   : > { %v488_v5 = vpop.f32.mrf.mxu0 }
  0xae   : > { %v508_v6 = vpop.f32.mrf.mxu1  ;;  %v1282_v9 = vadd.f32 %v1218_v3, %v488_v5  ;;  %v1233_v3 = vperm.slane %v1211_v35, 7 }
  0xaf   : > { %v1283_v10 = vadd.f32 %v1219_v4, %v508_v6  ;;  %v528_v11 = vpop.f32.mrf.mxu2 }
  0xb0   : > { %v548_v13 = vpop.f32.mrf.mxu3  ;;  %vm1314_vm1 = vcmp.ge.f32.partialorder %v1282_v9, 0.0  ;;  %v1346_v12 = vmul.f32 0.01, %v1282_v9  ;;  %v1284_v15 = vadd.f32 %v1220_v7, %v528_v11 }
  0xb1   : > { %vm1315_vm2 = vcmp.ge.f32.partialorder %v1283_v10, 0.0  ;;  %v1347_v14 = vmul.f32 0.01, %v1283_v10  ;;  %v1285_v16 = vadd.f32 %v1221_v8, %v548_v13  ;;  %v1212_v13 = vld [vmem:[%s1896_s10 + $0x10] sm:$0xff] }
  0xb2   : > { %v1378_v17 = vsel %vm1314_vm1, %v1282_v9, %v1346_v12  ;;  %vm1316_vm3 = vcmp.ge.f32.partialorder %v1284_v15, 0.0  ;;  %v1348_v19 = vmul.f32 0.01, %v1284_v15 }
  0xb3   : > { %v1379_v18 = vsel %vm1315_vm2, %v1283_v10, %v1347_v14  ;;  %1410 = vst [vmem:[%s2104_s20] sm:$0xff] %v1378_v17  ;;  %vm1317_vm4 = vcmp.ge.f32.partialorder %v1285_v16, 0.0  ;;  %v1349_v20 = vmul.f32 0.01, %v1285_v16 }
  0xb4   : > { %1411 = vst [vmem:[%s2104_s20 + $0x8] sm:$0xff] %v1379_v18  ;;  %v1380_v23 = vsel %vm1316_vm3, %v1284_v15, %v1348_v19 }
  0xb5   : > { %v1381_v24 = vsel %vm1317_vm4, %v1285_v16, %v1349_v20  ;;  %1412 = vst [vmem:[%s2104_s20 + $0x10] sm:$0xff] %v1380_v23  ;;  %v1236_v23 = vperm.slane %v1212_v13, 2 }
  0xb6   : > { %1413 = vst [vmem:[%s2104_s20 + $0x18] sm:$0xff] %v1381_v24  ;;  %v1237_v24 = vperm.slane %v1212_v13, 3 }
  0xb7   : > { %v568_v27 = vpop.f32.mrf.mxu0 }
  0xb8   : > { %v588_v28 = vpop.f32.mrf.mxu1  ;;  %v1286_v29 = vadd.f32 %v1222_v21, %v568_v27  ;;  %v608_v31 = vpop.f32.mrf.mxu2  ;;  %v1234_v21 = vperm.slane %v1212_v13, 0 }
  0xb9   : > { %v1287_v30 = vadd.f32 %v1223_v22, %v588_v28  ;;  %v628_v32 = vpop.f32.mrf.mxu3  ;;  %v1288_v33 = vadd.f32 %v1224_v25, %v608_v31  ;;  %v1235_v22 = vperm.slane %v1212_v13, 1 }
  0xba   : > { %v1289_v34 = vadd.f32 %v1225_v26, %v628_v32  ;;  %vm1318_vm5 = vcmp.ge.f32.partialorder %v1286_v29, 0.0  ;;  %v1350_v36 = vmul.f32 0.01, %v1286_v29 }
  0xbb   : > { %vm1319_vm6 = vcmp.ge.f32.partialorder %v1287_v30, 0.0  ;;  %v1351_v37 = vmul.f32 0.01, %v1287_v30  ;;  %vm1320_vm7 = vcmp.ge.f32.partialorder %v1288_v33, 0.0  ;;  %v1352_v38 = vmul.f32 0.01, %v1288_v33 }
  0xbc   : > { %vm1321_vm8 = vcmp.ge.f32.partialorder %v1289_v34, 0.0  ;;  %v1353_v39 = vmul.f32 0.01, %v1289_v34  ;;  %v1382_v40 = vsel %vm1318_vm5, %v1286_v29, %v1350_v36 }
  0xbd   : > { %v1383_v41 = vsel %vm1319_vm6, %v1287_v30, %v1351_v37  ;;  %1414 = vst [vmem:[%s2104_s20 + $0x20] sm:$0xff] %v1382_v40  ;;  %v1384_v42 = vsel %vm1320_vm7, %v1288_v33, %v1352_v38 }
  0xbe   : > { %v1385_v43 = vsel %vm1321_vm8, %v1289_v34, %v1353_v39  ;;  %1415 = vst [vmem:[%s2104_s20 + $0x28] sm:$0xff] %v1383_v41  ;;  %v1238_v41 = vperm.slane %v1212_v13, 4 }
  0xbf   : > { %1416 = vst [vmem:[%s2104_s20 + $0x30] sm:$0xff] %v1384_v42  ;;  %v1239_v42 = vperm.slane %v1212_v13, 5 }
  0xc0   : > { %1417 = vst [vmem:[%s2104_s20 + $0x38] sm:$0xff] %v1385_v43  ;;  %v1240_v43 = vperm.slane %v1212_v13, 6 }
  0xc1   : > { %v648_v48 = vpop.f32.mrf.mxu0 }
  0xc2   : > { %v668_v49 = vpop.f32.mrf.mxu1  ;;  %v1290_v50 = vadd.f32 %v1226_v44, %v648_v48  ;;  %v688_v52 = vpop.f32.mrf.mxu2  ;;  %v1241_v44 = vperm.slane %v1212_v13, 7 }
  0xc3   : > { %v1291_v51 = vadd.f32 %v1227_v45, %v668_v49  ;;  %v708_v53 = vpop.f32.mrf.mxu3  ;;  %v1292_v54 = vadd.f32 %v1228_v46, %v688_v52 }
  0xc4   : > { %v1293_v55 = vadd.f32 %v1229_v47, %v708_v53  ;;  %vm1322_vm9 = vcmp.ge.f32.partialorder %v1290_v50, 0.0  ;;  %v1354_v56 = vmul.f32 0.01, %v1290_v50  ;;  %v1213_v53 = vld [vmem:[%s1896_s10 + $0x18] sm:$0xff] }
  0xc5   : > { %vm1323_vm10 = vcmp.ge.f32.partialorder %v1291_v51, 0.0  ;;  %v1355_v57 = vmul.f32 0.01, %v1291_v51  ;;  %vm1324_vm11 = vcmp.ge.f32.partialorder %v1292_v54, 0.0  ;;  %v1356_v58 = vmul.f32 0.01, %v1292_v54 }
  0xc6   : > { %vm1325_vm12 = vcmp.ge.f32.partialorder %v1293_v55, 0.0  ;;  %v1357_v59 = vmul.f32 0.01, %v1293_v55  ;;  %v1386_v60 = vsel %vm1322_vm9, %v1290_v50, %v1354_v56 }
  0xc7   : > { %v1387_v61 = vsel %vm1323_vm10, %v1291_v51, %v1355_v57  ;;  %1418 = vst [vmem:[%s2104_s20 + $0x40] sm:$0xff] %v1386_v60  ;;  %v1388_v62 = vsel %vm1324_vm11, %v1292_v54, %v1356_v58 }
  0xc8   : > { %v1389_v63 = vsel %vm1325_vm12, %v1293_v55, %v1357_v59  ;;  %1419 = vst [vmem:[%s2104_s20 + $0x48] sm:$0xff] %v1387_v61 }
  0xc9   : > { %1420 = vst [vmem:[%s2104_s20 + $0x50] sm:$0xff] %v1388_v62  ;;  %v1242_v62 = vperm.slane %v1213_v53, 0 }
  0xca   : > { %1421 = vst [vmem:[%s2104_s20 + $0x58] sm:$0xff] %v1389_v63  ;;  %v1243_v63 = vperm.slane %v1213_v53, 1 }
  0xcb   : > { %v728_v4 = vpop.f32.mrf.mxu0 }
  0xcc   : > { %v748_v5 = vpop.f32.mrf.mxu1  ;;  %v1294_v6 = vadd.f32 %v1230_v0, %v728_v4  ;;  %v768_v8 = vpop.f32.mrf.mxu2  ;;  %v1244_v0 = vperm.slane %v1213_v53, 2 }
  0xcd   : > { %v1295_v7 = vadd.f32 %v1231_v1, %v748_v5  ;;  %v788_v9 = vpop.f32.mrf.mxu3  ;;  %v1296_v10 = vadd.f32 %v1232_v2, %v768_v8  ;;  %v1245_v1 = vperm.slane %v1213_v53, 3 }
  0xce   : > { %v1297_v11 = vadd.f32 %v1233_v3, %v788_v9  ;;  %vm1326_vm13 = vcmp.ge.f32.partialorder %v1294_v6, 0.0  ;;  %v1358_v12 = vmul.f32 0.01, %v1294_v6 }
  0xcf   : > { %vm1327_vm14 = vcmp.ge.f32.partialorder %v1295_v7, 0.0  ;;  %v1359_v14 = vmul.f32 0.01, %v1295_v7  ;;  %vm1328_vm15 = vcmp.ge.f32.partialorder %v1296_v10, 0.0  ;;  %v1360_v15 = vmul.f32 0.01, %v1296_v10 }
  0xd0   : > { %vm1329_vm0 = vcmp.ge.f32.partialorder %v1297_v11, 0.0  ;;  %v1361_v16 = vmul.f32 0.01, %v1297_v11  ;;  %v1390_v17 = vsel %vm1326_vm13, %v1294_v6, %v1358_v12 }
  0xd1   : > { %v1391_v18 = vsel %vm1327_vm14, %v1295_v7, %v1359_v14  ;;  %1422 = vst [vmem:[%s2104_s20 + $0x60] sm:$0xff] %v1390_v17  ;;  %v1392_v19 = vsel %vm1328_vm15, %v1296_v10, %v1360_v15 }
  0xd2   : > { %v1393_v20 = vsel %vm1329_vm0, %v1297_v11, %v1361_v16  ;;  %1423 = vst [vmem:[%s2104_s20 + $0x68] sm:$0xff] %v1391_v18  ;;  %v1246_v18 = vperm.slane %v1213_v53, 4 }
  0xd3   : > { %1424 = vst [vmem:[%s2104_s20 + $0x70] sm:$0xff] %v1392_v19  ;;  %v1247_v19 = vperm.slane %v1213_v53, 5 }
  0xd4   : > { %1425 = vst [vmem:[%s2104_s20 + $0x78] sm:$0xff] %v1393_v20 }
  0xd5   : > { %v808_v25 = vpop.f32.mrf.mxu0 }
  0xd6   : > { %v828_v26 = vpop.f32.mrf.mxu1  ;;  %v1298_v27 = vadd.f32 %v1234_v21, %v808_v25  ;;  %v848_v29 = vpop.f32.mrf.mxu2 }
  0xd7   : > { %v1299_v28 = vadd.f32 %v1235_v22, %v828_v26  ;;  %v868_v30 = vpop.f32.mrf.mxu3  ;;  %v1300_v31 = vadd.f32 %v1236_v23, %v848_v29  ;;  %v1248_v22 = vperm.slane %v1213_v53, 6  ;;  %v1249_v23 = vperm.slane %v1213_v53, 7 }
  0xd8   : > { %v1301_v32 = vadd.f32 %v1237_v24, %v868_v30  ;;  %vm1330_vm1 = vcmp.ge.f32.partialorder %v1298_v27, 0.0  ;;  %v1362_v33 = vmul.f32 0.01, %v1298_v27 }
  0xd9   : > { %vm1331_vm2 = vcmp.ge.f32.partialorder %v1299_v28, 0.0  ;;  %v1363_v34 = vmul.f32 0.01, %v1299_v28  ;;  %vm1332_vm3 = vcmp.ge.f32.partialorder %v1300_v31, 0.0  ;;  %v1364_v35 = vmul.f32 0.01, %v1300_v31 }
  0xda   : > { %vm1333_vm4 = vcmp.ge.f32.partialorder %v1301_v32, 0.0  ;;  %v1365_v36 = vmul.f32 0.01, %v1301_v32  ;;  %v1394_v37 = vsel %vm1330_vm1, %v1298_v27, %v1362_v33 }
  0xdb   : > { %v1395_v38 = vsel %vm1331_vm2, %v1299_v28, %v1363_v34  ;;  %1426 = vst [vmem:[%s2104_s20 + $0x80] sm:$0xff] %v1394_v37  ;;  %v1396_v39 = vsel %vm1332_vm3, %v1300_v31, %v1364_v35 }
  0xdc   : > { %v1397_v40 = vsel %vm1333_vm4, %v1301_v32, %v1365_v36  ;;  %1427 = vst [vmem:[%s2104_s20 + $0x88] sm:$0xff] %v1395_v38 }
  0xdd   : > { %1428 = vst [vmem:[%s2104_s20 + $0x90] sm:$0xff] %v1396_v39 }
  0xde   : > { %1429 = vst [vmem:[%s2104_s20 + $0x98] sm:$0xff] %v1397_v40 }
  0xdf   : > { %v888_v45 = vpop.f32.mrf.mxu0 }
  0xe0   : > { %v908_v46 = vpop.f32.mrf.mxu1  ;;  %v1302_v47 = vadd.f32 %v1238_v41, %v888_v45  ;;  %v928_v49 = vpop.f32.mrf.mxu2 }
  0xe1   : > { %v1303_v48 = vadd.f32 %v1239_v42, %v908_v46  ;;  %v948_v50 = vpop.f32.mrf.mxu3  ;;  %v1304_v51 = vadd.f32 %v1240_v43, %v928_v49 }
  0xe2   : > { %v1305_v52 = vadd.f32 %v1241_v44, %v948_v50  ;;  %vm1334_vm5 = vcmp.ge.f32.partialorder %v1302_v47, 0.0  ;;  %v1366_v54 = vmul.f32 0.01, %v1302_v47 }
  0xe3   : > { %vm1335_vm6 = vcmp.ge.f32.partialorder %v1303_v48, 0.0  ;;  %v1367_v55 = vmul.f32 0.01, %v1303_v48  ;;  %vm1336_vm7 = vcmp.ge.f32.partialorder %v1304_v51, 0.0  ;;  %v1368_v56 = vmul.f32 0.01, %v1304_v51 }
  0xe4   : > { %vm1337_vm8 = vcmp.ge.f32.partialorder %v1305_v52, 0.0  ;;  %v1369_v57 = vmul.f32 0.01, %v1305_v52  ;;  %v1398_v58 = vsel %vm1334_vm5, %v1302_v47, %v1366_v54 }
  0xe5   : > { %v1399_v59 = vsel %vm1335_vm6, %v1303_v48, %v1367_v55  ;;  %1430 = vst [vmem:[%s2104_s20 + $0xa0] sm:$0xff] %v1398_v58  ;;  %v1400_v60 = vsel %vm1336_vm7, %v1304_v51, %v1368_v56 }
  0xe6   : > { %v1401_v61 = vsel %vm1337_vm8, %v1305_v52, %v1369_v57  ;;  %1431 = vst [vmem:[%s2104_s20 + $0xa8] sm:$0xff] %v1399_v59 }
  0xe7   : > { %1432 = vst [vmem:[%s2104_s20 + $0xb0] sm:$0xff] %v1400_v60 }
  0xe8   : > { %1433 = vst [vmem:[%s2104_s20 + $0xb8] sm:$0xff] %v1401_v61 }
  0xe9   : > { %v968_v2 = vpop.f32.mrf.mxu0 }
  0xea   : > { %v988_v3 = vpop.f32.mrf.mxu1  ;;  %v1306_v4 = vadd.f32 %v1242_v62, %v968_v2  ;;  %v1008_v6 = vpop.f32.mrf.mxu2 }
  0xeb   : > { %v1307_v5 = vadd.f32 %v1243_v63, %v988_v3  ;;  %v1028_v7 = vpop.f32.mrf.mxu3  ;;  %v1308_v8 = vadd.f32 %v1244_v0, %v1008_v6 }
  0xec   : > { %v1309_v9 = vadd.f32 %v1245_v1, %v1028_v7  ;;  %vm1338_vm9 = vcmp.ge.f32.partialorder %v1306_v4, 0.0  ;;  %v1370_v10 = vmul.f32 0.01, %v1306_v4 }
  0xed   : > { %vm1339_vm10 = vcmp.ge.f32.partialorder %v1307_v5, 0.0  ;;  %v1371_v11 = vmul.f32 0.01, %v1307_v5  ;;  %vm1340_vm11 = vcmp.ge.f32.partialorder %v1308_v8, 0.0  ;;  %v1372_v13 = vmul.f32 0.01, %v1308_v8 }
  0xee   : > { %vm1341_vm12 = vcmp.ge.f32.partialorder %v1309_v9, 0.0  ;;  %v1373_v12 = vmul.f32 0.01, %v1309_v9  ;;  %v1402_v14 = vsel %vm1338_vm9, %v1306_v4, %v1370_v10 }
  0xef   : > { %v1403_v15 = vsel %vm1339_vm10, %v1307_v5, %v1371_v11  ;;  %1434 = vst [vmem:[%s2104_s20 + $0xc0] sm:$0xff] %v1402_v14  ;;  %v1404_v16 = vsel %vm1340_vm11, %v1308_v8, %v1372_v13 }
  0xf0   : > { %v1405_v17 = vsel %vm1341_vm12, %v1309_v9, %v1373_v12  ;;  %1435 = vst [vmem:[%s2104_s20 + $0xc8] sm:$0xff] %v1403_v15 }
  0xf1   : > { %1436 = vst [vmem:[%s2104_s20 + $0xd0] sm:$0xff] %v1404_v16 }
  0xf2   : > { %1437 = vst [vmem:[%s2104_s20 + $0xd8] sm:$0xff] %v1405_v17  ;;  %v1048_v20 = vpop.f32.mrf.mxu0 }
  0xf3   : > { %v1068_v21 = vpop.f32.mrf.mxu1  ;;  %v1310_v24 = vadd.f32 %v1246_v18, %v1048_v20 }
  0xf4   : > { %v1311_v25 = vadd.f32 %v1247_v19, %v1068_v21  ;;  %v1088_v26 = vpop.f32.mrf.mxu2 }
  0xf5   : > { %v1108_v27 = vpop.f32.mrf.mxu3  ;;  %vm1342_vm13 = vcmp.ge.f32.partialorder %v1310_v24, 0.0  ;;  %v1374_v28 = vmul.f32 0.01, %v1310_v24  ;;  %v1312_v30 = vadd.f32 %v1248_v22, %v1088_v26 }
  0xf6   : > { %vm1343_vm14 = vcmp.ge.f32.partialorder %v1311_v25, 0.0  ;;  %v1375_v29 = vmul.f32 0.01, %v1311_v25  ;;  %v1313_v31 = vadd.f32 %v1249_v23, %v1108_v27 }
  0xf7   : > { %v1406_v32 = vsel %vm1342_vm13, %v1310_v24, %v1374_v28  ;;  %vm1344_vm15 = vcmp.ge.f32.partialorder %v1312_v30, 0.0  ;;  %v1376_v34 = vmul.f32 0.01, %v1312_v30 }
  0xf8   : > { %v1407_v33 = vsel %vm1343_vm14, %v1311_v25, %v1375_v29  ;;  %1438 = vst [vmem:[%s2104_s20 + $0xe0] sm:$0xff] %v1406_v32  ;;  %vm1345_vm0 = vcmp.ge.f32.partialorder %v1313_v31, 0.0  ;;  %v1377_v35 = vmul.f32 0.01, %v1313_v31 }
  0xf9   : > { %1439 = vst [vmem:[%s2104_s20 + $0xe8] sm:$0xff] %v1407_v33  ;;  %v1408_v36 = vsel %vm1344_vm15, %v1312_v30, %v1376_v34 }
  0xfa   : > { %1440 = vst [vmem:[%s2104_s20 + $0xf0] sm:$0xff] %v1408_v36  ;;  %v1409_v37 = vsel %vm1345_vm0, %v1313_v31, %v1377_v35 }
  0xfb   : > { %1441 = vst [vmem:[%s2104_s20 + $0xf8] sm:$0xff] %v1409_v37 }
  0xfc PF: > { %s19_s17 = sadd.s32 1, %s1786_s17   ;;  %s2166_s12 = smov %s1770_s13 }
  0xfd   : > { %p16_p0 = scmp.ge.s32.totalorder %s19_s17, 4   ;;  %s2167_s13 = smov %s1774_s14 }
  0xfe   : > { %s2168_s14 = smov %s1860_s24  ;;  %s2169_s15 = smov %s1782_s16 }
  0xff   : > { %s2170_s16 = smov %s2172_s19  ;;  %18 = sbr.rel (!%p16_p0) target bundleno = 6 (0x6), region = 96 }
 0x104   :  { %1464 = vsyncpa [#allocation4], 1 }
 0x105   :  { %1466 = vsyncpa [#allocation4 + $0x1], 1 }
 0x106   :  { %1467 = vsyncpa [#allocation6], 1 }
 0x107   :  { %1469 = vsyncpa [#allocation6 + $0x1], 1 }

// kernel: trading_net_forward.3
= control target key start
LH: loop header
LB: loop body
LE: loop exit
PB: predicated region body
PF: predicated region fallthrough
CT: control target
= control target key end

     0   :  { %s4410_s0 = inlined_call_operand.vmem [shape: f32[8,8192], index: 0, kind: input, shape index: {}]   ;;  %s4411_s1 = inlined_call_operand.hbm [shape: f32[8192,1024], index: 1, kind: input, shape index: {}]   ;;  %s4412_s2 = inlined_call_operand.hbm [shape: f32[1,1024], index: 2, kind: input, shape index: {}]   ;;  %s4413_s3 = inlined_call_operand.vmem [shape: f32[8,1024], index: 3, kind: output, shape index: {}]  }
   0x1   :  { %4416 = sst [smem:[#allocation11_spill]] %s4411_s1 }
   0x2   :  { %8 = vsyncpa [#allocation4], 0 }
   0x3   :  { %10 = vsyncpa [#allocation4 + $0x1], 0 }
   0x4   :  { %11 = vsyncpa [#allocation6], 0 }
   0x5   :  { %13 = vsyncpa [#allocation6 + $0x1], 0  ;;  %s3125_s12 = smov 0   ;;  %s3127_s13 = smov 0  }
   0x6   :  { %s3129_s14 = smov 0   ;;  %s3131_s15 = smov 0  }
   0x7   :  { %s3133_s16 = smov 0   ;;  %s3135_s17 = smov 0  }
   0x8   :  { %s3137_s18 = smov 0   ;;  %s3139_s19 = smov 0  }
   0x9   :  { %s3141_s20 = smov 0   ;;  %s3143_s21 = smov 0  }
   0xa   :  { %s3145_s22 = smov 0  }
   0xb LB: > { %s28_s23 = sadd.s32 1, %s3091_s20  ;;  %s31_s24 = sadd.s32 1, %s3095_s21  ;;  %s3099_s22 = sphi %s3145_s22, %s19_s22   ;;  %s3095_s21 = sphi %s3143_s21, %s4435_s21   ;;  %s3091_s20 = sphi %s3141_s20, %s4434_s20   ;;  %s3087_s19 = sphi %s3139_s19, %s4433_s19   ;;  %s3083_s18 = sphi %s3137_s18, %s4432_s18   ;;  %s3079_s17 = sphi %s3135_s17, %s4431_s17   ;;  %s3075_s16 = sphi %s3133_s16, %s4430_s16   ;;  %s3071_s15 = sphi %s3131_s15, %s4429_s15   ;;  %s3067_s14 = sphi %s3129_s14, %s4428_s14   ;;  %s3063_s13 = sphi %s3127_s13, %s4427_s13   ;;  %s3059_s12 = sphi %s3125_s12, %s4426_s12  }
   0xc   : > { %p29_p0 = scmp.ge.s32.totalorder %s28_s23, 4  ;;  %p73_p1 = scmp.ne.s32.totalorder %s3079_s17, %s3075_s16 }
   0xd   : > { %p74_p2 = scmp.eq.s32.totalorder %s3099_s22, 0  ;;  %s66_s25 = sadd.s32 1, %s3079_s17 }
   0xe   : > { %s4437_s23 = smov (%p29_p0, %s28_s23), 0  ;;  %s4439_s24 = smov (!%p29_p0, %s31_s24), %s3095_s21 }
   0xf   : > { %4417 = sst [smem:[#allocation9_spill]] %s4437_s23  ;;  %p75_p3 = por %p74_p2, %p73_p1 }
  0x10   : > { %p2804_p4 = scmp.lt.s32.totalorder %s3099_s22, 8  ;;  %s164_s26 = sand.u32 1, %s3079_s17  }
  0x11   : > { %s2776_s27 = sshll.u32 %s3095_s21, 2  ;;  %s2774_s28 = sshll.u32 %s164_s26, 13 }
  0x12   : > { %s2792_s29 = sshll.u32 %s3091_s20, 11  ;;  %s168_s4 = scalar_lea.vmem [#allocation3], %s2774_s28 }
  0x13   : > { %s174_s30 = sadd.s32 %s2792_s29, %s2776_s27  ;;  %s179_s5 = sshll.u32 %s168_s4, 4  ;;  %s180_s5 = int_to_ptr.vmem [resolvable:$true] %s179_s5 }
  0x14   : > { %s2778_s6 = sshll.u32 %s174_s30, 3  ;;  %s4418_s1 = sld [smem:[#allocation11_spill]] }
  0x15   : > { %p2798_p5 = pnand %p2804_p4, %p75_p3  ;;  %s165_s11 = scalar_lea.sflag [#allocation4], %s164_s26 }
  0x16   : > { %s3101_s28 = smov 1024   ;;  %s3102_s29 = smov 512  }
  0x17   : > { %s3103_s30 = smov 32   ;;  %p2781_p6 = scmp.ge.s32.totalorder %s3099_s22, 1 }
  0x18   : > { %p206_p7 = scmp.lt.s32.totalorder %s3099_s22, 9  ;;  %s61_s4 = ssub.s32 %s3091_s20, %s4437_s23 }
  0x19   : > { %s2770_s26 = sadd.s32 4294967295, %s3099_s22   ;;  %p33_p9 = scmp.ge.s32.totalorder %s4439_s24, 2 }
  0x1a   : > { %s176_s9 = scalar_lea.hbm %s4418_s1, %s2778_s6  ;;  %p3208_p8 = pnand %p2781_p6, %p206_p7 }
  0x1b   : > { %s177_s10 = sshll.u32 %s176_s9, 4  ;;  %p79_p10 = scmp.ne.s32.totalorder %s3075_s16, %s3071_s15  ;;  %s178_s10 = int_to_ptr.hbm [resolvable:$true] %s177_s10 }
  0x1c   : > { %2800 = dma.hbm_to_vmem [thread:$0]  (!%p2798_p5), %s178_s10, 131072, %s180_s5, %s165_s11, %s3101_s28, %s3102_s29, %s3103_s30  }
  0x1d   : > { %p80_p11 = scmp.eq.s32.totalorder %s2770_s26, 0  ;;  %s4441_s24 = smov (%p33_p9, %s4439_s24), 0 }
  0x1e   : > { %4420 = sst [smem:[#allocation10_spill]] %s4441_s24  ;;  %s92_s7 = sadd.s32 1, %s3067_s14 }
  0x1f   : > { %p3219_p12 = por %p80_p11, %p79_p10  ;;  %s62_s8 = ssub.s32 %s3095_s21, %s4441_s24 }
  0x20   : > { %p105_p13 = scmp.ne.s32.totalorder %s3063_s13, %s3059_s12  ;;  %s63_s9 = sor.u32 %s62_s8, %s61_s4 }
  0x21   : > { %p90_p0 = scmp.eq.s32.totalorder %s62_s8, 0  ;;  %p64_p1 = scmp.eq.s32.totalorder %s63_s9, 0 }
  0x22   : > { %p99_p3 = scmp.ne.s32.totalorder %s3067_s14, %s3063_s13  ;;  %p3238_p5 = por %p105_p13, %p80_p11 }
  0x23   : > { %s3231_s10 = scalar_select %p90_p0, %s3067_s14, %s92_s7  }
  0x24   : > { %s3236_s15 = scalar_select %p64_p1, %s3079_s17, %s66_s25  }
  0x25   : > { %s189_s28 = sand.u32 1, %s3067_s14   ;;  %p101_p6 = por %p99_p3, %p74_p2 }
  0x26   : > { %s2779_s29 = sshll.u32 %s189_s28, 2  ;;  %s197_s4 = scalar_lea.hbm %s4412_s2, %s2776_s27 }
  0x27   : > { %s199_s26 = sshll.u32 %s197_s4, 4  ;;  %s193_s8 = scalar_lea.vmem [#allocation5], %s2779_s29  ;;  %s200_s26 = int_to_ptr.hbm [resolvable:$true] %s199_s26 }
  0x28   : > { %s201_s7 = sshll.u32 %s193_s8, 4  ;;  %p2801_p7 = pnand %p2804_p4, %p101_p6  ;;  %s202_s7 = int_to_ptr.vmem [resolvable:$true] %s201_s7 }
  0x29   : > { %s190_s25 = scalar_lea.sflag [#allocation6], %s189_s28  ;;  %210 = sbr.rel (%p3208_p8) target bundleno = 1079 (0x437), region = 32 }
  0x2a   : > { %2803 = dma.hbm_to_vmem [thread:$0]  (!%p2801_p7), %s200_s26, 64, %s202_s7, %s190_s25  }
  0x2b   : > { %s212_s9 = sand.u32 (!%p3208_p8), 1, %s3075_s16  }
  0x2c   : > { %s2782_s1 = sshll.u32 (!%p3208_p8), %s212_s9, 13  ;;  %s213_s24 = scalar_lea.sflag (!%p3208_p8), [#allocation4], %s212_s9 }
  0x2d   : > { %s3255_s23 = scalar_lea.vmem (!%p3208_p8), [#allocation3], %s2782_s1 }
  0x2e   : > { %3050 = dma.done.wait (%p3219_p12), %s213_s24, 131072  }
  0x2f   : > { %3052 = vsyncadd (%p3219_p12), %s213_s24, 4294836224  ;;  %s222_s27 = sand.u32 1, %s3063_s13  }
  0x30   : > { %s3262_s28 = sshll.u32 %s222_s27, 2  ;;  %s223_s6 = scalar_lea.sflag [#allocation6], %s222_s27 }
  0x31   : > { %s226_s29 = scalar_lea.vmem [#allocation5], %s3262_s28 }
  0x32   : > { %3054 = dma.done.wait (%p3238_p5), %s223_s6, 64  }
  0x33   : > { %3056 = vsyncadd (%p3238_p5), %s223_s6, 4294967232  ;;  %s2784_s1 = sshll.u32 %s3083_s18, 4  ;;  %s2786_s12 = sshll.u32 %s3087_s19, 2 }
  0x34   : > { %p261_p2 = scmp.lt.s32.totalorder %s2784_s1, 63  ;;  %p270_p4 = scmp.lt.s32.totalorder %s2786_s12, 7 }
  0x35   : > { %p2788_p8 = scmp.ne.s32.totalorder %s3083_s18, 0 }
  0x36   : > { %s4443_s1 = smov (!%p261_p2, %s2784_s1), 63  ;;  %s4445_s12 = smov (!%p270_p4, %s2786_s12), 7 }
  0x37   : > { %s2785_s24 = sshll.u32 %s4443_s1, 3  ;;  %s2787_s26 = sshll.u32 %s4445_s12, 3 }
  0x38   : > { %s3274_s4 = scalar_lea.vmem %s4410_s0, %s2785_s24  ;;  %s3279_s11 = scalar_lea.vmem %s4413_s3, %s2787_s26 }
  0x39   : > { %278 = sbr.rel (%p2788_p8) target bundleno = 67 (0x43), region = 44 }
  0x3e   : > { %v3104_v0 = vmov 0.0  }
  0x3f   : > { %279 = vst [vmem:[#allocation2 + $0x10] sm:$0xff] %v3104_v0 }
  0x40   : > { %280 = vst [vmem:[#allocation2] sm:$0xff] %v3104_v0 }
  0x41   : > { %281 = vst [vmem:[#allocation2 + $0x18] sm:$0xff] %v3104_v0 }
  0x42   : > { %282 = vst [vmem:[#allocation2 + $0x8] sm:$0xff] %v3104_v0 }
  0x43 PF: > { %v363_v1 = vld [vmem:[%s3255_s23 + $0x1e0] sm:$0xff]  ;;  %p2789_p9 = scmp.ne.s32.totalorder %s3083_s18, 3 }
  0x44   : > { %v491_v2 = vld [vmem:[%s3255_s23 + $0x5e0] sm:$0xff]  ;;  %1327 = vmatpush.msra.mxu0 %v363_v1 }
  0x45   : > { %v359_v3 = vld [vmem:[%s3255_s23 + $0x1c0] sm:$0xff]  ;;  %1367 = vmatpush.msra.mxu2 %v491_v2 }
  0x46   : > { %v427_v4 = vld [vmem:[%s3255_s23 + $0x3e0] sm:$0xff]  ;;  %1328 = vmatpush.msra.mxu0 %v359_v3 }
  0x47   : > { %v487_v5 = vld [vmem:[%s3255_s23 + $0x5c0] sm:$0xff]  ;;  %1347 = vmatpush.msra.mxu1 %v427_v4 }
  0x48   : > { %v555_v6 = vld [vmem:[%s3255_s23 + $0x7e0] sm:$0xff]  ;;  %1368 = vmatpush.msra.mxu2 %v487_v5 }
  0x49   : > { %1387 = vmatpush.msra.mxu3 %v555_v6  ;;  %v355_v7 = vld [vmem:[%s3255_s23 + $0x1a0] sm:$0xff] }
  0x4a   : > { %v423_v8 = vld [vmem:[%s3255_s23 + $0x3c0] sm:$0xff]  ;;  %1329 = vmatpush.msra.mxu0 %v355_v7 }
  0x4b   : > { %v483_v9 = vld [vmem:[%s3255_s23 + $0x5a0] sm:$0xff]  ;;  %1348 = vmatpush.msra.mxu1 %v423_v8 }
  0x4c   : > { %v551_v10 = vld [vmem:[%s3255_s23 + $0x7c0] sm:$0xff]  ;;  %1369 = vmatpush.msra.mxu2 %v483_v9 }
  0x4d   : > { %v419_v11 = vld [vmem:[%s3255_s23 + $0x3a0] sm:$0xff]  ;;  %1388 = vmatpush.msra.mxu3 %v551_v10 }
  0x4e   : > { %v351_v12 = vld [vmem:[%s3255_s23 + $0x180] sm:$0xff]  ;;  %1349 = vmatpush.msra.mxu1 %v419_v11 }
  0x4f   : > { %v479_v13 = vld [vmem:[%s3255_s23 + $0x580] sm:$0xff]  ;;  %1330 = vmatpush.msra.mxu0 %v351_v12 }
  0x50   : > { %v547_v14 = vld [vmem:[%s3255_s23 + $0x7a0] sm:$0xff]  ;;  %1370 = vmatpush.msra.mxu2 %v479_v13 }
  0x51   : > { %v415_v15 = vld [vmem:[%s3255_s23 + $0x380] sm:$0xff]  ;;  %1389 = vmatpush.msra.mxu3 %v547_v14 }
  0x52   : > { %v543_v16 = vld [vmem:[%s3255_s23 + $0x780] sm:$0xff]  ;;  %1350 = vmatpush.msra.mxu1 %v415_v15 }
  0x53   : > { %v347_v17 = vld [vmem:[%s3255_s23 + $0x160] sm:$0xff]  ;;  %1390 = vmatpush.msra.mxu3 %v543_v16 }
  0x54   : > { %v475_v18 = vld [vmem:[%s3255_s23 + $0x560] sm:$0xff]  ;;  %1331 = vmatpush.msra.mxu0 %v347_v17 }
  0x55   : > { %v411_v19 = vld [vmem:[%s3255_s23 + $0x360] sm:$0xff]  ;;  %1371 = vmatpush.msra.mxu2 %v475_v18 }
  0x56   : > { %v539_v20 = vld [vmem:[%s3255_s23 + $0x760] sm:$0xff]  ;;  %1351 = vmatpush.msra.mxu1 %v411_v19 }
  0x57   : > { %v343_v21 = vld [vmem:[%s3255_s23 + $0x140] sm:$0xff]  ;;  %1391 = vmatpush.msra.mxu3 %v539_v20 }
  0x58   : > { %v471_v22 = vld [vmem:[%s3255_s23 + $0x540] sm:$0xff]  ;;  %1332 = vmatpush.msra.mxu0 %v343_v21 }
  0x59   : > { %v407_v23 = vld [vmem:[%s3255_s23 + $0x340] sm:$0xff]  ;;  %1372 = vmatpush.msra.mxu2 %v471_v22 }
  0x5a   : > { %v535_v24 = vld [vmem:[%s3255_s23 + $0x740] sm:$0xff]  ;;  %1352 = vmatpush.msra.mxu1 %v407_v23 }
  0x5b   : > { %v339_v25 = vld [vmem:[%s3255_s23 + $0x120] sm:$0xff]  ;;  %1392 = vmatpush.msra.mxu3 %v535_v24 }
  0x5c   : > { %v467_v26 = vld [vmem:[%s3255_s23 + $0x520] sm:$0xff]  ;;  %1333 = vmatpush.msra.mxu0 %v339_v25 }
  0x5d   : > { %v403_v27 = vld [vmem:[%s3255_s23 + $0x320] sm:$0xff]  ;;  %1373 = vmatpush.msra.mxu2 %v467_v26 }
  0x5e   : > { %v531_v28 = vld [vmem:[%s3255_s23 + $0x720] sm:$0xff]  ;;  %1353 = vmatpush.msra.mxu1 %v403_v27 }
  0x5f   : > { %v335_v29 = vld [vmem:[%s3255_s23 + $0x100] sm:$0xff]  ;;  %1393 = vmatpush.msra.mxu3 %v531_v28 }
  0x60   : > { %v463_v30 = vld [vmem:[%s3255_s23 + $0x500] sm:$0xff]  ;;  %1334 = vmatpush.msra.mxu0 %v335_v29 }
  0x61   : > { %v399_v31 = vld [vmem:[%s3255_s23 + $0x300] sm:$0xff]  ;;  %1374 = vmatpush.msra.mxu2 %v463_v30 }
  0x62   : > { %v527_v32 = vld [vmem:[%s3255_s23 + $0x700] sm:$0xff]  ;;  %1354 = vmatpush.msra.mxu1 %v399_v31 }
  0x63   : > { %v331_v33 = vld [vmem:[%s3255_s23 + $0xe0] sm:$0xff]  ;;  %1394 = vmatpush.msra.mxu3 %v527_v32 }
  0x64   : > { %v459_v34 = vld [vmem:[%s3255_s23 + $0x4e0] sm:$0xff]  ;;  %1335 = vmatpush.msra.mxu0 %v331_v33 }
  0x65   : > { %v395_v35 = vld [vmem:[%s3255_s23 + $0x2e0] sm:$0xff]  ;;  %1375 = vmatpush.msra.mxu2 %v459_v34 }
  0x66   : > { %v523_v36 = vld [vmem:[%s3255_s23 + $0x6e0] sm:$0xff]  ;;  %1355 = vmatpush.msra.mxu1 %v395_v35 }
  0x67   : > { %v327_v37 = vld [vmem:[%s3255_s23 + $0xc0] sm:$0xff]  ;;  %1395 = vmatpush.msra.mxu3 %v523_v36 }
  0x68   : > { %v455_v38 = vld [vmem:[%s3255_s23 + $0x4c0] sm:$0xff]  ;;  %1336 = vmatpush.msra.mxu0 %v327_v37 }
  0x69   : > { %v391_v39 = vld [vmem:[%s3255_s23 + $0x2c0] sm:$0xff]  ;;  %1376 = vmatpush.msra.mxu2 %v455_v38 }
  0x6a   : > { %v519_v40 = vld [vmem:[%s3255_s23 + $0x6c0] sm:$0xff]  ;;  %1356 = vmatpush.msra.mxu1 %v391_v39 }
  0x6b   : > { %v323_v41 = vld [vmem:[%s3255_s23 + $0xa0] sm:$0xff]  ;;  %1396 = vmatpush.msra.mxu3 %v519_v40 }
  0x6c   : > { %v451_v42 = vld [vmem:[%s3255_s23 + $0x4a0] sm:$0xff]  ;;  %1337 = vmatpush.msra.mxu0 %v323_v41 }
  0x6d   : > { %v387_v43 = vld [vmem:[%s3255_s23 + $0x2a0] sm:$0xff]  ;;  %1377 = vmatpush.msra.mxu2 %v451_v42 }
  0x6e   : > { %v515_v44 = vld [vmem:[%s3255_s23 + $0x6a0] sm:$0xff]  ;;  %1357 = vmatpush.msra.mxu1 %v387_v43 }
  0x6f   : > { %v319_v45 = vld [vmem:[%s3255_s23 + $0x80] sm:$0xff]  ;;  %1397 = vmatpush.msra.mxu3 %v515_v44 }
  0x70   : > { %v447_v46 = vld [vmem:[%s3255_s23 + $0x480] sm:$0xff]  ;;  %1338 = vmatpush.msra.mxu0 %v319_v45 }
  0x71   : > { %v383_v47 = vld [vmem:[%s3255_s23 + $0x280] sm:$0xff]  ;;  %1378 = vmatpush.msra.mxu2 %v447_v46 }
  0x72   : > { %v511_v48 = vld [vmem:[%s3255_s23 + $0x680] sm:$0xff]  ;;  %1358 = vmatpush.msra.mxu1 %v383_v47 }
  0x73   : > { %v315_v49 = vld [vmem:[%s3255_s23 + $0x60] sm:$0xff]  ;;  %1398 = vmatpush.msra.mxu3 %v511_v48 }
  0x74   : > { %v443_v50 = vld [vmem:[%s3255_s23 + $0x460] sm:$0xff]  ;;  %1339 = vmatpush.msra.mxu0 %v315_v49 }
  0x75   : > { %v379_v51 = vld [vmem:[%s3255_s23 + $0x260] sm:$0xff]  ;;  %1379 = vmatpush.msra.mxu2 %v443_v50 }
  0x76   : > { %v507_v52 = vld [vmem:[%s3255_s23 + $0x660] sm:$0xff]  ;;  %1359 = vmatpush.msra.mxu1 %v379_v51 }
  0x77   : > { %v311_v53 = vld [vmem:[%s3255_s23 + $0x40] sm:$0xff]  ;;  %1399 = vmatpush.msra.mxu3 %v507_v52 }
  0x78   : > { %v439_v54 = vld [vmem:[%s3255_s23 + $0x440] sm:$0xff]  ;;  %1340 = vmatpush.msra.mxu0 %v311_v53 }
  0x79   : > { %v375_v55 = vld [vmem:[%s3255_s23 + $0x240] sm:$0xff]  ;;  %1380 = vmatpush.msra.mxu2 %v439_v54 }
  0x7a   : > { %v503_v56 = vld [vmem:[%s3255_s23 + $0x640] sm:$0xff]  ;;  %1360 = vmatpush.msra.mxu1 %v375_v55 }
  0x7b   : > { %v307_v57 = vld [vmem:[%s3255_s23 + $0x20] sm:$0xff]  ;;  %1400 = vmatpush.msra.mxu3 %v503_v56 }
  0x7c   : > { %v435_v58 = vld [vmem:[%s3255_s23 + $0x420] sm:$0xff]  ;;  %1341 = vmatpush.msra.mxu0 %v307_v57 }
  0x7d   : > { %v371_v59 = vld [vmem:[%s3255_s23 + $0x220] sm:$0xff]  ;;  %1381 = vmatpush.msra.mxu2 %v435_v58 }
  0x7e   : > { %v499_v60 = vld [vmem:[%s3255_s23 + $0x620] sm:$0xff]  ;;  %1361 = vmatpush.msra.mxu1 %v371_v59  ;;  %v289_v59 = vld [vmem:[%s3274_s4 + $0x10] sm:$0xff] }
  0x7f   : > { %v303_v61 = vld [vmem:[%s3255_s23] sm:$0xff]  ;;  %1401 = vmatpush.msra.mxu3 %v499_v60 }
  0x80   : > { %v431_v62 = vld [vmem:[%s3255_s23 + $0x400] sm:$0xff]  ;;  %1342 = vmatpush.msra.mxu0 %v303_v61 }
  0x81   : > { %v619_v63 = vld [vmem:[%s3255_s23 + $0x9e0] sm:$0xff]  ;;  %1382 = vmatpush.msra.mxu2 %v431_v62 }
  0x82   : > { %v747_v0 = vld [vmem:[%s3255_s23 + $0xde0] sm:$0xff]  ;;  %1407 = vmatpush.msrb.mxu0 %v619_v63  ;;  %1383 = vmatmul.f32.vlgmr.msra.gmra.mxu2 %v289_v59 }
  0x83   : > { %v367_v1 = vld [vmem:[%s3255_s23 + $0x200] sm:$0xff]  ;;  %1447 = vmatpush.msrb.mxu2 %v747_v0 }
  0x84   : > { %v495_v2 = vld [vmem:[%s3255_s23 + $0x600] sm:$0xff]  ;;  %1362 = vmatpush.msra.mxu1 %v367_v1  ;;  %v290_v1 = vld [vmem:[%s3274_s4 + $0x18] sm:$0xff] }
  0x85   : > { %v615_v3 = vld [vmem:[%s3255_s23 + $0x9c0] sm:$0xff]  ;;  %1402 = vmatpush.msra.mxu3 %v495_v2 }
  0x86   : > { %v683_v4 = vld [vmem:[%s3255_s23 + $0xbe0] sm:$0xff]  ;;  %1408 = vmatpush.msrb.mxu0 %v615_v3  ;;  %1403 = vmatmul.f32.vlgmr.msra.gmra.mxu3 %v290_v1 }
  0x87   : > { %v743_v5 = vld [vmem:[%s3255_s23 + $0xdc0] sm:$0xff]  ;;  %1427 = vmatpush.msrb.mxu1 %v683_v4 }
  0x88   : > { %v811_v6 = vld [vmem:[%s3255_s23 + $0xfe0] sm:$0xff]  ;;  %1448 = vmatpush.msrb.mxu2 %v743_v5 }
  0x89   : > { %v611_v7 = vld [vmem:[%s3255_s23 + $0x9a0] sm:$0xff]  ;;  %1467 = vmatpush.msrb.mxu3 %v811_v6  ;;  %v288_v6 = vld [vmem:[%s3274_s4 + $0x8] sm:$0xff] }
  0x8a   : > { %v679_v8 = vld [vmem:[%s3255_s23 + $0xbc0] sm:$0xff]  ;;  %1409 = vmatpush.msrb.mxu0 %v611_v7  ;;  %1363 = vmatmul.f32.vlgmr.msra.gmra.mxu1 %v288_v6 }
  0x8b   : > { %v739_v9 = vld [vmem:[%s3255_s23 + $0xda0] sm:$0xff]  ;;  %1428 = vmatpush.msrb.mxu1 %v679_v8 }
  0x8c   : > { %v807_v10 = vld [vmem:[%s3255_s23 + $0xfc0] sm:$0xff]  ;;  %1449 = vmatpush.msrb.mxu2 %v739_v9 }
  0x8d   : > { %v607_v11 = vld [vmem:[%s3255_s23 + $0x980] sm:$0xff]  ;;  %1468 = vmatpush.msrb.mxu3 %v807_v10 }
  0x8e   : > { %v675_v12 = vld [vmem:[%s3255_s23 + $0xba0] sm:$0xff]  ;;  %1410 = vmatpush.msrb.mxu0 %v607_v11 }
  0x8f   : > { %v735_v13 = vld [vmem:[%s3255_s23 + $0xd80] sm:$0xff]  ;;  %1429 = vmatpush.msrb.mxu1 %v675_v12 }
  0x90   : > { %v803_v14 = vld [vmem:[%s3255_s23 + $0xfa0] sm:$0xff]  ;;  %1450 = vmatpush.msrb.mxu2 %v735_v13 }
  0x91   : > { %v603_v15 = vld [vmem:[%s3255_s23 + $0x960] sm:$0xff]  ;;  %1469 = vmatpush.msrb.mxu3 %v803_v14 }
  0x92   : > { %v671_v16 = vld [vmem:[%s3255_s23 + $0xb80] sm:$0xff]  ;;  %1411 = vmatpush.msrb.mxu0 %v603_v15  ;;  %v293_v15 = vld [vmem:[%s3274_s4 + $0x30] sm:$0xff] }
  0x93   : > { %v731_v17 = vld [vmem:[%s3255_s23 + $0xd60] sm:$0xff]  ;;  %1430 = vmatpush.msrb.mxu1 %v671_v16 }
  0x94   : > { %v799_v18 = vld [vmem:[%s3255_s23 + $0xf80] sm:$0xff]  ;;  %1451 = vmatpush.msrb.mxu2 %v731_v17 }
  0x95   : > { %v599_v19 = vld [vmem:[%s3255_s23 + $0x940] sm:$0xff]  ;;  %1470 = vmatpush.msrb.mxu3 %v799_v18 }
  0x96   : > { %v667_v20 = vld [vmem:[%s3255_s23 + $0xb60] sm:$0xff]  ;;  %1412 = vmatpush.msrb.mxu0 %v599_v19 }
  0x97   : > { %v727_v21 = vld [vmem:[%s3255_s23 + $0xd40] sm:$0xff]  ;;  %1431 = vmatpush.msrb.mxu1 %v667_v20 }
  0x98   : > { %v795_v22 = vld [vmem:[%s3255_s23 + $0xf60] sm:$0xff]  ;;  %1452 = vmatpush.msrb.mxu2 %v727_v21  ;;  %v294_v21 = vld [vmem:[%s3274_s4 + $0x38] sm:$0xff] }
  0x99   : > { %v595_v23 = vld [vmem:[%s3255_s23 + $0x920] sm:$0xff]  ;;  %1471 = vmatpush.msrb.mxu3 %v795_v22 }
  0x9a   : > { %v663_v24 = vld [vmem:[%s3255_s23 + $0xb40] sm:$0xff]  ;;  %1413 = vmatpush.msrb.mxu0 %v595_v23 }
  0x9b   : > { %v723_v25 = vld [vmem:[%s3255_s23 + $0xd20] sm:$0xff]  ;;  %1432 = vmatpush.msrb.mxu1 %v663_v24 }
  0x9c   : > { %v791_v26 = vld [vmem:[%s3255_s23 + $0xf40] sm:$0xff]  ;;  %1453 = vmatpush.msrb.mxu2 %v723_v25 }
  0x9d   : > { %v591_v27 = vld [vmem:[%s3255_s23 + $0x900] sm:$0xff]  ;;  %1472 = vmatpush.msrb.mxu3 %v791_v26  ;;  %v292_v26 = vld [vmem:[%s3274_s4 + $0x28] sm:$0xff] }
  0x9e   : > { %v659_v28 = vld [vmem:[%s3255_s23 + $0xb20] sm:$0xff]  ;;  %1414 = vmatpush.msrb.mxu0 %v591_v27 }
  0x9f   : > { %v719_v29 = vld [vmem:[%s3255_s23 + $0xd00] sm:$0xff]  ;;  %1433 = vmatpush.msrb.mxu1 %v659_v28 }
  0xa0   : > { %v787_v30 = vld [vmem:[%s3255_s23 + $0xf20] sm:$0xff]  ;;  %1454 = vmatpush.msrb.mxu2 %v719_v29 }
  0xa1   : > { %v587_v31 = vld [vmem:[%s3255_s23 + $0x8e0] sm:$0xff]  ;;  %1473 = vmatpush.msrb.mxu3 %v787_v30 }
  0xa2   : > { %v655_v32 = vld [vmem:[%s3255_s23 + $0xb00] sm:$0xff]  ;;  %1415 = vmatpush.msrb.mxu0 %v587_v31 }
  0xa3   : > { %v715_v33 = vld [vmem:[%s3255_s23 + $0xce0] sm:$0xff]  ;;  %1434 = vmatpush.msrb.mxu1 %v655_v32 }
  0xa4   : > { %v783_v34 = vld [vmem:[%s3255_s23 + $0xf00] sm:$0xff]  ;;  %1455 = vmatpush.msrb.mxu2 %v715_v33 }
  0xa5   : > { %v583_v35 = vld [vmem:[%s3255_s23 + $0x8c0] sm:$0xff]  ;;  %1474 = vmatpush.msrb.mxu3 %v783_v34 }
  0xa6   : > { %v651_v36 = vld [vmem:[%s3255_s23 + $0xae0] sm:$0xff]  ;;  %1416 = vmatpush.msrb.mxu0 %v583_v35 }
  0xa7   : > { %v711_v37 = vld [vmem:[%s3255_s23 + $0xcc0] sm:$0xff]  ;;  %1435 = vmatpush.msrb.mxu1 %v651_v36 }
  0xa8   : > { %v779_v38 = vld [vmem:[%s3255_s23 + $0xee0] sm:$0xff]  ;;  %1456 = vmatpush.msrb.mxu2 %v711_v37 }
  0xa9   : > { %v579_v39 = vld [vmem:[%s3255_s23 + $0x8a0] sm:$0xff]  ;;  %1475 = vmatpush.msrb.mxu3 %v779_v38 }
  0xaa   : > { %v647_v40 = vld [vmem:[%s3255_s23 + $0xac0] sm:$0xff]  ;;  %1417 = vmatpush.msrb.mxu0 %v579_v39 }
  0xab   : > { %v707_v41 = vld [vmem:[%s3255_s23 + $0xca0] sm:$0xff]  ;;  %1436 = vmatpush.msrb.mxu1 %v647_v40 }
  0xac   : > { %v775_v42 = vld [vmem:[%s3255_s23 + $0xec0] sm:$0xff]  ;;  %1457 = vmatpush.msrb.mxu2 %v707_v41 }
  0xad   : > { %v575_v43 = vld [vmem:[%s3255_s23 + $0x880] sm:$0xff]  ;;  %1476 = vmatpush.msrb.mxu3 %v775_v42 }
  0xae   : > { %v643_v44 = vld [vmem:[%s3255_s23 + $0xaa0] sm:$0xff]  ;;  %1418 = vmatpush.msrb.mxu0 %v575_v43 }
  0xaf   : > { %v703_v45 = vld [vmem:[%s3255_s23 + $0xc80] sm:$0xff]  ;;  %1437 = vmatpush.msrb.mxu1 %v643_v44 }
  0xb0   : > { %v771_v46 = vld [vmem:[%s3255_s23 + $0xea0] sm:$0xff]  ;;  %1458 = vmatpush.msrb.mxu2 %v703_v45 }
  0xb1   : > { %v571_v47 = vld [vmem:[%s3255_s23 + $0x860] sm:$0xff]  ;;  %1477 = vmatpush.msrb.mxu3 %v771_v46 }
  0xb2   : > { %v639_v48 = vld [vmem:[%s3255_s23 + $0xa80] sm:$0xff]  ;;  %1419 = vmatpush.msrb.mxu0 %v571_v47 }
  0xb3   : > { %v699_v49 = vld [vmem:[%s3255_s23 + $0xc60] sm:$0xff]  ;;  %1438 = vmatpush.msrb.mxu1 %v639_v48 }
  0xb4   : > { %v767_v50 = vld [vmem:[%s3255_s23 + $0xe80] sm:$0xff]  ;;  %1459 = vmatpush.msrb.mxu2 %v699_v49 }
  0xb5   : > { %v567_v51 = vld [vmem:[%s3255_s23 + $0x840] sm:$0xff]  ;;  %1478 = vmatpush.msrb.mxu3 %v767_v50 }
  0xb6   : > { %v635_v52 = vld [vmem:[%s3255_s23 + $0xa60] sm:$0xff]  ;;  %1420 = vmatpush.msrb.mxu0 %v567_v51 }
  0xb7   : > { %v695_v53 = vld [vmem:[%s3255_s23 + $0xc40] sm:$0xff]  ;;  %1439 = vmatpush.msrb.mxu1 %v635_v52 }
  0xb8   : > { %v763_v54 = vld [vmem:[%s3255_s23 + $0xe60] sm:$0xff]  ;;  %1460 = vmatpush.msrb.mxu2 %v695_v53 }
  0xb9   : > { %v563_v55 = vld [vmem:[%s3255_s23 + $0x820] sm:$0xff]  ;;  %1479 = vmatpush.msrb.mxu3 %v763_v54 }
  0xba   : > { %v631_v56 = vld [vmem:[%s3255_s23 + $0xa40] sm:$0xff]  ;;  %1421 = vmatpush.msrb.mxu0 %v563_v55 }
  0xbb   : > { %v691_v57 = vld [vmem:[%s3255_s23 + $0xc20] sm:$0xff]  ;;  %1440 = vmatpush.msrb.mxu1 %v631_v56 }
  0xbc   : > { %v759_v58 = vld [vmem:[%s3255_s23 + $0xe40] sm:$0xff]  ;;  %1461 = vmatpush.msrb.mxu2 %v691_v57 }
  0xbd   : > { %v559_v60 = vld [vmem:[%s3255_s23 + $0x800] sm:$0xff]  ;;  %1480 = vmatpush.msrb.mxu3 %v759_v58 }
  0xbe   : > { %v627_v61 = vld [vmem:[%s3255_s23 + $0xa20] sm:$0xff]  ;;  %1422 = vmatpush.msrb.mxu0 %v559_v60 }
  0xbf   : > { %v687_v62 = vld [vmem:[%s3255_s23 + $0xc00] sm:$0xff]  ;;  %1441 = vmatpush.msrb.mxu1 %v627_v61 }
  0xc0   : > { %v755_v63 = vld [vmem:[%s3255_s23 + $0xe20] sm:$0xff]  ;;  %1462 = vmatpush.msrb.mxu2 %v687_v62 }
  0xc1   : > { %v287_v0 = vld [vmem:[%s3274_s4] sm:$0xff]  ;;  %1481 = vmatpush.msrb.mxu3 %v755_v63  ;;  %1463 = vmatmul.f32.vlgmr.msrb.gmra.mxu2 %v293_v15 }
  0xc2   : > { %v875_v2 = vld [vmem:[%s3255_s23 + $0x11e0] sm:$0xff]  ;;  %1343 = vmatmul.f32.vlgmr.msra.gmra.mxu0 %v287_v0 }
  0xc3   : > { %v1003_v3 = vld [vmem:[%s3255_s23 + $0x15e0] sm:$0xff]  ;;  %1487 = vmatpush.msra.mxu0 %v875_v2 }
  0xc4   : > { %v623_v4 = vld [vmem:[%s3255_s23 + $0xa00] sm:$0xff]  ;;  %1527 = vmatpush.msra.mxu2 %v1003_v3 }
  0xc5   : > { %v751_v5 = vld [vmem:[%s3255_s23 + $0xe00] sm:$0xff]  ;;  %1442 = vmatpush.msrb.mxu1 %v623_v4 }
  0xc6   : > { %v871_v7 = vld [vmem:[%s3255_s23 + $0x11c0] sm:$0xff]  ;;  %1482 = vmatpush.msrb.mxu3 %v751_v5  ;;  %1443 = vmatmul.f32.vlgmr.msrb.gmra.mxu1 %v292_v26 }
  0xc7   : > { %v939_v8 = vld [vmem:[%s3255_s23 + $0x13e0] sm:$0xff]  ;;  %1488 = vmatpush.msra.mxu0 %v871_v7  ;;  %1483 = vmatmul.f32.vlgmr.msrb.gmra.mxu3 %v294_v21 }
  0xc8   : > { %v999_v9 = vld [vmem:[%s3255_s23 + $0x15c0] sm:$0xff]  ;;  %1507 = vmatpush.msra.mxu1 %v939_v8  ;;  %v297_v8 = vld [vmem:[%s3274_s4 + $0x50] sm:$0xff] }
  0xc9   : > { %v1067_v10 = vld [vmem:[%s3255_s23 + $0x17e0] sm:$0xff]  ;;  %1528 = vmatpush.msra.mxu2 %v999_v9 }
  0xca   : > { %v867_v11 = vld [vmem:[%s3255_s23 + $0x11a0] sm:$0xff]  ;;  %1547 = vmatpush.msra.mxu3 %v1067_v10 }
  0xcb   : > { %v935_v12 = vld [vmem:[%s3255_s23 + $0x13c0] sm:$0xff]  ;;  %1489 = vmatpush.msra.mxu0 %v867_v11 }
  0xcc   : > { %v995_v13 = vld [vmem:[%s3255_s23 + $0x15a0] sm:$0xff]  ;;  %1508 = vmatpush.msra.mxu1 %v935_v12 }
  0xcd   : > { %v1063_v14 = vld [vmem:[%s3255_s23 + $0x17c0] sm:$0xff]  ;;  %1529 = vmatpush.msra.mxu2 %v995_v13  ;;  %v296_v13 = vld [vmem:[%s3274_s4 + $0x48] sm:$0xff] }
  0xce   : > { %v863_v16 = vld [vmem:[%s3255_s23 + $0x1180] sm:$0xff]  ;;  %1548 = vmatpush.msra.mxu3 %v1063_v14  ;;  %v298_v14 = vld [vmem:[%s3274_s4 + $0x58] sm:$0xff] }
  0xcf   : > { %v931_v17 = vld [vmem:[%s3255_s23 + $0x13a0] sm:$0xff]  ;;  %1490 = vmatpush.msra.mxu0 %v863_v16 }
  0xd0   : > { %v991_v18 = vld [vmem:[%s3255_s23 + $0x1580] sm:$0xff]  ;;  %1509 = vmatpush.msra.mxu1 %v931_v17 }
  0xd1   : > { %v1059_v19 = vld [vmem:[%s3255_s23 + $0x17a0] sm:$0xff]  ;;  %1530 = vmatpush.msra.mxu2 %v991_v18 }
  0xd2   : > { %v291_v20 = vld [vmem:[%s3274_s4 + $0x20] sm:$0xff]  ;;  %1549 = vmatpush.msra.mxu3 %v1059_v19 }
  0xd3   : > { %v859_v22 = vld [vmem:[%s3255_s23 + $0x1160] sm:$0xff]  ;;  %1423 = vmatmul.f32.vlgmr.msrb.gmra.mxu0 %v291_v20 }
  0xd4   : > { %v927_v23 = vld [vmem:[%s3255_s23 + $0x1380] sm:$0xff]  ;;  %1491 = vmatpush.msra.mxu0 %v859_v22 }
  0xd5   : > { %v987_v24 = vld [vmem:[%s3255_s23 + $0x1560] sm:$0xff]  ;;  %1510 = vmatpush.msra.mxu1 %v927_v23 }
  0xd6   : > { %v1055_v25 = vld [vmem:[%s3255_s23 + $0x1780] sm:$0xff]  ;;  %1531 = vmatpush.msra.mxu2 %v987_v24 }
  0xd7   : > { %v855_v27 = vld [vmem:[%s3255_s23 + $0x1140] sm:$0xff]  ;;  %1550 = vmatpush.msra.mxu3 %v1055_v25 }
  0xd8   : > { %v923_v28 = vld [vmem:[%s3255_s23 + $0x1360] sm:$0xff]  ;;  %1492 = vmatpush.msra.mxu0 %v855_v27 }
  0xd9   : > { %v983_v29 = vld [vmem:[%s3255_s23 + $0x1540] sm:$0xff]  ;;  %1511 = vmatpush.msra.mxu1 %v923_v28 }
  0xda   : > { %v1051_v30 = vld [vmem:[%s3255_s23 + $0x1760] sm:$0xff]  ;;  %1532 = vmatpush.msra.mxu2 %v983_v29 }
  0xdb   : > { %v851_v31 = vld [vmem:[%s3255_s23 + $0x1120] sm:$0xff]  ;;  %1551 = vmatpush.msra.mxu3 %v1051_v30 }
  0xdc   : > { %v919_v32 = vld [vmem:[%s3255_s23 + $0x1340] sm:$0xff]  ;;  %1493 = vmatpush.msra.mxu0 %v851_v31 }
  0xdd   : > { %v979_v33 = vld [vmem:[%s3255_s23 + $0x1520] sm:$0xff]  ;;  %1512 = vmatpush.msra.mxu1 %v919_v32 }
  0xde   : > { %v1047_v34 = vld [vmem:[%s3255_s23 + $0x1740] sm:$0xff]  ;;  %1533 = vmatpush.msra.mxu2 %v979_v33 }
  0xdf   : > { %v847_v35 = vld [vmem:[%s3255_s23 + $0x1100] sm:$0xff]  ;;  %1552 = vmatpush.msra.mxu3 %v1047_v34 }
  0xe0   : > { %v915_v36 = vld [vmem:[%s3255_s23 + $0x1320] sm:$0xff]  ;;  %1494 = vmatpush.msra.mxu0 %v847_v35 }
  0xe1   : > { %v975_v37 = vld [vmem:[%s3255_s23 + $0x1500] sm:$0xff]  ;;  %1513 = vmatpush.msra.mxu1 %v915_v36 }
  0xe2   : > { %v1043_v38 = vld [vmem:[%s3255_s23 + $0x1720] sm:$0xff]  ;;  %1534 = vmatpush.msra.mxu2 %v975_v37 }
  0xe3   : > { %v843_v39 = vld [vmem:[%s3255_s23 + $0x10e0] sm:$0xff]  ;;  %1553 = vmatpush.msra.mxu3 %v1043_v38 }
  0xe4   : > { %v911_v40 = vld [vmem:[%s3255_s23 + $0x1300] sm:$0xff]  ;;  %1495 = vmatpush.msra.mxu0 %v843_v39 }
  0xe5   : > { %v971_v41 = vld [vmem:[%s3255_s23 + $0x14e0] sm:$0xff]  ;;  %1514 = vmatpush.msra.mxu1 %v911_v40 }
  0xe6   : > { %v1039_v42 = vld [vmem:[%s3255_s23 + $0x1700] sm:$0xff]  ;;  %1535 = vmatpush.msra.mxu2 %v971_v41 }
  0xe7   : > { %v839_v43 = vld [vmem:[%s3255_s23 + $0x10c0] sm:$0xff]  ;;  %1554 = vmatpush.msra.mxu3 %v1039_v42 }
  0xe8   : > { %v907_v44 = vld [vmem:[%s3255_s23 + $0x12e0] sm:$0xff]  ;;  %1496 = vmatpush.msra.mxu0 %v839_v43 }
  0xe9   : > { %v967_v45 = vld [vmem:[%s3255_s23 + $0x14c0] sm:$0xff]  ;;  %1515 = vmatpush.msra.mxu1 %v907_v44 }
  0xea   : > { %v1035_v46 = vld [vmem:[%s3255_s23 + $0x16e0] sm:$0xff]  ;;  %1536 = vmatpush.msra.mxu2 %v967_v45 }
  0xeb   : > { %v835_v47 = vld [vmem:[%s3255_s23 + $0x10a0] sm:$0xff]  ;;  %1555 = vmatpush.msra.mxu3 %v1035_v46 }
  0xec   : > { %v903_v48 = vld [vmem:[%s3255_s23 + $0x12c0] sm:$0xff]  ;;  %1497 = vmatpush.msra.mxu0 %v835_v47 }
  0xed   : > { %v963_v49 = vld [vmem:[%s3255_s23 + $0x14a0] sm:$0xff]  ;;  %1516 = vmatpush.msra.mxu1 %v903_v48 }
  0xee   : > { %v1031_v50 = vld [vmem:[%s3255_s23 + $0x16c0] sm:$0xff]  ;;  %1537 = vmatpush.msra.mxu2 %v963_v49 }
  0xef   : > { %v831_v51 = vld [vmem:[%s3255_s23 + $0x1080] sm:$0xff]  ;;  %1556 = vmatpush.msra.mxu3 %v1031_v50 }
  0xf0   : > { %v899_v52 = vld [vmem:[%s3255_s23 + $0x12a0] sm:$0xff]  ;;  %1498 = vmatpush.msra.mxu0 %v831_v51 }
  0xf1   : > { %v959_v53 = vld [vmem:[%s3255_s23 + $0x1480] sm:$0xff]  ;;  %1517 = vmatpush.msra.mxu1 %v899_v52 }
  0xf2   : > { %v1027_v54 = vld [vmem:[%s3255_s23 + $0x16a0] sm:$0xff]  ;;  %1538 = vmatpush.msra.mxu2 %v959_v53 }
  0xf3   : > { %v827_v55 = vld [vmem:[%s3255_s23 + $0x1060] sm:$0xff]  ;;  %1557 = vmatpush.msra.mxu3 %v1027_v54 }
  0xf4   : > { %v895_v56 = vld [vmem:[%s3255_s23 + $0x1280] sm:$0xff]  ;;  %1499 = vmatpush.msra.mxu0 %v827_v55 }
  0xf5   : > { %v955_v57 = vld [vmem:[%s3255_s23 + $0x1460] sm:$0xff]  ;;  %1518 = vmatpush.msra.mxu1 %v895_v56 }
  0xf6   : > { %v1023_v58 = vld [vmem:[%s3255_s23 + $0x1680] sm:$0xff]  ;;  %1539 = vmatpush.msra.mxu2 %v955_v57 }
  0xf7   : > { %v823_v59 = vld [vmem:[%s3255_s23 + $0x1040] sm:$0xff]  ;;  %1558 = vmatpush.msra.mxu3 %v1023_v58 }
  0xf8   : > { %v891_v60 = vld [vmem:[%s3255_s23 + $0x1260] sm:$0xff]  ;;  %1500 = vmatpush.msra.mxu0 %v823_v59 }
  0xf9   : > { %v951_v61 = vld [vmem:[%s3255_s23 + $0x1440] sm:$0xff]  ;;  %1519 = vmatpush.msra.mxu1 %v891_v60 }
  0xfa   : > { %v1019_v62 = vld [vmem:[%s3255_s23 + $0x1660] sm:$0xff]  ;;  %1540 = vmatpush.msra.mxu2 %v951_v61 }
  0xfb   : > { %v819_v63 = vld [vmem:[%s3255_s23 + $0x1020] sm:$0xff]  ;;  %1559 = vmatpush.msra.mxu3 %v1019_v62 }
  0xfc   : > { %v887_v0 = vld [vmem:[%s3255_s23 + $0x1240] sm:$0xff]  ;;  %1501 = vmatpush.msra.mxu0 %v819_v63 }
  0xfd   : > { %v947_v1 = vld [vmem:[%s3255_s23 + $0x1420] sm:$0xff]  ;;  %1520 = vmatpush.msra.mxu1 %v887_v0 }
  0xfe   : > { %v1015_v2 = vld [vmem:[%s3255_s23 + $0x1640] sm:$0xff]  ;;  %1541 = vmatpush.msra.mxu2 %v947_v1 }
  0xff   : > { %v815_v3 = vld [vmem:[%s3255_s23 + $0x1000] sm:$0xff]  ;;  %1560 = vmatpush.msra.mxu3 %v1015_v2 }
 0x100   : > { %v883_v4 = vld [vmem:[%s3255_s23 + $0x1220] sm:$0xff]  ;;  %1502 = vmatpush.msra.mxu0 %v815_v3 }
 0x101   : > { %v943_v5 = vld [vmem:[%s3255_s23 + $0x1400] sm:$0xff]  ;;  %1521 = vmatpush.msra.mxu1 %v883_v4 }
 0x102   : > { %v1011_v6 = vld [vmem:[%s3255_s23 + $0x1620] sm:$0xff]  ;;  %1542 = vmatpush.msra.mxu2 %v943_v5 }
 0x103   : > { %v295_v7 = vld [vmem:[%s3274_s4 + $0x40] sm:$0xff]  ;;  %1561 = vmatpush.msra.mxu3 %v1011_v6  ;;  %1543 = vmatmul.f32.vlgmr.msra.gmra.mxu2 %v297_v8 }
 0x104   : > { %v1131_v9 = vld [vmem:[%s3255_s23 + $0x19e0] sm:$0xff]  ;;  %1503 = vmatmul.f32.vlgmr.msra.gmra.mxu0 %v295_v7 }
 0x105   : > { %v1259_v10 = vld [vmem:[%s3255_s23 + $0x1de0] sm:$0xff]  ;;  %1567 = vmatpush.msrb.mxu0 %v1131_v9 }
 0x106   : > { %v879_v11 = vld [vmem:[%s3255_s23 + $0x1200] sm:$0xff]  ;;  %1607 = vmatpush.msrb.mxu2 %v1259_v10 }
 0x107   : > { %v1007_v12 = vld [vmem:[%s3255_s23 + $0x1600] sm:$0xff]  ;;  %1522 = vmatpush.msra.mxu1 %v879_v11 }
 0x108   : > { %v1127_v15 = vld [vmem:[%s3255_s23 + $0x19c0] sm:$0xff]  ;;  %1562 = vmatpush.msra.mxu3 %v1007_v12  ;;  %1523 = vmatmul.f32.vlgmr.msra.gmra.mxu1 %v296_v13  ;;  %v301_v12 = vld [vmem:[%s3274_s4 + $0x70] sm:$0xff]  ;;  %v364_v13 = vld [vmem:[%s3255_s23 + $0x1e8] sm:$0xff] }
 0x109   : > { %v1195_v16 = vld [vmem:[%s3255_s23 + $0x1be0] sm:$0xff]  ;;  %1563 = vmatmul.f32.vlgmr.msra.gmra.mxu3 %v298_v14  ;;  %1568 = vmatpush.msrb.mxu0 %v1127_v15  ;;  %v492_v14 = vld [vmem:[%s3255_s23 + $0x5e8] sm:$0xff] }
 0x10a   : > { %v1255_v17 = vld [vmem:[%s3255_s23 + $0x1dc0] sm:$0xff]  ;;  %1587 = vmatpush.msrb.mxu1 %v1195_v16 }
 0x10b   : > { %v1323_v18 = vld [vmem:[%s3255_s23 + $0x1fe0] sm:$0xff]  ;;  %1608 = vmatpush.msrb.mxu2 %v1255_v17  ;;  %v300_v17 = vld [vmem:[%s3274_s4 + $0x68] sm:$0xff] }
 0x10c   : > { %v1123_v19 = vld [vmem:[%s3255_s23 + $0x19a0] sm:$0xff]  ;;  %1627 = vmatpush.msrb.mxu3 %v1323_v18  ;;  %v302_v18 = vld [vmem:[%s3274_s4 + $0x78] sm:$0xff] }
 0x10d   : > { %v1191_v20 = vld [vmem:[%s3255_s23 + $0x1bc0] sm:$0xff]  ;;  %1569 = vmatpush.msrb.mxu0 %v1123_v19  ;;  %v360_v19 = vld [vmem:[%s3255_s23 + $0x1c8] sm:$0xff] }
 0x10e   : > { %v1251_v21 = vld [vmem:[%s3255_s23 + $0x1da0] sm:$0xff]  ;;  %1588 = vmatpush.msrb.mxu1 %v1191_v20  ;;  %v428_v20 = vld [vmem:[%s3255_s23 + $0x3e8] sm:$0xff] }
 0x10f   : > { %v1319_v22 = vld [vmem:[%s3255_s23 + $0x1fc0] sm:$0xff]  ;;  %1609 = vmatpush.msrb.mxu2 %v1251_v21  ;;  %v488_v21 = vld [vmem:[%s3255_s23 + $0x5c8] sm:$0xff] }
 0x110   : > { %v1119_v23 = vld [vmem:[%s3255_s23 + $0x1980] sm:$0xff]  ;;  %1628 = vmatpush.msrb.mxu3 %v1319_v22  ;;  %v556_v22 = vld [vmem:[%s3255_s23 + $0x7e8] sm:$0xff] }
 0x111   : > { %v1187_v24 = vld [vmem:[%s3255_s23 + $0x1ba0] sm:$0xff]  ;;  %1570 = vmatpush.msrb.mxu0 %v1119_v23  ;;  %v356_v23 = vld [vmem:[%s3255_s23 + $0x1a8] sm:$0xff] }
 0x112   : > { %v1247_v25 = vld [vmem:[%s3255_s23 + $0x1d80] sm:$0xff]  ;;  %1589 = vmatpush.msrb.mxu1 %v1187_v24  ;;  %v424_v24 = vld [vmem:[%s3255_s23 + $0x3c8] sm:$0xff] }
 0x113   : > { %v1315_v26 = vld [vmem:[%s3255_s23 + $0x1fa0] sm:$0xff]  ;;  %1610 = vmatpush.msrb.mxu2 %v1247_v25  ;;  %v484_v25 = vld [vmem:[%s3255_s23 + $0x5a8] sm:$0xff] }
 0x114   : > { %v1115_v27 = vld [vmem:[%s3255_s23 + $0x1960] sm:$0xff]  ;;  %1629 = vmatpush.msrb.mxu3 %v1315_v26  ;;  %v552_v26 = vld [vmem:[%s3255_s23 + $0x7c8] sm:$0xff] }
 0x115   : > { %v1183_v28 = vld [vmem:[%s3255_s23 + $0x1b80] sm:$0xff]  ;;  %1571 = vmatpush.msrb.mxu0 %v1115_v27  ;;  %v352_v27 = vld [vmem:[%s3255_s23 + $0x188] sm:$0xff] }
 0x116   : > { %v1243_v29 = vld [vmem:[%s3255_s23 + $0x1d60] sm:$0xff]  ;;  %1590 = vmatpush.msrb.mxu1 %v1183_v28  ;;  %v420_v28 = vld [vmem:[%s3255_s23 + $0x3a8] sm:$0xff] }
 0x117   : > { %v1311_v30 = vld [vmem:[%s3255_s23 + $0x1f80] sm:$0xff]  ;;  %1611 = vmatpush.msrb.mxu2 %v1243_v29  ;;  %v480_v29 = vld [vmem:[%s3255_s23 + $0x588] sm:$0xff] }
 0x118   : > { %v1111_v31 = vld [vmem:[%s3255_s23 + $0x1940] sm:$0xff]  ;;  %1630 = vmatpush.msrb.mxu3 %v1311_v30  ;;  %v548_v30 = vld [vmem:[%s3255_s23 + $0x7a8] sm:$0xff] }
 0x119   : > { %v1179_v32 = vld [vmem:[%s3255_s23 + $0x1b60] sm:$0xff]  ;;  %1572 = vmatpush.msrb.mxu0 %v1111_v31  ;;  %v348_v31 = vld [vmem:[%s3255_s23 + $0x168] sm:$0xff] }
 0x11a   : > { %v1239_v33 = vld [vmem:[%s3255_s23 + $0x1d40] sm:$0xff]  ;;  %1591 = vmatpush.msrb.mxu1 %v1179_v32  ;;  %v416_v32 = vld [vmem:[%s3255_s23 + $0x388] sm:$0xff] }
 0x11b   : > { %v1307_v34 = vld [vmem:[%s3255_s23 + $0x1f60] sm:$0xff]  ;;  %1612 = vmatpush.msrb.mxu2 %v1239_v33  ;;  %v476_v33 = vld [vmem:[%s3255_s23 + $0x568] sm:$0xff] }
 0x11c   : > { %v1107_v35 = vld [vmem:[%s3255_s23 + $0x1920] sm:$0xff]  ;;  %1631 = vmatpush.msrb.mxu3 %v1307_v34  ;;  %v544_v34 = vld [vmem:[%s3255_s23 + $0x788] sm:$0xff] }
 0x11d   : > { %v1175_v36 = vld [vmem:[%s3255_s23 + $0x1b40] sm:$0xff]  ;;  %1573 = vmatpush.msrb.mxu0 %v1107_v35  ;;  %v344_v35 = vld [vmem:[%s3255_s23 + $0x148] sm:$0xff] }
 0x11e   : > { %v1235_v37 = vld [vmem:[%s3255_s23 + $0x1d20] sm:$0xff]  ;;  %1592 = vmatpush.msrb.mxu1 %v1175_v36  ;;  %v412_v36 = vld [vmem:[%s3255_s23 + $0x368] sm:$0xff] }
 0x11f   : > { %v1303_v38 = vld [vmem:[%s3255_s23 + $0x1f40] sm:$0xff]  ;;  %1613 = vmatpush.msrb.mxu2 %v1235_v37  ;;  %v472_v37 = vld [vmem:[%s3255_s23 + $0x548] sm:$0xff] }
 0x120   : > { %v1103_v39 = vld [vmem:[%s3255_s23 + $0x1900] sm:$0xff]  ;;  %1632 = vmatpush.msrb.mxu3 %v1303_v38  ;;  %v540_v38 = vld [vmem:[%s3255_s23 + $0x768] sm:$0xff] }
 0x121   : > { %v1171_v40 = vld [vmem:[%s3255_s23 + $0x1b20] sm:$0xff]  ;;  %1574 = vmatpush.msrb.mxu0 %v1103_v39  ;;  %v340_v39 = vld [vmem:[%s3255_s23 + $0x128] sm:$0xff] }
 0x122   : > { %v1231_v41 = vld [vmem:[%s3255_s23 + $0x1d00] sm:$0xff]  ;;  %1593 = vmatpush.msrb.mxu1 %v1171_v40  ;;  %v408_v40 = vld [vmem:[%s3255_s23 + $0x348] sm:$0xff] }
 0x123   : > { %v1299_v42 = vld [vmem:[%s3255_s23 + $0x1f20] sm:$0xff]  ;;  %1614 = vmatpush.msrb.mxu2 %v1231_v41  ;;  %v468_v41 = vld [vmem:[%s3255_s23 + $0x528] sm:$0xff] }
 0x124   : > { %v1099_v43 = vld [vmem:[%s3255_s23 + $0x18e0] sm:$0xff]  ;;  %1633 = vmatpush.msrb.mxu3 %v1299_v42  ;;  %v536_v42 = vld [vmem:[%s3255_s23 + $0x748] sm:$0xff] }
 0x125   : > { %v1167_v44 = vld [vmem:[%s3255_s23 + $0x1b00] sm:$0xff]  ;;  %1575 = vmatpush.msrb.mxu0 %v1099_v43  ;;  %v336_v43 = vld [vmem:[%s3255_s23 + $0x108] sm:$0xff] }
 0x126   : > { %v1227_v45 = vld [vmem:[%s3255_s23 + $0x1ce0] sm:$0xff]  ;;  %1594 = vmatpush.msrb.mxu1 %v1167_v44  ;;  %v404_v44 = vld [vmem:[%s3255_s23 + $0x328] sm:$0xff] }
 0x127   : > { %v1295_v46 = vld [vmem:[%s3255_s23 + $0x1f00] sm:$0xff]  ;;  %1615 = vmatpush.msrb.mxu2 %v1227_v45  ;;  %v464_v45 = vld [vmem:[%s3255_s23 + $0x508] sm:$0xff] }
 0x128   : > { %v1095_v47 = vld [vmem:[%s3255_s23 + $0x18c0] sm:$0xff]  ;;  %1634 = vmatpush.msrb.mxu3 %v1295_v46  ;;  %v532_v46 = vld [vmem:[%s3255_s23 + $0x728] sm:$0xff] }
 0x129   : > { %v1163_v48 = vld [vmem:[%s3255_s23 + $0x1ae0] sm:$0xff]  ;;  %1576 = vmatpush.msrb.mxu0 %v1095_v47  ;;  %v332_v47 = vld [vmem:[%s3255_s23 + $0xe8] sm:$0xff] }
 0x12a   : > { %v1223_v49 = vld [vmem:[%s3255_s23 + $0x1cc0] sm:$0xff]  ;;  %1595 = vmatpush.msrb.mxu1 %v1163_v48  ;;  %v400_v48 = vld [vmem:[%s3255_s23 + $0x308] sm:$0xff] }
 0x12b   : > { %v1291_v50 = vld [vmem:[%s3255_s23 + $0x1ee0] sm:$0xff]  ;;  %1616 = vmatpush.msrb.mxu2 %v1223_v49  ;;  %v460_v49 = vld [vmem:[%s3255_s23 + $0x4e8] sm:$0xff] }
 0x12c   : > { %v1091_v51 = vld [vmem:[%s3255_s23 + $0x18a0] sm:$0xff]  ;;  %1635 = vmatpush.msrb.mxu3 %v1291_v50  ;;  %v528_v50 = vld [vmem:[%s3255_s23 + $0x708] sm:$0xff] }
 0x12d   : > { %v1159_v52 = vld [vmem:[%s3255_s23 + $0x1ac0] sm:$0xff]  ;;  %1577 = vmatpush.msrb.mxu0 %v1091_v51  ;;  %v328_v51 = vld [vmem:[%s3255_s23 + $0xc8] sm:$0xff] }
 0x12e   : > { %v1219_v53 = vld [vmem:[%s3255_s23 + $0x1ca0] sm:$0xff]  ;;  %1596 = vmatpush.msrb.mxu1 %v1159_v52  ;;  %v396_v52 = vld [vmem:[%s3255_s23 + $0x2e8] sm:$0xff] }
 0x12f   : > { %v1287_v54 = vld [vmem:[%s3255_s23 + $0x1ec0] sm:$0xff]  ;;  %1617 = vmatpush.msrb.mxu2 %v1219_v53  ;;  %v456_v53 = vld [vmem:[%s3255_s23 + $0x4c8] sm:$0xff] }
 0x130   : > { %v1087_v55 = vld [vmem:[%s3255_s23 + $0x1880] sm:$0xff]  ;;  %1636 = vmatpush.msrb.mxu3 %v1287_v54  ;;  %v524_v54 = vld [vmem:[%s3255_s23 + $0x6e8] sm:$0xff] }
 0x131   : > { %v1155_v56 = vld [vmem:[%s3255_s23 + $0x1aa0] sm:$0xff]  ;;  %1578 = vmatpush.msrb.mxu0 %v1087_v55  ;;  %v324_v55 = vld [vmem:[%s3255_s23 + $0xa8] sm:$0xff] }
 0x132   : > { %v1215_v57 = vld [vmem:[%s3255_s23 + $0x1c80] sm:$0xff]  ;;  %1597 = vmatpush.msrb.mxu1 %v1155_v56  ;;  %v392_v56 = vld [vmem:[%s3255_s23 + $0x2c8] sm:$0xff] }
 0x133   : > { %v1283_v58 = vld [vmem:[%s3255_s23 + $0x1ea0] sm:$0xff]  ;;  %1618 = vmatpush.msrb.mxu2 %v1215_v57  ;;  %v452_v57 = vld [vmem:[%s3255_s23 + $0x4a8] sm:$0xff] }
 0x134   : > { %v1083_v59 = vld [vmem:[%s3255_s23 + $0x1860] sm:$0xff]  ;;  %1637 = vmatpush.msrb.mxu3 %v1283_v58  ;;  %v520_v58 = vld [vmem:[%s3255_s23 + $0x6c8] sm:$0xff] }
 0x135   : > { %v1151_v60 = vld [vmem:[%s3255_s23 + $0x1a80] sm:$0xff]  ;;  %1579 = vmatpush.msrb.mxu0 %v1083_v59  ;;  %v320_v59 = vld [vmem:[%s3255_s23 + $0x88] sm:$0xff] }
 0x136   : > { %v1211_v61 = vld [vmem:[%s3255_s23 + $0x1c60] sm:$0xff]  ;;  %1598 = vmatpush.msrb.mxu1 %v1151_v60  ;;  %v388_v60 = vld [vmem:[%s3255_s23 + $0x2a8] sm:$0xff] }
 0x137   : > { %v1279_v62 = vld [vmem:[%s3255_s23 + $0x1e80] sm:$0xff]  ;;  %1619 = vmatpush.msrb.mxu2 %v1211_v61  ;;  %v448_v61 = vld [vmem:[%s3255_s23 + $0x488] sm:$0xff] }
 0x138   : > { %v1079_v63 = vld [vmem:[%s3255_s23 + $0x1840] sm:$0xff]  ;;  %1638 = vmatpush.msrb.mxu3 %v1279_v62  ;;  %v516_v62 = vld [vmem:[%s3255_s23 + $0x6a8] sm:$0xff] }
 0x139   : > { %v1147_v0 = vld [vmem:[%s3255_s23 + $0x1a60] sm:$0xff]  ;;  %1580 = vmatpush.msrb.mxu0 %v1079_v63  ;;  %v316_v63 = vld [vmem:[%s3255_s23 + $0x68] sm:$0xff] }
 0x13a   : > { %v1207_v1 = vld [vmem:[%s3255_s23 + $0x1c40] sm:$0xff]  ;;  %1599 = vmatpush.msrb.mxu1 %v1147_v0  ;;  %v384_v0 = vld [vmem:[%s3255_s23 + $0x288] sm:$0xff] }
 0x13b   : > { %v1275_v2 = vld [vmem:[%s3255_s23 + $0x1e60] sm:$0xff]  ;;  %1620 = vmatpush.msrb.mxu2 %v1207_v1  ;;  %v444_v1 = vld [vmem:[%s3255_s23 + $0x468] sm:$0xff] }
 0x13c   : > { %v1075_v3 = vld [vmem:[%s3255_s23 + $0x1820] sm:$0xff]  ;;  %1639 = vmatpush.msrb.mxu3 %v1275_v2  ;;  %v512_v2 = vld [vmem:[%s3255_s23 + $0x688] sm:$0xff] }
 0x13d   : > { %v1143_v4 = vld [vmem:[%s3255_s23 + $0x1a40] sm:$0xff]  ;;  %1581 = vmatpush.msrb.mxu0 %v1075_v3  ;;  %v312_v3 = vld [vmem:[%s3255_s23 + $0x48] sm:$0xff] }
 0x13e   : > { %v1203_v5 = vld [vmem:[%s3255_s23 + $0x1c20] sm:$0xff]  ;;  %1600 = vmatpush.msrb.mxu1 %v1143_v4  ;;  %v380_v4 = vld [vmem:[%s3255_s23 + $0x268] sm:$0xff] }
 0x13f   : > { %v1271_v6 = vld [vmem:[%s3255_s23 + $0x1e40] sm:$0xff]  ;;  %1621 = vmatpush.msrb.mxu2 %v1203_v5  ;;  %v440_v5 = vld [vmem:[%s3255_s23 + $0x448] sm:$0xff] }
 0x140   : > { %v1071_v7 = vld [vmem:[%s3255_s23 + $0x1800] sm:$0xff]  ;;  %1640 = vmatpush.msrb.mxu3 %v1271_v6  ;;  %v508_v6 = vld [vmem:[%s3255_s23 + $0x668] sm:$0xff] }
 0x141   : > { %v1139_v8 = vld [vmem:[%s3255_s23 + $0x1a20] sm:$0xff]  ;;  %1582 = vmatpush.msrb.mxu0 %v1071_v7  ;;  %v308_v7 = vld [vmem:[%s3255_s23 + $0x28] sm:$0xff] }
 0x142   : > { %v1199_v9 = vld [vmem:[%s3255_s23 + $0x1c00] sm:$0xff]  ;;  %1601 = vmatpush.msrb.mxu1 %v1139_v8  ;;  %v376_v8 = vld [vmem:[%s3255_s23 + $0x248] sm:$0xff] }
 0x143   : > { %v1267_v10 = vld [vmem:[%s3255_s23 + $0x1e20] sm:$0xff]  ;;  %1622 = vmatpush.msrb.mxu2 %v1199_v9  ;;  %1647 = vmatpush.msra.mxu0 %v364_v13  ;;  %v436_v9 = vld [vmem:[%s3255_s23 + $0x428] sm:$0xff] }
 0x144   : > { %v299_v11 = vld [vmem:[%s3274_s4 + $0x60] sm:$0xff]  ;;  %1641 = vmatpush.msrb.mxu3 %v1267_v10  ;;  %1623 = vmatmul.f32.vlgmr.msrb.gmra.mxu2 %v301_v12  ;;  %v504_v10 = vld [vmem:[%s3255_s23 + $0x648] sm:$0xff] }
 0x145   : > { %v1135_v15 = vld [vmem:[%s3255_s23 + $0x1a00] sm:$0xff]  ;;  %1583 = vmatmul.f32.vlgmr.msrb.gmra.mxu0 %v299_v11  ;;  %1687 = vmatpush.msra.mxu2 %v492_v14  ;;  %v304_v11 = vld [vmem:[%s3255_s23 + $0x8] sm:$0xff] }
 0x146   : > { %v1263_v16 = vld [vmem:[%s3255_s23 + $0x1e00] sm:$0xff]  ;;  %1602 = vmatpush.msrb.mxu1 %v1135_v15  ;;  %1648 = vmatpush.msra.mxu0 %v360_v19  ;;  %v372_v12 = vld [vmem:[%s3255_s23 + $0x228] sm:$0xff] }
 0x147   : > { %1642 = vmatpush.msrb.mxu3 %v1263_v16  ;;  %1603 = vmatmul.f32.vlgmr.msrb.gmra.mxu1 %v300_v17  ;;  %v432_v13 = vld [vmem:[%s3255_s23 + $0x408] sm:$0xff] }
 0x148   : > { %1643 = vmatmul.f32.vlgmr.msrb.gmra.mxu3 %v302_v18  ;;  %1667 = vmatpush.msra.mxu1 %v428_v20  ;;  %v500_v14 = vld [vmem:[%s3255_s23 + $0x628] sm:$0xff] }
 0x149   : > { %1688 = vmatpush.msra.mxu2 %v488_v21  ;;  %1707 = vmatpush.msra.mxu3 %v556_v22  ;;  %v620_v15 = vld [vmem:[%s3255_s23 + $0x9e8] sm:$0xff] }
 0x14a   : > { %1649 = vmatpush.msra.mxu0 %v356_v23  ;;  %1668 = vmatpush.msra.mxu1 %v424_v24  ;;  %v748_v16 = vld [vmem:[%s3255_s23 + $0xde8] sm:$0xff] }
 0x14b   : > { %1689 = vmatpush.msra.mxu2 %v484_v25  ;;  %1708 = vmatpush.msra.mxu3 %v552_v26  ;;  %v368_v17 = vld [vmem:[%s3255_s23 + $0x208] sm:$0xff] }
 0x14c   : > { %1650 = vmatpush.msra.mxu0 %v352_v27  ;;  %1669 = vmatpush.msra.mxu1 %v420_v28  ;;  %v496_v18 = vld [vmem:[%s3255_s23 + $0x608] sm:$0xff] }
 0x14d   : > { %1690 = vmatpush.msra.mxu2 %v480_v29  ;;  %1709 = vmatpush.msra.mxu3 %v548_v30  ;;  %v616_v19 = vld [vmem:[%s3255_s23 + $0x9c8] sm:$0xff] }
 0x14e   : > { %1651 = vmatpush.msra.mxu0 %v348_v31  ;;  %1670 = vmatpush.msra.mxu1 %v416_v32  ;;  %v684_v20 = vld [vmem:[%s3255_s23 + $0xbe8] sm:$0xff] }
 0x14f   : > { %1691 = vmatpush.msra.mxu2 %v476_v33  ;;  %1710 = vmatpush.msra.mxu3 %v544_v34  ;;  %v744_v21 = vld [vmem:[%s3255_s23 + $0xdc8] sm:$0xff] }
 0x150   : > { %1652 = vmatpush.msra.mxu0 %v344_v35  ;;  %1671 = vmatpush.msra.mxu1 %v412_v36  ;;  %v812_v22 = vld [vmem:[%s3255_s23 + $0xfe8] sm:$0xff] }
 0x151   : > { %1692 = vmatpush.msra.mxu2 %v472_v37  ;;  %1711 = vmatpush.msra.mxu3 %v540_v38  ;;  %v612_v23 = vld [vmem:[%s3255_s23 + $0x9a8] sm:$0xff] }
 0x152   : > { %1653 = vmatpush.msra.mxu0 %v340_v39  ;;  %1672 = vmatpush.msra.mxu1 %v408_v40  ;;  %v680_v24 = vld [vmem:[%s3255_s23 + $0xbc8] sm:$0xff] }
 0x153   : > { %1693 = vmatpush.msra.mxu2 %v468_v41  ;;  %1712 = vmatpush.msra.mxu3 %v536_v42  ;;  %v740_v25 = vld [vmem:[%s3255_s23 + $0xda8] sm:$0xff] }
 0x154   : > { %1654 = vmatpush.msra.mxu0 %v336_v43  ;;  %1673 = vmatpush.msra.mxu1 %v404_v44  ;;  %v808_v26 = vld [vmem:[%s3255_s23 + $0xfc8] sm:$0xff] }
 0x155   : > { %1694 = vmatpush.msra.mxu2 %v464_v45  ;;  %1713 = vmatpush.msra.mxu3 %v532_v46  ;;  %v608_v27 = vld [vmem:[%s3255_s23 + $0x988] sm:$0xff] }
 0x156   : > { %1655 = vmatpush.msra.mxu0 %v332_v47  ;;  %1674 = vmatpush.msra.mxu1 %v400_v48  ;;  %v676_v28 = vld [vmem:[%s3255_s23 + $0xba8] sm:$0xff] }
 0x157   : > { %1695 = vmatpush.msra.mxu2 %v460_v49  ;;  %1714 = vmatpush.msra.mxu3 %v528_v50  ;;  %v736_v29 = vld [vmem:[%s3255_s23 + $0xd88] sm:$0xff] }
 0x158   : > { %1656 = vmatpush.msra.mxu0 %v328_v51  ;;  %1675 = vmatpush.msra.mxu1 %v396_v52  ;;  %v804_v30 = vld [vmem:[%s3255_s23 + $0xfa8] sm:$0xff] }
 0x159   : > { %1696 = vmatpush.msra.mxu2 %v456_v53  ;;  %1715 = vmatpush.msra.mxu3 %v524_v54  ;;  %v604_v31 = vld [vmem:[%s3255_s23 + $0x968] sm:$0xff] }
 0x15a   : > { %1657 = vmatpush.msra.mxu0 %v324_v55  ;;  %1676 = vmatpush.msra.mxu1 %v392_v56  ;;  %v672_v32 = vld [vmem:[%s3255_s23 + $0xb88] sm:$0xff] }
 0x15b   : > { %1697 = vmatpush.msra.mxu2 %v452_v57  ;;  %1716 = vmatpush.msra.mxu3 %v520_v58  ;;  %v732_v33 = vld [vmem:[%s3255_s23 + $0xd68] sm:$0xff] }
 0x15c   : > { %1658 = vmatpush.msra.mxu0 %v320_v59  ;;  %1677 = vmatpush.msra.mxu1 %v388_v60  ;;  %v800_v34 = vld [vmem:[%s3255_s23 + $0xf88] sm:$0xff] }
 0x15d   : > { %1698 = vmatpush.msra.mxu2 %v448_v61  ;;  %1717 = vmatpush.msra.mxu3 %v516_v62  ;;  %v600_v35 = vld [vmem:[%s3255_s23 + $0x948] sm:$0xff] }
 0x15e   : > { %1659 = vmatpush.msra.mxu0 %v316_v63  ;;  %1678 = vmatpush.msra.mxu1 %v384_v0  ;;  %v668_v36 = vld [vmem:[%s3255_s23 + $0xb68] sm:$0xff] }
 0x15f   : > { %1699 = vmatpush.msra.mxu2 %v444_v1  ;;  %1718 = vmatpush.msra.mxu3 %v512_v2  ;;  %v728_v37 = vld [vmem:[%s3255_s23 + $0xd48] sm:$0xff] }
 0x160   : > { %1660 = vmatpush.msra.mxu0 %v312_v3  ;;  %1679 = vmatpush.msra.mxu1 %v380_v4  ;;  %v796_v38 = vld [vmem:[%s3255_s23 + $0xf68] sm:$0xff] }
 0x161   : > { %1700 = vmatpush.msra.mxu2 %v440_v5  ;;  %1719 = vmatpush.msra.mxu3 %v508_v6  ;;  %v596_v39 = vld [vmem:[%s3255_s23 + $0x928] sm:$0xff] }
 0x162   : > { %1661 = vmatpush.msra.mxu0 %v308_v7  ;;  %1680 = vmatpush.msra.mxu1 %v376_v8  ;;  %v664_v40 = vld [vmem:[%s3255_s23 + $0xb48] sm:$0xff] }
 0x163   : > { %1701 = vmatpush.msra.mxu2 %v436_v9  ;;  %1720 = vmatpush.msra.mxu3 %v504_v10  ;;  %v724_v41 = vld [vmem:[%s3255_s23 + $0xd28] sm:$0xff] }
 0x164   : > { %1662 = vmatpush.msra.mxu0 %v304_v11  ;;  %1681 = vmatpush.msra.mxu1 %v372_v12  ;;  %v792_v42 = vld [vmem:[%s3255_s23 + $0xf48] sm:$0xff] }
 0x165   : > { %1702 = vmatpush.msra.mxu2 %v432_v13  ;;  %1721 = vmatpush.msra.mxu3 %v500_v14  ;;  %v592_v43 = vld [vmem:[%s3255_s23 + $0x908] sm:$0xff] }
 0x166   : > { %1727 = vmatpush.msrb.mxu0 %v620_v15  ;;  %1682 = vmatpush.msra.mxu1 %v368_v17  ;;  %v660_v44 = vld [vmem:[%s3255_s23 + $0xb28] sm:$0xff]  ;;  %v2897_v15 = vld [vmem:[%s3274_s4 + $0x10] sm:$0xff] }
 0x167   : > { %1767 = vmatpush.msrb.mxu2 %v748_v16  ;;  %1722 = vmatpush.msra.mxu3 %v496_v18  ;;  %v720_v45 = vld [vmem:[%s3255_s23 + $0xd08] sm:$0xff] }
 0x168   : > { %1728 = vmatpush.msrb.mxu0 %v616_v19  ;;  %1747 = vmatpush.msrb.mxu1 %v684_v20  ;;  %v788_v46 = vld [vmem:[%s3255_s23 + $0xf28] sm:$0xff]  ;;  %v2898_v19 = vld [vmem:[%s3274_s4] sm:$0xff] }
 0x169   : > { %1768 = vmatpush.msrb.mxu2 %v744_v21  ;;  %1787 = vmatpush.msrb.mxu3 %v812_v22  ;;  %v588_v47 = vld [vmem:[%s3255_s23 + $0x8e8] sm:$0xff]  ;;  %v2899_v21 = vld [vmem:[%s3274_s4 + $0x18] sm:$0xff] }
 0x16a   : > { %1729 = vmatpush.msrb.mxu0 %v612_v23  ;;  %1748 = vmatpush.msrb.mxu1 %v680_v24  ;;  %v656_v48 = vld [vmem:[%s3255_s23 + $0xb08] sm:$0xff] }
 0x16b   : > { %1769 = vmatpush.msrb.mxu2 %v740_v25  ;;  %1788 = vmatpush.msrb.mxu3 %v808_v26  ;;  %v716_v49 = vld [vmem:[%s3255_s23 + $0xce8] sm:$0xff] }
 0x16c   : > { %1730 = vmatpush.msrb.mxu0 %v608_v27  ;;  %1749 = vmatpush.msrb.mxu1 %v676_v28  ;;  %v784_v50 = vld [vmem:[%s3255_s23 + $0xf08] sm:$0xff] }
 0x16d   : > { %1770 = vmatpush.msrb.mxu2 %v736_v29  ;;  %1789 = vmatpush.msrb.mxu3 %v804_v30  ;;  %v584_v51 = vld [vmem:[%s3255_s23 + $0x8c8] sm:$0xff] }
 0x16e   : > { %1731 = vmatpush.msrb.mxu0 %v604_v31  ;;  %1750 = vmatpush.msrb.mxu1 %v672_v32  ;;  %v652_v52 = vld [vmem:[%s3255_s23 + $0xae8] sm:$0xff] }
 0x16f   : > { %1771 = vmatpush.msrb.mxu2 %v732_v33  ;;  %1790 = vmatpush.msrb.mxu3 %v800_v34  ;;  %v712_v53 = vld [vmem:[%s3255_s23 + $0xcc8] sm:$0xff] }
 0x170   : > { %1732 = vmatpush.msrb.mxu0 %v600_v35  ;;  %1751 = vmatpush.msrb.mxu1 %v668_v36  ;;  %v780_v54 = vld [vmem:[%s3255_s23 + $0xee8] sm:$0xff]  ;;  %v2901_v35 = vld [vmem:[%s3274_s4 + $0x30] sm:$0xff] }
 0x171   : > { %1772 = vmatpush.msrb.mxu2 %v728_v37  ;;  %1791 = vmatpush.msrb.mxu3 %v796_v38  ;;  %v580_v55 = vld [vmem:[%s3255_s23 + $0x8a8] sm:$0xff] }
 0x172   : > { %1733 = vmatpush.msrb.mxu0 %v596_v39  ;;  %1752 = vmatpush.msrb.mxu1 %v664_v40  ;;  %v648_v56 = vld [vmem:[%s3255_s23 + $0xac8] sm:$0xff]  ;;  %v2902_v39 = vld [vmem:[%s3274_s4 + $0x20] sm:$0xff] }
 0x173   : > { %1773 = vmatpush.msrb.mxu2 %v724_v41  ;;  %1792 = vmatpush.msrb.mxu3 %v792_v42  ;;  %v708_v57 = vld [vmem:[%s3255_s23 + $0xca8] sm:$0xff]  ;;  %v2903_v41 = vld [vmem:[%s3274_s4 + $0x38] sm:$0xff] }
 0x174   : > { %1734 = vmatpush.msrb.mxu0 %v592_v43  ;;  %1753 = vmatpush.msrb.mxu1 %v660_v44  ;;  %v776_v58 = vld [vmem:[%s3255_s23 + $0xec8] sm:$0xff] }
 0x175   : > { %1774 = vmatpush.msrb.mxu2 %v720_v45  ;;  %1793 = vmatpush.msrb.mxu3 %v788_v46  ;;  %v576_v59 = vld [vmem:[%s3255_s23 + $0x888] sm:$0xff] }
 0x176   : > { %1735 = vmatpush.msrb.mxu0 %v588_v47  ;;  %1754 = vmatpush.msrb.mxu1 %v656_v48  ;;  %v644_v60 = vld [vmem:[%s3255_s23 + $0xaa8] sm:$0xff] }
 0x177   : > { %1775 = vmatpush.msrb.mxu2 %v716_v49  ;;  %1794 = vmatpush.msrb.mxu3 %v784_v50  ;;  %v704_v61 = vld [vmem:[%s3255_s23 + $0xc88] sm:$0xff] }
 0x178   : > { %1736 = vmatpush.msrb.mxu0 %v584_v51  ;;  %1755 = vmatpush.msrb.mxu1 %v652_v52  ;;  %v772_v62 = vld [vmem:[%s3255_s23 + $0xea8] sm:$0xff] }
 0x179   : > { %1776 = vmatpush.msrb.mxu2 %v712_v53  ;;  %1795 = vmatpush.msrb.mxu3 %v780_v54  ;;  %v572_v63 = vld [vmem:[%s3255_s23 + $0x868] sm:$0xff] }
 0x17a   : > { %1737 = vmatpush.msrb.mxu0 %v580_v55  ;;  %1756 = vmatpush.msrb.mxu1 %v648_v56  ;;  %v640_v0 = vld [vmem:[%s3255_s23 + $0xa88] sm:$0xff] }
 0x17b   : > { %1777 = vmatpush.msrb.mxu2 %v708_v57  ;;  %1796 = vmatpush.msrb.mxu3 %v776_v58  ;;  %v700_v1 = vld [vmem:[%s3255_s23 + $0xc68] sm:$0xff] }
 0x17c   : > { %1738 = vmatpush.msrb.mxu0 %v576_v59  ;;  %1757 = vmatpush.msrb.mxu1 %v644_v60  ;;  %v768_v2 = vld [vmem:[%s3255_s23 + $0xe88] sm:$0xff]  ;;  %v1364_v59 = vpop.f32.mrf.mxu1 }
 0x17d   : > { %1778 = vmatpush.msrb.mxu2 %v704_v61  ;;  %1797 = vmatpush.msrb.mxu3 %v772_v62  ;;  %v568_v3 = vld [vmem:[%s3255_s23 + $0x848] sm:$0xff] }
 0x17e   : > { %v636_v4 = vld [vmem:[%s3255_s23 + $0xa68] sm:$0xff]  ;;  %1739 = vmatpush.msrb.mxu0 %v572_v63  ;;  %1758 = vmatpush.msrb.mxu1 %v640_v0  ;;  %v1344_v0 = vpop.f32.mrf.mxu0 }
 0x17f   : > { %v696_v5 = vld [vmem:[%s3255_s23 + $0xc48] sm:$0xff]  ;;  %1779 = vmatpush.msrb.mxu2 %v700_v1  ;;  %1798 = vmatpush.msrb.mxu3 %v768_v2 }
 0x180   : > { %v764_v6 = vld [vmem:[%s3255_s23 + $0xe68] sm:$0xff]  ;;  %1740 = vmatpush.msrb.mxu0 %v568_v3  ;;  %1759 = vmatpush.msrb.mxu1 %v636_v4  ;;  %v1365_v3 = vadd.f32 %v1364_v59, %v1344_v0 }
 0x181   : > { %v564_v7 = vld [vmem:[%s3255_s23 + $0x828] sm:$0xff]  ;;  %1780 = vmatpush.msrb.mxu2 %v696_v5  ;;  %1799 = vmatpush.msrb.mxu3 %v764_v6  ;;  %v1384_v6 = vpop.f32.mrf.mxu2 }
 0x182   : > { %v632_v8 = vld [vmem:[%s3255_s23 + $0xa48] sm:$0xff]  ;;  %1741 = vmatpush.msrb.mxu0 %v564_v7  ;;  %1703 = vmatmul.f32.vlgmr.msra.gmra.mxu2 %v2897_v15 }
 0x183   : > { %v692_v9 = vld [vmem:[%s3255_s23 + $0xc28] sm:$0xff]  ;;  %1760 = vmatpush.msrb.mxu1 %v632_v8  ;;  %1663 = vmatmul.f32.vlgmr.msra.gmra.mxu0 %v2898_v19 }
 0x184   : > { %v760_v10 = vld [vmem:[%s3255_s23 + $0xe48] sm:$0xff]  ;;  %1781 = vmatpush.msrb.mxu2 %v692_v9  ;;  %1723 = vmatmul.f32.vlgmr.msra.gmra.mxu3 %v2899_v21 }
 0x185   : > { %v560_v11 = vld [vmem:[%s3255_s23 + $0x808] sm:$0xff]  ;;  %1800 = vmatpush.msrb.mxu3 %v760_v10 }
 0x186   : > { %v628_v12 = vld [vmem:[%s3255_s23 + $0xa28] sm:$0xff]  ;;  %1742 = vmatpush.msrb.mxu0 %v560_v11 }
 0x187   : > { %v688_v13 = vld [vmem:[%s3255_s23 + $0xc08] sm:$0xff]  ;;  %1761 = vmatpush.msrb.mxu1 %v628_v12 }
 0x188   : > { %v756_v14 = vld [vmem:[%s3255_s23 + $0xe28] sm:$0xff]  ;;  %1782 = vmatpush.msrb.mxu2 %v688_v13  ;;  %v1385_v13 = vadd.f32 %v1384_v6, %v1365_v3 }
 0x189   : > { %v876_v16 = vld [vmem:[%s3255_s23 + $0x11e8] sm:$0xff]  ;;  %1801 = vmatpush.msrb.mxu3 %v756_v14 }
 0x18a   : > { %v1004_v17 = vld [vmem:[%s3255_s23 + $0x15e8] sm:$0xff]  ;;  %1807 = vmatpush.msra.mxu0 %v876_v16  ;;  %1783 = vmatmul.f32.vlgmr.msrb.gmra.mxu2 %v2901_v35  ;;  %v1404_v16 = vpop.f32.mrf.mxu3 }
 0x18b   : > { %v624_v18 = vld [vmem:[%s3255_s23 + $0xa08] sm:$0xff]  ;;  %1847 = vmatpush.msra.mxu2 %v1004_v17  ;;  %1743 = vmatmul.f32.vlgmr.msrb.gmra.mxu0 %v2902_v39 }
 0x18c   : > { %v752_v20 = vld [vmem:[%s3255_s23 + $0xe08] sm:$0xff]  ;;  %1762 = vmatpush.msrb.mxu1 %v624_v18 }
 0x18d   : > { %v872_v22 = vld [vmem:[%s3255_s23 + $0x11c8] sm:$0xff]  ;;  %1802 = vmatpush.msrb.mxu3 %v752_v20 }
 0x18e   : > { %v940_v23 = vld [vmem:[%s3255_s23 + $0x13e8] sm:$0xff]  ;;  %1808 = vmatpush.msra.mxu0 %v872_v22  ;;  %1803 = vmatmul.f32.vlgmr.msrb.gmra.mxu3 %v2903_v41 }
 0x18f   : > { %v1000_v24 = vld [vmem:[%s3255_s23 + $0x15c8] sm:$0xff] }
 0x190   : > { %v1068_v25 = vld [vmem:[%s3255_s23 + $0x17e8] sm:$0xff]  ;;  %1848 = vmatpush.msra.mxu2 %v1000_v24 }
 0x191   : > { %v2900_v26 = vld [vmem:[%s3274_s4 + $0x8] sm:$0xff]  ;;  %1867 = vmatpush.msra.mxu3 %v1068_v25 }
 0x192   : > { %1683 = vmatmul.f32.vlgmr.msra.gmra.mxu1 %v2900_v26  ;;  %v868_v27 = vld [vmem:[%s3255_s23 + $0x11a8] sm:$0xff]  ;;  %v1424_v26 = vpop.f32.mrf.mxu0 }
 0x193   : > { %v936_v28 = vld [vmem:[%s3255_s23 + $0x13c8] sm:$0xff]  ;;  %1827 = vmatpush.msra.mxu1 %v940_v23  ;;  %1809 = vmatpush.msra.mxu0 %v868_v27  ;;  %v1405_v23 = vadd.f32 %v1404_v16, %v1385_v13 }
 0x194   : > { %v996_v29 = vld [vmem:[%s3255_s23 + $0x15a8] sm:$0xff] }
 0x195   : > { %v1064_v30 = vld [vmem:[%s3255_s23 + $0x17c8] sm:$0xff]  ;;  %1828 = vmatpush.msra.mxu1 %v936_v28  ;;  %1849 = vmatpush.msra.mxu2 %v996_v29 }
 0x196   : > { %v864_v31 = vld [vmem:[%s3255_s23 + $0x1188] sm:$0xff]  ;;  %1868 = vmatpush.msra.mxu3 %v1064_v30 }
 0x197   : > { %v932_v32 = vld [vmem:[%s3255_s23 + $0x13a8] sm:$0xff]  ;;  %1810 = vmatpush.msra.mxu0 %v864_v31  ;;  %v1425_v31 = vadd.f32 %v1424_v26, %v1405_v23 }
 0x198   : > { %v992_v33 = vld [vmem:[%s3255_s23 + $0x1588] sm:$0xff]  ;;  %1829 = vmatpush.msra.mxu1 %v932_v32 }
 0x199   : > { %v1060_v34 = vld [vmem:[%s3255_s23 + $0x17a8] sm:$0xff]  ;;  %1850 = vmatpush.msra.mxu2 %v992_v33 }
 0x19a   : > { %v860_v36 = vld [vmem:[%s3255_s23 + $0x1168] sm:$0xff]  ;;  %1869 = vmatpush.msra.mxu3 %v1060_v34  ;;  %v1444_v34 = vpop.f32.mrf.mxu1 }
 0x19b   : > { %v928_v37 = vld [vmem:[%s3255_s23 + $0x1388] sm:$0xff]  ;;  %1811 = vmatpush.msra.mxu0 %v860_v36  ;;  %v1445_v41 = vadd.f32 %v1444_v34, %v1425_v31 }
 0x19c   : > { %v988_v38 = vld [vmem:[%s3255_s23 + $0x1568] sm:$0xff]  ;;  %1830 = vmatpush.msra.mxu1 %v928_v37  ;;  %v2905_v37 = vld [vmem:[%s3274_s4 + $0x40] sm:$0xff] }
 0x19d   : > { %v1056_v40 = vld [vmem:[%s3255_s23 + $0x1788] sm:$0xff]  ;;  %1851 = vmatpush.msra.mxu2 %v988_v38  ;;  %v2906_v38 = vld [vmem:[%s3274_s4 + $0x50] sm:$0xff] }
 0x19e   : > { %v856_v42 = vld [vmem:[%s3255_s23 + $0x1148] sm:$0xff]  ;;  %1870 = vmatpush.msra.mxu3 %v1056_v40 }
 0x19f   : > { %v924_v43 = vld [vmem:[%s3255_s23 + $0x1368] sm:$0xff]  ;;  %1812 = vmatpush.msra.mxu0 %v856_v42 }
 0x1a0   : > { %v984_v44 = vld [vmem:[%s3255_s23 + $0x1548] sm:$0xff]  ;;  %1831 = vmatpush.msra.mxu1 %v924_v43 }
 0x1a1   : > { %v1052_v45 = vld [vmem:[%s3255_s23 + $0x1768] sm:$0xff]  ;;  %1852 = vmatpush.msra.mxu2 %v984_v44  ;;  %v1464_v44 = vpop.f32.mrf.mxu2 }
 0x1a2   : > { %v2904_v46 = vld [vmem:[%s3274_s4 + $0x28] sm:$0xff]  ;;  %1871 = vmatpush.msra.mxu3 %v1052_v45 }
 0x1a3   : > { %1763 = vmatmul.f32.vlgmr.msrb.gmra.mxu1 %v2904_v46  ;;  %v852_v47 = vld [vmem:[%s3255_s23 + $0x1128] sm:$0xff]  ;;  %v2908_v46 = vld [vmem:[%s3274_s4 + $0x58] sm:$0xff] }
 0x1a4   : > { %v920_v48 = vld [vmem:[%s3255_s23 + $0x1348] sm:$0xff]  ;;  %1813 = vmatpush.msra.mxu0 %v852_v47 }
 0x1a5   : > { %v980_v49 = vld [vmem:[%s3255_s23 + $0x1528] sm:$0xff]  ;;  %1832 = vmatpush.msra.mxu1 %v920_v48 }
 0x1a6   : > { %v1048_v50 = vld [vmem:[%s3255_s23 + $0x1748] sm:$0xff]  ;;  %1853 = vmatpush.msra.mxu2 %v980_v49 }
 0x1a7   : > { %v848_v51 = vld [vmem:[%s3255_s23 + $0x1108] sm:$0xff]  ;;  %1872 = vmatpush.msra.mxu3 %v1048_v50 }
 0x1a8   : > { %v916_v52 = vld [vmem:[%s3255_s23 + $0x1328] sm:$0xff]  ;;  %1814 = vmatpush.msra.mxu0 %v848_v51 }
 0x1a9   : > { %v976_v53 = vld [vmem:[%s3255_s23 + $0x1508] sm:$0xff]  ;;  %1833 = vmatpush.msra.mxu1 %v916_v52  ;;  %v1544_v13 = vpop.f32.mrf.mxu2 }
 0x1aa   : > { %v1044_v54 = vld [vmem:[%s3255_s23 + $0x1728] sm:$0xff]  ;;  %1854 = vmatpush.msra.mxu2 %v976_v53  ;;  %v1465_v53 = vadd.f32 %v1464_v44, %v1445_v41 }
 0x1ab   : > { %v844_v55 = vld [vmem:[%s3255_s23 + $0x10e8] sm:$0xff]  ;;  %1873 = vmatpush.msra.mxu3 %v1044_v54 }
 0x1ac   : > { %v912_v56 = vld [vmem:[%s3255_s23 + $0x1308] sm:$0xff]  ;;  %1815 = vmatpush.msra.mxu0 %v844_v55 }
 0x1ad   : > { %v972_v57 = vld [vmem:[%s3255_s23 + $0x14e8] sm:$0xff]  ;;  %1834 = vmatpush.msra.mxu1 %v912_v56  ;;  %v1484_v56 = vpop.f32.mrf.mxu3 }
 0x1ae   : > { %v1040_v58 = vld [vmem:[%s3255_s23 + $0x1708] sm:$0xff]  ;;  %1855 = vmatpush.msra.mxu2 %v972_v57  ;;  %v1485_v0 = vadd.f32 %v1484_v56, %v1465_v53  ;;  %v365_v56 = vld [vmem:[%s3255_s23 + $0x1f0] sm:$0xff] }
 0x1af   : > { %v840_v60 = vld [vmem:[%s3255_s23 + $0x10c8] sm:$0xff]  ;;  %1874 = vmatpush.msra.mxu3 %v1040_v58 }
 0x1b0   : > { %v908_v61 = vld [vmem:[%s3255_s23 + $0x12e8] sm:$0xff]  ;;  %1816 = vmatpush.msra.mxu0 %v840_v60 }
 0x1b1   : > { %v968_v62 = vld [vmem:[%s3255_s23 + $0x14c8] sm:$0xff]  ;;  %1835 = vmatpush.msra.mxu1 %v908_v61  ;;  %v1504_v61 = vpop.f32.mrf.mxu0 }
 0x1b2   : > { %v1036_v63 = vld [vmem:[%s3255_s23 + $0x16e8] sm:$0xff]  ;;  %1856 = vmatpush.msra.mxu2 %v968_v62 }
 0x1b3   : > { %v836_v1 = vld [vmem:[%s3255_s23 + $0x10a8] sm:$0xff]  ;;  %1875 = vmatpush.msra.mxu3 %v1036_v63 }
 0x1b4   : > { %v904_v2 = vld [vmem:[%s3255_s23 + $0x12c8] sm:$0xff]  ;;  %1817 = vmatpush.msra.mxu0 %v836_v1 }
 0x1b5   : > { %v964_v4 = vld [vmem:[%s3255_s23 + $0x14a8] sm:$0xff]  ;;  %1836 = vmatpush.msra.mxu1 %v904_v2 }
 0x1b6   : > { %v1032_v5 = vld [vmem:[%s3255_s23 + $0x16c8] sm:$0xff]  ;;  %1857 = vmatpush.msra.mxu2 %v964_v4 }
 0x1b7   : > { %v832_v7 = vld [vmem:[%s3255_s23 + $0x1088] sm:$0xff]  ;;  %1876 = vmatpush.msra.mxu3 %v1032_v5  ;;  %v1505_v5 = vadd.f32 %v1504_v61, %v1485_v0  ;;  %v2910_v0 = vld [vmem:[%s3274_s4 + $0x70] sm:$0xff] }
 0x1b8   : > { %v900_v8 = vld [vmem:[%s3255_s23 + $0x12a8] sm:$0xff]  ;;  %1818 = vmatpush.msra.mxu0 %v832_v7 }
 0x1b9   : > { %v960_v9 = vld [vmem:[%s3255_s23 + $0x1488] sm:$0xff]  ;;  %1837 = vmatpush.msra.mxu1 %v900_v8  ;;  %v1524_v8 = vpop.f32.mrf.mxu1 }
 0x1ba   : > { %v1028_v10 = vld [vmem:[%s3255_s23 + $0x16a8] sm:$0xff]  ;;  %1858 = vmatpush.msra.mxu2 %v960_v9  ;;  %v1525_v16 = vadd.f32 %v1524_v8, %v1505_v5  ;;  %v557_v5 = vld [vmem:[%s3255_s23 + $0x7f0] sm:$0xff] }
 0x1bb   : > { %v828_v11 = vld [vmem:[%s3255_s23 + $0x1068] sm:$0xff]  ;;  %1877 = vmatpush.msra.mxu3 %v1028_v10  ;;  %v357_v8 = vld [vmem:[%s3255_s23 + $0x1b0] sm:$0xff] }
 0x1bc   : > { %v896_v12 = vld [vmem:[%s3255_s23 + $0x1288] sm:$0xff]  ;;  %1819 = vmatpush.msra.mxu0 %v828_v11 }
 0x1bd   : > { %v956_v14 = vld [vmem:[%s3255_s23 + $0x1468] sm:$0xff]  ;;  %1838 = vmatpush.msra.mxu1 %v896_v12 }
 0x1be   : > { %v1024_v15 = vld [vmem:[%s3255_s23 + $0x1688] sm:$0xff]  ;;  %1859 = vmatpush.msra.mxu2 %v956_v14 }
 0x1bf   : > { %v824_v17 = vld [vmem:[%s3255_s23 + $0x1048] sm:$0xff]  ;;  %1878 = vmatpush.msra.mxu3 %v1024_v15 }
 0x1c0   : > { %v892_v18 = vld [vmem:[%s3255_s23 + $0x1268] sm:$0xff]  ;;  %1820 = vmatpush.msra.mxu0 %v824_v17 }
 0x1c1   : > { %v952_v19 = vld [vmem:[%s3255_s23 + $0x1448] sm:$0xff]  ;;  %1839 = vmatpush.msra.mxu1 %v892_v18 }
 0x1c2   : > { %v1020_v20 = vld [vmem:[%s3255_s23 + $0x1668] sm:$0xff]  ;;  %1860 = vmatpush.msra.mxu2 %v952_v19 }
 0x1c3   : > { %v820_v21 = vld [vmem:[%s3255_s23 + $0x1028] sm:$0xff]  ;;  %1879 = vmatpush.msra.mxu3 %v1020_v20 }
 0x1c4   : > { %v888_v22 = vld [vmem:[%s3255_s23 + $0x1248] sm:$0xff]  ;;  %1821 = vmatpush.msra.mxu0 %v820_v21  ;;  %v1545_v21 = vadd.f32 %v1544_v13, %v1525_v16  ;;  %v1604_v44 = vpop.f32.mrf.mxu1  ;;  %v421_v13 = vld [vmem:[%s3255_s23 + $0x3b0] sm:$0xff] }
 0x1c5   : > { %v948_v24 = vld [vmem:[%s3255_s23 + $0x1428] sm:$0xff]  ;;  %1840 = vmatpush.msra.mxu1 %v888_v22  ;;  %v349_v16 = vld [vmem:[%s3255_s23 + $0x170] sm:$0xff] }
 0x1c6   : > { %v1016_v25 = vld [vmem:[%s3255_s23 + $0x1648] sm:$0xff]  ;;  %1861 = vmatpush.msra.mxu2 %v948_v24  ;;  %v1564_v24 = vpop.f32.mrf.mxu3 }
 0x1c7   : > { %v816_v27 = vld [vmem:[%s3255_s23 + $0x1008] sm:$0xff]  ;;  %1880 = vmatpush.msra.mxu3 %v1016_v25  ;;  %v1565_v31 = vadd.f32 %v1564_v24, %v1545_v21  ;;  %v413_v21 = vld [vmem:[%s3255_s23 + $0x370] sm:$0xff] }
 0x1c8   : > { %v884_v28 = vld [vmem:[%s3255_s23 + $0x1228] sm:$0xff]  ;;  %1822 = vmatpush.msra.mxu0 %v816_v27  ;;  %v341_v24 = vld [vmem:[%s3255_s23 + $0x130] sm:$0xff] }
 0x1c9   : > { %v944_v29 = vld [vmem:[%s3255_s23 + $0x1408] sm:$0xff]  ;;  %1841 = vmatpush.msra.mxu1 %v884_v28  ;;  %1823 = vmatmul.f32.vlgmr.msra.gmra.mxu0 %v2905_v37 }
 0x1ca   : > { %v1012_v30 = vld [vmem:[%s3255_s23 + $0x1628] sm:$0xff]  ;;  %1862 = vmatpush.msra.mxu2 %v944_v29 }
 0x1cb   : > { %v1132_v32 = vld [vmem:[%s3255_s23 + $0x19e8] sm:$0xff]  ;;  %1881 = vmatpush.msra.mxu3 %v1012_v30  ;;  %1863 = vmatmul.f32.vlgmr.msra.gmra.mxu2 %v2906_v38 }
 0x1cc   : > { %v1260_v33 = vld [vmem:[%s3255_s23 + $0x1de8] sm:$0xff]  ;;  %1887 = vmatpush.msrb.mxu0 %v1132_v32 }
 0x1cd   : > { %v880_v35 = vld [vmem:[%s3255_s23 + $0x1208] sm:$0xff]  ;;  %1927 = vmatpush.msrb.mxu2 %v1260_v33 }
 0x1ce   : > { %v1008_v36 = vld [vmem:[%s3255_s23 + $0x1608] sm:$0xff]  ;;  %1842 = vmatpush.msra.mxu1 %v880_v35 }
 0x1cf   : > { %v1128_v39 = vld [vmem:[%s3255_s23 + $0x19c8] sm:$0xff]  ;;  %1882 = vmatpush.msra.mxu3 %v1008_v36  ;;  %v1584_v36 = vpop.f32.mrf.mxu0 }
 0x1d0   : > { %v1196_v40 = vld [vmem:[%s3255_s23 + $0x1be8] sm:$0xff]  ;;  %1883 = vmatmul.f32.vlgmr.msra.gmra.mxu3 %v2908_v46  ;;  %1888 = vmatpush.msrb.mxu0 %v1128_v39  ;;  %v1585_v39 = vadd.f32 %v1584_v36, %v1565_v31  ;;  %v533_v31 = vld [vmem:[%s3255_s23 + $0x730] sm:$0xff] }
 0x1d1   : > { %v1256_v42 = vld [vmem:[%s3255_s23 + $0x1dc8] sm:$0xff]  ;;  %1907 = vmatpush.msrb.mxu1 %v1196_v40  ;;  %v329_v36 = vld [vmem:[%s3255_s23 + $0xd0] sm:$0xff] }
 0x1d2   : > { %v1324_v43 = vld [vmem:[%s3255_s23 + $0x1fe8] sm:$0xff]  ;;  %1928 = vmatpush.msrb.mxu2 %v1256_v42 }
 0x1d3   : > { %v2907_v45 = vld [vmem:[%s3274_s4 + $0x48] sm:$0xff]  ;;  %1947 = vmatpush.msrb.mxu3 %v1324_v43 }
 0x1d4   : > { %1843 = vmatmul.f32.vlgmr.msra.gmra.mxu1 %v2907_v45  ;;  %v1124_v47 = vld [vmem:[%s3255_s23 + $0x19a8] sm:$0xff] }
 0x1d5   : > { %v1192_v48 = vld [vmem:[%s3255_s23 + $0x1bc8] sm:$0xff]  ;;  %1889 = vmatpush.msrb.mxu0 %v1124_v47 }
 0x1d6   : > { %v1252_v49 = vld [vmem:[%s3255_s23 + $0x1da8] sm:$0xff]  ;;  %1908 = vmatpush.msrb.mxu1 %v1192_v48 }
 0x1d7   : > { %v1320_v50 = vld [vmem:[%s3255_s23 + $0x1fc8] sm:$0xff]  ;;  %1929 = vmatpush.msrb.mxu2 %v1252_v49  ;;  %v1605_v49 = vadd.f32 %v1604_v44, %v1585_v39  ;;  %v525_v39 = vld [vmem:[%s3255_s23 + $0x6f0] sm:$0xff] }
 0x1d8   : > { %v1120_v51 = vld [vmem:[%s3255_s23 + $0x1988] sm:$0xff]  ;;  %1948 = vmatpush.msrb.mxu3 %v1320_v50  ;;  %v321_v44 = vld [vmem:[%s3255_s23 + $0x90] sm:$0xff] }
 0x1d9   : > { %v1188_v52 = vld [vmem:[%s3255_s23 + $0x1ba8] sm:$0xff]  ;;  %1890 = vmatpush.msrb.mxu0 %v1120_v51 }
 0x1da   : > { %v1248_v54 = vld [vmem:[%s3255_s23 + $0x1d88] sm:$0xff]  ;;  %1909 = vmatpush.msrb.mxu1 %v1188_v52  ;;  %v1624_v52 = vpop.f32.mrf.mxu2 }
 0x1db   : > { %v1316_v55 = vld [vmem:[%s3255_s23 + $0x1fa8] sm:$0xff]  ;;  %1930 = vmatpush.msrb.mxu2 %v1248_v54 }
 0x1dc   : > { %v1116_v57 = vld [vmem:[%s3255_s23 + $0x1968] sm:$0xff]  ;;  %1949 = vmatpush.msrb.mxu3 %v1316_v55  ;;  %v1625_v55 = vadd.f32 %v1624_v52, %v1605_v49  ;;  %v385_v49 = vld [vmem:[%s3255_s23 + $0x290] sm:$0xff] }
 0x1dd   : > { %v1184_v58 = vld [vmem:[%s3255_s23 + $0x1b88] sm:$0xff]  ;;  %1891 = vmatpush.msrb.mxu0 %v1116_v57  ;;  %v493_v57 = vld [vmem:[%s3255_s23 + $0x5f0] sm:$0xff] }
 0x1de   : > { %v1244_v59 = vld [vmem:[%s3255_s23 + $0x1d68] sm:$0xff]  ;;  %1910 = vmatpush.msrb.mxu1 %v1184_v58  ;;  %v283_v58 = vld [vmem:[#allocation2 + $0x10] sm:$0xff] }
 0x1df   : > { %v1312_v60 = vld [vmem:[%s3255_s23 + $0x1f88] sm:$0xff]  ;;  %1931 = vmatpush.msrb.mxu2 %v1244_v59  ;;  %v1644_v59 = vpop.f32.mrf.mxu3  ;;  %v313_v52 = vld [vmem:[%s3255_s23 + $0x50] sm:$0xff] }
 0x1e0   : > { %v1112_v62 = vld [vmem:[%s3255_s23 + $0x1948] sm:$0xff]  ;;  %1950 = vmatpush.msrb.mxu3 %v1312_v60 }
 0x1e1   : > { %v1180_v63 = vld [vmem:[%s3255_s23 + $0x1b68] sm:$0xff]  ;;  %1892 = vmatpush.msrb.mxu0 %v1112_v62  ;;  %v1645_v62 = vadd.f32 %v1644_v59, %v1625_v55  ;;  %v509_v55 = vld [vmem:[%s3255_s23 + $0x670] sm:$0xff] }
 0x1e2   : > { %v1240_v1 = vld [vmem:[%s3255_s23 + $0x1d48] sm:$0xff]  ;;  %1911 = vmatpush.msrb.mxu1 %v1180_v63  ;;  %v2909_v63 = vld [vmem:[%s3274_s4 + $0x60] sm:$0xff]  ;;  %v505_v59 = vld [vmem:[%s3255_s23 + $0x650] sm:$0xff] }
 0x1e3   : > { %v1308_v2 = vld [vmem:[%s3255_s23 + $0x1f68] sm:$0xff]  ;;  %1932 = vmatpush.msrb.mxu2 %v1240_v1  ;;  %v361_v1 = vld [vmem:[%s3255_s23 + $0x1d0] sm:$0xff] }
 0x1e4   : > { %v1108_v3 = vld [vmem:[%s3255_s23 + $0x1928] sm:$0xff]  ;;  %1951 = vmatpush.msrb.mxu3 %v1308_v2  ;;  %v429_v2 = vld [vmem:[%s3255_s23 + $0x3f0] sm:$0xff] }
 0x1e5   : > { %v1176_v4 = vld [vmem:[%s3255_s23 + $0x1b48] sm:$0xff]  ;;  %1893 = vmatpush.msrb.mxu0 %v1108_v3  ;;  %v2607_v3 = vadd.f32 %v1645_v62, %v283_v58  ;;  %v437_v58 = vld [vmem:[%s3255_s23 + $0x430] sm:$0xff] }
 0x1e6   : > { %v1236_v6 = vld [vmem:[%s3255_s23 + $0x1d28] sm:$0xff]  ;;  %1912 = vmatpush.msrb.mxu1 %v1176_v4  ;;  %v489_v4 = vld [vmem:[%s3255_s23 + $0x5d0] sm:$0xff] }
 0x1e7   : > { %v1304_v7 = vld [vmem:[%s3255_s23 + $0x1f48] sm:$0xff]  ;;  %1933 = vmatpush.msrb.mxu2 %v1236_v6  ;;  %2611 = vst [vmem:[#allocation2 + $0x10] sm:$0xff] %v2607_v3  ;;  %v433_v62 = vld [vmem:[%s3255_s23 + $0x410] sm:$0xff] }
 0x1e8   : > { %v1104_v9 = vld [vmem:[%s3255_s23 + $0x1908] sm:$0xff]  ;;  %1952 = vmatpush.msrb.mxu3 %v1304_v7  ;;  %v2912_v7 = vld [vmem:[%s3274_s4 + $0x78] sm:$0xff]  ;;  %v497_v3 = vld [vmem:[%s3255_s23 + $0x610] sm:$0xff] }
 0x1e9   : > { %v1172_v10 = vld [vmem:[%s3255_s23 + $0x1b28] sm:$0xff]  ;;  %1894 = vmatpush.msrb.mxu0 %v1104_v9  ;;  %v425_v9 = vld [vmem:[%s3255_s23 + $0x3d0] sm:$0xff] }
 0x1ea   : > { %v1232_v11 = vld [vmem:[%s3255_s23 + $0x1d08] sm:$0xff]  ;;  %1913 = vmatpush.msrb.mxu1 %v1172_v10  ;;  %v485_v10 = vld [vmem:[%s3255_s23 + $0x5b0] sm:$0xff] }
 0x1eb   : > { %v1300_v12 = vld [vmem:[%s3255_s23 + $0x1f28] sm:$0xff]  ;;  %1934 = vmatpush.msrb.mxu2 %v1232_v11  ;;  %v553_v11 = vld [vmem:[%s3255_s23 + $0x7d0] sm:$0xff] }
 0x1ec   : > { %v1100_v14 = vld [vmem:[%s3255_s23 + $0x18e8] sm:$0xff]  ;;  %1953 = vmatpush.msrb.mxu3 %v1300_v12  ;;  %v353_v12 = vld [vmem:[%s3255_s23 + $0x190] sm:$0xff] }
 0x1ed   : > { %v1168_v15 = vld [vmem:[%s3255_s23 + $0x1b08] sm:$0xff]  ;;  %1895 = vmatpush.msrb.mxu0 %v1100_v14  ;;  %v481_v14 = vld [vmem:[%s3255_s23 + $0x590] sm:$0xff] }
 0x1ee   : > { %v1228_v17 = vld [vmem:[%s3255_s23 + $0x1ce8] sm:$0xff]  ;;  %1914 = vmatpush.msrb.mxu1 %v1168_v15  ;;  %v549_v15 = vld [vmem:[%s3255_s23 + $0x7b0] sm:$0xff] }
 0x1ef   : > { %v1296_v18 = vld [vmem:[%s3255_s23 + $0x1f08] sm:$0xff]  ;;  %1935 = vmatpush.msrb.mxu2 %v1228_v17  ;;  %v417_v17 = vld [vmem:[%s3255_s23 + $0x390] sm:$0xff] }
 0x1f0   : > { %v1096_v19 = vld [vmem:[%s3255_s23 + $0x18c8] sm:$0xff]  ;;  %1954 = vmatpush.msrb.mxu3 %v1296_v18  ;;  %v477_v18 = vld [vmem:[%s3255_s23 + $0x570] sm:$0xff] }
 0x1f1   : > { %v1164_v20 = vld [vmem:[%s3255_s23 + $0x1ae8] sm:$0xff]  ;;  %1896 = vmatpush.msrb.mxu0 %v1096_v19  ;;  %v545_v19 = vld [vmem:[%s3255_s23 + $0x790] sm:$0xff] }
 0x1f2   : > { %v1224_v22 = vld [vmem:[%s3255_s23 + $0x1cc8] sm:$0xff]  ;;  %1915 = vmatpush.msrb.mxu1 %v1164_v20  ;;  %v345_v20 = vld [vmem:[%s3255_s23 + $0x150] sm:$0xff] }
 0x1f3   : > { %v1292_v23 = vld [vmem:[%s3255_s23 + $0x1ee8] sm:$0xff]  ;;  %1936 = vmatpush.msrb.mxu2 %v1224_v22  ;;  %v473_v22 = vld [vmem:[%s3255_s23 + $0x550] sm:$0xff] }
 0x1f4   : > { %v1092_v25 = vld [vmem:[%s3255_s23 + $0x18a8] sm:$0xff]  ;;  %1955 = vmatpush.msrb.mxu3 %v1292_v23  ;;  %v541_v23 = vld [vmem:[%s3255_s23 + $0x770] sm:$0xff] }
 0x1f5   : > { %v1160_v26 = vld [vmem:[%s3255_s23 + $0x1ac8] sm:$0xff]  ;;  %1897 = vmatpush.msrb.mxu0 %v1092_v25  ;;  %v409_v25 = vld [vmem:[%s3255_s23 + $0x350] sm:$0xff] }
 0x1f6   : > { %v1220_v27 = vld [vmem:[%s3255_s23 + $0x1ca8] sm:$0xff]  ;;  %1916 = vmatpush.msrb.mxu1 %v1160_v26  ;;  %v469_v26 = vld [vmem:[%s3255_s23 + $0x530] sm:$0xff] }
 0x1f7   : > { %v1288_v28 = vld [vmem:[%s3255_s23 + $0x1ec8] sm:$0xff]  ;;  %1937 = vmatpush.msrb.mxu2 %v1220_v27  ;;  %v537_v27 = vld [vmem:[%s3255_s23 + $0x750] sm:$0xff] }
 0x1f8   : > { %v1088_v29 = vld [vmem:[%s3255_s23 + $0x1888] sm:$0xff]  ;;  %1956 = vmatpush.msrb.mxu3 %v1288_v28  ;;  %v337_v28 = vld [vmem:[%s3255_s23 + $0x110] sm:$0xff] }
 0x1f9   : > { %v1156_v30 = vld [vmem:[%s3255_s23 + $0x1aa8] sm:$0xff]  ;;  %1898 = vmatpush.msrb.mxu0 %v1088_v29  ;;  %v405_v29 = vld [vmem:[%s3255_s23 + $0x330] sm:$0xff] }
 0x1fa   : > { %v1216_v32 = vld [vmem:[%s3255_s23 + $0x1c88] sm:$0xff]  ;;  %1917 = vmatpush.msrb.mxu1 %v1156_v30  ;;  %v465_v30 = vld [vmem:[%s3255_s23 + $0x510] sm:$0xff] }
 0x1fb   : > { %v1284_v33 = vld [vmem:[%s3255_s23 + $0x1ea8] sm:$0xff]  ;;  %1938 = vmatpush.msrb.mxu2 %v1216_v32  ;;  %v333_v32 = vld [vmem:[%s3255_s23 + $0xf0] sm:$0xff] }
 0x1fc   : > { %v1084_v34 = vld [vmem:[%s3255_s23 + $0x1868] sm:$0xff]  ;;  %1957 = vmatpush.msrb.mxu3 %v1284_v33  ;;  %v401_v33 = vld [vmem:[%s3255_s23 + $0x310] sm:$0xff] }
 0x1fd   : > { %v1152_v35 = vld [vmem:[%s3255_s23 + $0x1a88] sm:$0xff]  ;;  %1899 = vmatpush.msrb.mxu0 %v1084_v34  ;;  %v461_v34 = vld [vmem:[%s3255_s23 + $0x4f0] sm:$0xff] }
 0x1fe   : > { %v1212_v37 = vld [vmem:[%s3255_s23 + $0x1c68] sm:$0xff]  ;;  %1918 = vmatpush.msrb.mxu1 %v1152_v35  ;;  %v529_v35 = vld [vmem:[%s3255_s23 + $0x710] sm:$0xff] }
 0x1ff   : > { %v1280_v38 = vld [vmem:[%s3255_s23 + $0x1e88] sm:$0xff]  ;;  %1939 = vmatpush.msrb.mxu2 %v1212_v37  ;;  %v397_v37 = vld [vmem:[%s3255_s23 + $0x2f0] sm:$0xff] }
 0x200   : > { %v1080_v40 = vld [vmem:[%s3255_s23 + $0x1848] sm:$0xff]  ;;  %1958 = vmatpush.msrb.mxu3 %v1280_v38  ;;  %v457_v38 = vld [vmem:[%s3255_s23 + $0x4d0] sm:$0xff] }
 0x201   : > { %v1148_v41 = vld [vmem:[%s3255_s23 + $0x1a68] sm:$0xff]  ;;  %1900 = vmatpush.msrb.mxu0 %v1080_v40  ;;  %v325_v40 = vld [vmem:[%s3255_s23 + $0xb0] sm:$0xff] }
 0x202   : > { %v1208_v42 = vld [vmem:[%s3255_s23 + $0x1c48] sm:$0xff]  ;;  %1919 = vmatpush.msrb.mxu1 %v1148_v41  ;;  %v393_v41 = vld [vmem:[%s3255_s23 + $0x2d0] sm:$0xff] }
 0x203   : > { %v1276_v43 = vld [vmem:[%s3255_s23 + $0x1e68] sm:$0xff]  ;;  %1940 = vmatpush.msrb.mxu2 %v1208_v42  ;;  %v453_v42 = vld [vmem:[%s3255_s23 + $0x4b0] sm:$0xff] }
 0x204   : > { %v1076_v45 = vld [vmem:[%s3255_s23 + $0x1828] sm:$0xff]  ;;  %1959 = vmatpush.msrb.mxu3 %v1276_v43  ;;  %v521_v43 = vld [vmem:[%s3255_s23 + $0x6d0] sm:$0xff] }
 0x205   : > { %v1144_v46 = vld [vmem:[%s3255_s23 + $0x1a48] sm:$0xff]  ;;  %1901 = vmatpush.msrb.mxu0 %v1076_v45  ;;  %v389_v45 = vld [vmem:[%s3255_s23 + $0x2b0] sm:$0xff] }
 0x206   : > { %v1204_v47 = vld [vmem:[%s3255_s23 + $0x1c28] sm:$0xff]  ;;  %1920 = vmatpush.msrb.mxu1 %v1144_v46  ;;  %v449_v46 = vld [vmem:[%s3255_s23 + $0x490] sm:$0xff] }
 0x207   : > { %v1272_v48 = vld [vmem:[%s3255_s23 + $0x1e48] sm:$0xff]  ;;  %1941 = vmatpush.msrb.mxu2 %v1204_v47  ;;  %v517_v47 = vld [vmem:[%s3255_s23 + $0x6b0] sm:$0xff] }
 0x208   : > { %v1072_v50 = vld [vmem:[%s3255_s23 + $0x1808] sm:$0xff]  ;;  %1960 = vmatpush.msrb.mxu3 %v1272_v48  ;;  %v317_v48 = vld [vmem:[%s3255_s23 + $0x70] sm:$0xff] }
 0x209   : > { %v1140_v51 = vld [vmem:[%s3255_s23 + $0x1a28] sm:$0xff]  ;;  %1902 = vmatpush.msrb.mxu0 %v1072_v50  ;;  %v445_v50 = vld [vmem:[%s3255_s23 + $0x470] sm:$0xff] }
 0x20a   : > { %v1200_v53 = vld [vmem:[%s3255_s23 + $0x1c08] sm:$0xff]  ;;  %1921 = vmatpush.msrb.mxu1 %v1140_v51  ;;  %1903 = vmatmul.f32.vlgmr.msrb.gmra.mxu0 %v2909_v63  ;;  %v513_v51 = vld [vmem:[%s3255_s23 + $0x690] sm:$0xff] }
 0x20b   : > { %v1268_v54 = vld [vmem:[%s3255_s23 + $0x1e28] sm:$0xff]  ;;  %1942 = vmatpush.msrb.mxu2 %v1200_v53  ;;  %1967 = vmatpush.msra.mxu0 %v365_v56  ;;  %v381_v53 = vld [vmem:[%s3255_s23 + $0x270] sm:$0xff] }
 0x20c   : > { %1961 = vmatpush.msrb.mxu3 %v1268_v54  ;;  %v1136_v60 = vld [vmem:[%s3255_s23 + $0x1a08] sm:$0xff]  ;;  %1943 = vmatmul.f32.vlgmr.msrb.gmra.mxu2 %v2910_v0  ;;  %v441_v54 = vld [vmem:[%s3255_s23 + $0x450] sm:$0xff] }
 0x20d   : > { %v1264_v61 = vld [vmem:[%s3255_s23 + $0x1e08] sm:$0xff]  ;;  %2007 = vmatpush.msra.mxu2 %v493_v57  ;;  %1922 = vmatpush.msrb.mxu1 %v1136_v60  ;;  %v309_v56 = vld [vmem:[%s3255_s23 + $0x30] sm:$0xff] }
 0x20e   : > { %1962 = vmatpush.msrb.mxu3 %v1264_v61  ;;  %v2911_v6 = vld [vmem:[%s3274_s4 + $0x68] sm:$0xff]  ;;  %1968 = vmatpush.msra.mxu0 %v361_v1  ;;  %v377_v57 = vld [vmem:[%s3255_s23 + $0x250] sm:$0xff] }
 0x20f   : > { %1923 = vmatmul.f32.vlgmr.msrb.gmra.mxu1 %v2911_v6  ;;  %1963 = vmatmul.f32.vlgmr.msrb.gmra.mxu3 %v2912_v7  ;;  %v305_v60 = vld [vmem:[%s3255_s23 + $0x10] sm:$0xff] }
 0x210   : > { %1987 = vmatpush.msra.mxu1 %v429_v2  ;;  %2008 = vmatpush.msra.mxu2 %v489_v4  ;;  %v373_v61 = vld [vmem:[%s3255_s23 + $0x230] sm:$0xff] }
 0x211   : > { %2027 = vmatpush.msra.mxu3 %v557_v5  ;;  %1969 = vmatpush.msra.mxu0 %v357_v8  ;;  %v501_v63 = vld [vmem:[%s3255_s23 + $0x630] sm:$0xff] }
 0x212   : > { %1988 = vmatpush.msra.mxu1 %v425_v9  ;;  %2009 = vmatpush.msra.mxu2 %v485_v10  ;;  %v621_v0 = vld [vmem:[%s3255_s23 + $0x9f0] sm:$0xff] }
 0x213   : > { %2028 = vmatpush.msra.mxu3 %v553_v11  ;;  %1970 = vmatpush.msra.mxu0 %v353_v12  ;;  %v749_v1 = vld [vmem:[%s3255_s23 + $0xdf0] sm:$0xff] }
 0x214   : > { %1989 = vmatpush.msra.mxu1 %v421_v13  ;;  %2010 = vmatpush.msra.mxu2 %v481_v14  ;;  %v369_v2 = vld [vmem:[%s3255_s23 + $0x210] sm:$0xff] }
 0x215   : > { %2029 = vmatpush.msra.mxu3 %v549_v15  ;;  %1971 = vmatpush.msra.mxu0 %v349_v16  ;;  %v617_v4 = vld [vmem:[%s3255_s23 + $0x9d0] sm:$0xff] }
 0x216   : > { %1990 = vmatpush.msra.mxu1 %v417_v17  ;;  %2011 = vmatpush.msra.mxu2 %v477_v18  ;;  %v685_v5 = vld [vmem:[%s3255_s23 + $0xbf0] sm:$0xff] }
 0x217   : > { %2030 = vmatpush.msra.mxu3 %v545_v19  ;;  %1972 = vmatpush.msra.mxu0 %v345_v20  ;;  %v745_v6 = vld [vmem:[%s3255_s23 + $0xdd0] sm:$0xff] }
 0x218   : > { %1991 = vmatpush.msra.mxu1 %v413_v21  ;;  %2012 = vmatpush.msra.mxu2 %v473_v22  ;;  %v813_v7 = vld [vmem:[%s3255_s23 + $0xff0] sm:$0xff] }
 0x219   : > { %2031 = vmatpush.msra.mxu3 %v541_v23  ;;  %1973 = vmatpush.msra.mxu0 %v341_v24  ;;  %v613_v8 = vld [vmem:[%s3255_s23 + $0x9b0] sm:$0xff] }
 0x21a   : > { %1992 = vmatpush.msra.mxu1 %v409_v25  ;;  %2013 = vmatpush.msra.mxu2 %v469_v26  ;;  %v681_v9 = vld [vmem:[%s3255_s23 + $0xbd0] sm:$0xff] }
 0x21b   : > { %2032 = vmatpush.msra.mxu3 %v537_v27  ;;  %1974 = vmatpush.msra.mxu0 %v337_v28  ;;  %v741_v10 = vld [vmem:[%s3255_s23 + $0xdb0] sm:$0xff] }
 0x21c   : > { %1993 = vmatpush.msra.mxu1 %v405_v29  ;;  %2014 = vmatpush.msra.mxu2 %v465_v30  ;;  %v809_v11 = vld [vmem:[%s3255_s23 + $0xfd0] sm:$0xff] }
 0x21d   : > { %2033 = vmatpush.msra.mxu3 %v533_v31  ;;  %1975 = vmatpush.msra.mxu0 %v333_v32  ;;  %v609_v12 = vld [vmem:[%s3255_s23 + $0x990] sm:$0xff] }
 0x21e   : > { %1994 = vmatpush.msra.mxu1 %v401_v33  ;;  %2015 = vmatpush.msra.mxu2 %v461_v34  ;;  %v677_v13 = vld [vmem:[%s3255_s23 + $0xbb0] sm:$0xff] }
 0x21f   : > { %2034 = vmatpush.msra.mxu3 %v529_v35  ;;  %1976 = vmatpush.msra.mxu0 %v329_v36  ;;  %v737_v14 = vld [vmem:[%s3255_s23 + $0xd90] sm:$0xff] }
 0x220   : > { %1995 = vmatpush.msra.mxu1 %v397_v37  ;;  %2016 = vmatpush.msra.mxu2 %v457_v38  ;;  %v805_v15 = vld [vmem:[%s3255_s23 + $0xfb0] sm:$0xff] }
 0x221   : > { %2035 = vmatpush.msra.mxu3 %v525_v39  ;;  %1977 = vmatpush.msra.mxu0 %v325_v40  ;;  %v605_v16 = vld [vmem:[%s3255_s23 + $0x970] sm:$0xff] }
 0x222   : > { %1996 = vmatpush.msra.mxu1 %v393_v41  ;;  %2017 = vmatpush.msra.mxu2 %v453_v42  ;;  %v673_v17 = vld [vmem:[%s3255_s23 + $0xb90] sm:$0xff] }
 0x223   : > { %2036 = vmatpush.msra.mxu3 %v521_v43  ;;  %1978 = vmatpush.msra.mxu0 %v321_v44  ;;  %v733_v18 = vld [vmem:[%s3255_s23 + $0xd70] sm:$0xff] }
 0x224   : > { %1997 = vmatpush.msra.mxu1 %v389_v45  ;;  %2018 = vmatpush.msra.mxu2 %v449_v46  ;;  %v801_v19 = vld [vmem:[%s3255_s23 + $0xf90] sm:$0xff] }
 0x225   : > { %2037 = vmatpush.msra.mxu3 %v517_v47  ;;  %1979 = vmatpush.msra.mxu0 %v317_v48  ;;  %v601_v20 = vld [vmem:[%s3255_s23 + $0x950] sm:$0xff] }
 0x226   : > { %1998 = vmatpush.msra.mxu1 %v385_v49  ;;  %2019 = vmatpush.msra.mxu2 %v445_v50  ;;  %v669_v21 = vld [vmem:[%s3255_s23 + $0xb70] sm:$0xff] }
 0x227   : > { %2038 = vmatpush.msra.mxu3 %v513_v51  ;;  %1980 = vmatpush.msra.mxu0 %v313_v52  ;;  %v729_v22 = vld [vmem:[%s3255_s23 + $0xd50] sm:$0xff] }
 0x228   : > { %1999 = vmatpush.msra.mxu1 %v381_v53  ;;  %2020 = vmatpush.msra.mxu2 %v441_v54  ;;  %v797_v23 = vld [vmem:[%s3255_s23 + $0xf70] sm:$0xff] }
 0x229   : > { %2039 = vmatpush.msra.mxu3 %v509_v55  ;;  %1981 = vmatpush.msra.mxu0 %v309_v56  ;;  %v597_v24 = vld [vmem:[%s3255_s23 + $0x930] sm:$0xff] }
 0x22a   : > { %2000 = vmatpush.msra.mxu1 %v377_v57  ;;  %2021 = vmatpush.msra.mxu2 %v437_v58  ;;  %v665_v25 = vld [vmem:[%s3255_s23 + $0xb50] sm:$0xff] }
 0x22b   : > { %2040 = vmatpush.msra.mxu3 %v505_v59  ;;  %1982 = vmatpush.msra.mxu0 %v305_v60  ;;  %v725_v26 = vld [vmem:[%s3255_s23 + $0xd30] sm:$0xff] }
 0x22c   : > { %2001 = vmatpush.msra.mxu1 %v373_v61  ;;  %2022 = vmatpush.msra.mxu2 %v433_v62  ;;  %v793_v27 = vld [vmem:[%s3255_s23 + $0xf50] sm:$0xff] }
 0x22d   : > { %2041 = vmatpush.msra.mxu3 %v501_v63  ;;  %2047 = vmatpush.msrb.mxu0 %v621_v0  ;;  %v593_v28 = vld [vmem:[%s3255_s23 + $0x910] sm:$0xff] }
 0x22e   : > { %2087 = vmatpush.msrb.mxu2 %v749_v1  ;;  %2002 = vmatpush.msra.mxu1 %v369_v2  ;;  %v661_v29 = vld [vmem:[%s3255_s23 + $0xb30] sm:$0xff] }
 0x22f   : > { %2042 = vmatpush.msra.mxu3 %v497_v3  ;;  %2048 = vmatpush.msrb.mxu0 %v617_v4  ;;  %v721_v30 = vld [vmem:[%s3255_s23 + $0xd10] sm:$0xff]  ;;  %v2914_v4 = vld [vmem:[%s3274_s4] sm:$0xff] }
 0x230   : > { %2067 = vmatpush.msrb.mxu1 %v685_v5  ;;  %2088 = vmatpush.msrb.mxu2 %v745_v6  ;;  %v789_v31 = vld [vmem:[%s3255_s23 + $0xf30] sm:$0xff]  ;;  %v2915_v6 = vld [vmem:[%s3274_s4 + $0x18] sm:$0xff] }
 0x231   : > { %2107 = vmatpush.msrb.mxu3 %v813_v7  ;;  %2049 = vmatpush.msrb.mxu0 %v613_v8  ;;  %v589_v32 = vld [vmem:[%s3255_s23 + $0x8f0] sm:$0xff] }
 0x232   : > { %2068 = vmatpush.msrb.mxu1 %v681_v9  ;;  %2089 = vmatpush.msrb.mxu2 %v741_v10  ;;  %v657_v33 = vld [vmem:[%s3255_s23 + $0xb10] sm:$0xff] }
 0x233   : > { %2108 = vmatpush.msrb.mxu3 %v809_v11  ;;  %2050 = vmatpush.msrb.mxu0 %v609_v12  ;;  %v717_v34 = vld [vmem:[%s3255_s23 + $0xcf0] sm:$0xff]  ;;  %v2916_v11 = vld [vmem:[%s3274_s4 + $0x8] sm:$0xff] }
 0x234   : > { %2069 = vmatpush.msrb.mxu1 %v677_v13  ;;  %2090 = vmatpush.msrb.mxu2 %v737_v14  ;;  %v785_v35 = vld [vmem:[%s3255_s23 + $0xf10] sm:$0xff] }
 0x235   : > { %2109 = vmatpush.msrb.mxu3 %v805_v15  ;;  %2051 = vmatpush.msrb.mxu0 %v605_v16  ;;  %v585_v36 = vld [vmem:[%s3255_s23 + $0x8d0] sm:$0xff] }
 0x236   : > { %2070 = vmatpush.msrb.mxu1 %v673_v17  ;;  %2091 = vmatpush.msrb.mxu2 %v733_v18  ;;  %v653_v37 = vld [vmem:[%s3255_s23 + $0xaf0] sm:$0xff] }
 0x237   : > { %2110 = vmatpush.msrb.mxu3 %v801_v19  ;;  %2052 = vmatpush.msrb.mxu0 %v601_v20  ;;  %v713_v38 = vld [vmem:[%s3255_s23 + $0xcd0] sm:$0xff] }
 0x238   : > { %2071 = vmatpush.msrb.mxu1 %v669_v21  ;;  %2092 = vmatpush.msrb.mxu2 %v729_v22  ;;  %v781_v39 = vld [vmem:[%s3255_s23 + $0xef0] sm:$0xff] }
 0x239   : > { %2111 = vmatpush.msrb.mxu3 %v797_v23  ;;  %2053 = vmatpush.msrb.mxu0 %v597_v24  ;;  %v581_v40 = vld [vmem:[%s3255_s23 + $0x8b0] sm:$0xff]  ;;  %v2918_v24 = vld [vmem:[%s3274_s4 + $0x20] sm:$0xff] }
 0x23a   : > { %2072 = vmatpush.msrb.mxu1 %v665_v25  ;;  %2093 = vmatpush.msrb.mxu2 %v725_v26  ;;  %v649_v41 = vld [vmem:[%s3255_s23 + $0xad0] sm:$0xff]  ;;  %v2919_v26 = vld [vmem:[%s3274_s4 + $0x38] sm:$0xff] }
 0x23b   : > { %2112 = vmatpush.msrb.mxu3 %v793_v27  ;;  %2054 = vmatpush.msrb.mxu0 %v593_v28  ;;  %v709_v42 = vld [vmem:[%s3255_s23 + $0xcb0] sm:$0xff] }
 0x23c   : > { %2073 = vmatpush.msrb.mxu1 %v661_v29  ;;  %2094 = vmatpush.msrb.mxu2 %v721_v30  ;;  %v777_v43 = vld [vmem:[%s3255_s23 + $0xed0] sm:$0xff] }
 0x23d   : > { %2113 = vmatpush.msrb.mxu3 %v789_v31  ;;  %2055 = vmatpush.msrb.mxu0 %v589_v32  ;;  %v577_v44 = vld [vmem:[%s3255_s23 + $0x890] sm:$0xff]  ;;  %v2920_v31 = vld [vmem:[%s3274_s4 + $0x28] sm:$0xff] }
 0x23e   : > { %2074 = vmatpush.msrb.mxu1 %v657_v33  ;;  %2095 = vmatpush.msrb.mxu2 %v717_v34  ;;  %v645_v45 = vld [vmem:[%s3255_s23 + $0xab0] sm:$0xff] }
 0x23f   : > { %2114 = vmatpush.msrb.mxu3 %v785_v35  ;;  %2056 = vmatpush.msrb.mxu0 %v585_v36  ;;  %v705_v46 = vld [vmem:[%s3255_s23 + $0xc90] sm:$0xff] }
 0x240   : > { %2075 = vmatpush.msrb.mxu1 %v653_v37  ;;  %2096 = vmatpush.msrb.mxu2 %v713_v38  ;;  %v773_v47 = vld [vmem:[%s3255_s23 + $0xeb0] sm:$0xff] }
 0x241   : > { %2115 = vmatpush.msrb.mxu3 %v781_v39  ;;  %2057 = vmatpush.msrb.mxu0 %v581_v40  ;;  %v573_v48 = vld [vmem:[%s3255_s23 + $0x870] sm:$0xff] }
 0x242   : > { %2076 = vmatpush.msrb.mxu1 %v649_v41  ;;  %2097 = vmatpush.msrb.mxu2 %v709_v42  ;;  %v641_v49 = vld [vmem:[%s3255_s23 + $0xa90] sm:$0xff] }
 0x243   : > { %2116 = vmatpush.msrb.mxu3 %v777_v43  ;;  %2058 = vmatpush.msrb.mxu0 %v577_v44  ;;  %v701_v50 = vld [vmem:[%s3255_s23 + $0xc70] sm:$0xff]  ;;  %v1684_v44 = vpop.f32.mrf.mxu1 }
 0x244   : > { %2077 = vmatpush.msrb.mxu1 %v645_v45  ;;  %v769_v51 = vld [vmem:[%s3255_s23 + $0xe90] sm:$0xff]  ;;  %2098 = vmatpush.msrb.mxu2 %v705_v46 }
 0x245   : > { %2117 = vmatpush.msrb.mxu3 %v773_v47  ;;  %v569_v52 = vld [vmem:[%s3255_s23 + $0x850] sm:$0xff]  ;;  %2059 = vmatpush.msrb.mxu0 %v573_v48 }
 0x246   : > { %v637_v53 = vld [vmem:[%s3255_s23 + $0xa70] sm:$0xff]  ;;  %2078 = vmatpush.msrb.mxu1 %v641_v49  ;;  %2099 = vmatpush.msrb.mxu2 %v701_v50  ;;  %v1664_v49 = vpop.f32.mrf.mxu0 }
 0x247   : > { %v697_v54 = vld [vmem:[%s3255_s23 + $0xc50] sm:$0xff]  ;;  %2118 = vmatpush.msrb.mxu3 %v769_v51  ;;  %2060 = vmatpush.msrb.mxu0 %v569_v52  ;;  %v1685_v52 = vadd.f32 %v1684_v44, %v1664_v49 }
 0x248   : > { %v765_v55 = vld [vmem:[%s3255_s23 + $0xe70] sm:$0xff]  ;;  %2079 = vmatpush.msrb.mxu1 %v637_v53  ;;  %2100 = vmatpush.msrb.mxu2 %v697_v54 }
 0x249   : > { %v565_v56 = vld [vmem:[%s3255_s23 + $0x830] sm:$0xff]  ;;  %2119 = vmatpush.msrb.mxu3 %v765_v55  ;;  %1983 = vmatmul.f32.vlgmr.msra.gmra.mxu0 %v2914_v4  ;;  %v1704_v55 = vpop.f32.mrf.mxu2 }
 0x24a   : > { %v633_v57 = vld [vmem:[%s3255_s23 + $0xa50] sm:$0xff]  ;;  %2061 = vmatpush.msrb.mxu0 %v565_v56  ;;  %2043 = vmatmul.f32.vlgmr.msra.gmra.mxu3 %v2915_v6 }
 0x24b   : > { %v693_v58 = vld [vmem:[%s3255_s23 + $0xc30] sm:$0xff]  ;;  %2080 = vmatpush.msrb.mxu1 %v633_v57 }
 0x24c   : > { %v761_v59 = vld [vmem:[%s3255_s23 + $0xe50] sm:$0xff]  ;;  %2101 = vmatpush.msrb.mxu2 %v693_v58  ;;  %2003 = vmatmul.f32.vlgmr.msra.gmra.mxu1 %v2916_v11 }
 0x24d   : > { %v561_v60 = vld [vmem:[%s3255_s23 + $0x810] sm:$0xff]  ;;  %2120 = vmatpush.msrb.mxu3 %v761_v59 }
 0x24e   : > { %v629_v61 = vld [vmem:[%s3255_s23 + $0xa30] sm:$0xff]  ;;  %2062 = vmatpush.msrb.mxu0 %v561_v60  ;;  %v1744_v11 = vpop.f32.mrf.mxu0 }
 0x24f   : > { %v689_v62 = vld [vmem:[%s3255_s23 + $0xc10] sm:$0xff]  ;;  %2081 = vmatpush.msrb.mxu1 %v629_v61 }
 0x250   : > { %v757_v63 = vld [vmem:[%s3255_s23 + $0xe30] sm:$0xff]  ;;  %2102 = vmatpush.msrb.mxu2 %v689_v62  ;;  %v1705_v62 = vadd.f32 %v1704_v55, %v1685_v52 }
 0x251   : > { %v2913_v0 = vld [vmem:[%s3274_s4 + $0x10] sm:$0xff]  ;;  %2121 = vmatpush.msrb.mxu3 %v757_v63  ;;  %2063 = vmatmul.f32.vlgmr.msrb.gmra.mxu0 %v2918_v24 }
 0x252   : > { %2023 = vmatmul.f32.vlgmr.msra.gmra.mxu2 %v2913_v0  ;;  %v877_v1 = vld [vmem:[%s3255_s23 + $0x11f0] sm:$0xff] }
 0x253   : > { %v1005_v2 = vld [vmem:[%s3255_s23 + $0x15f0] sm:$0xff]  ;;  %2127 = vmatpush.msra.mxu0 %v877_v1  ;;  %v1724_v1 = vpop.f32.mrf.mxu3 }
 0x254   : > { %v625_v3 = vld [vmem:[%s3255_s23 + $0xa10] sm:$0xff]  ;;  %2167 = vmatpush.msra.mxu2 %v1005_v2 }
 0x255   : > { %v753_v5 = vld [vmem:[%s3255_s23 + $0xe10] sm:$0xff]  ;;  %2082 = vmatpush.msrb.mxu1 %v625_v3 }
 0x256   : > { %v873_v7 = vld [vmem:[%s3255_s23 + $0x11d0] sm:$0xff]  ;;  %2122 = vmatpush.msrb.mxu3 %v753_v5  ;;  %2083 = vmatmul.f32.vlgmr.msrb.gmra.mxu1 %v2920_v31  ;;  %v2924_v31 = vld [vmem:[%s3274_s4 + $0x58] sm:$0xff] }
 0x257   : > { %v941_v8 = vld [vmem:[%s3255_s23 + $0x13f0] sm:$0xff]  ;;  %2128 = vmatpush.msra.mxu0 %v873_v7  ;;  %2123 = vmatmul.f32.vlgmr.msrb.gmra.mxu3 %v2919_v26 }
 0x258   : > { %v1001_v9 = vld [vmem:[%s3255_s23 + $0x15d0] sm:$0xff]  ;;  %2147 = vmatpush.msra.mxu1 %v941_v8  ;;  %v1725_v8 = vadd.f32 %v1724_v1, %v1705_v62 }
 0x259   : > { %v1069_v10 = vld [vmem:[%s3255_s23 + $0x17f0] sm:$0xff]  ;;  %2168 = vmatpush.msra.mxu2 %v1001_v9 }
 0x25a   : > { %v869_v12 = vld [vmem:[%s3255_s23 + $0x11b0] sm:$0xff]  ;;  %2187 = vmatpush.msra.mxu3 %v1069_v10 }
 0x25b   : > { %v937_v13 = vld [vmem:[%s3255_s23 + $0x13d0] sm:$0xff]  ;;  %2129 = vmatpush.msra.mxu0 %v869_v12 }
 0x25c   : > { %v997_v14 = vld [vmem:[%s3255_s23 + $0x15b0] sm:$0xff]  ;;  %2148 = vmatpush.msra.mxu1 %v937_v13 }
 0x25d   : > { %v1065_v15 = vld [vmem:[%s3255_s23 + $0x17d0] sm:$0xff]  ;;  %2169 = vmatpush.msra.mxu2 %v997_v14 }
 0x25e   : > { %v865_v16 = vld [vmem:[%s3255_s23 + $0x1190] sm:$0xff]  ;;  %2188 = vmatpush.msra.mxu3 %v1065_v15 }
 0x25f   : > { %v933_v17 = vld [vmem:[%s3255_s23 + $0x13b0] sm:$0xff]  ;;  %2130 = vmatpush.msra.mxu0 %v865_v16  ;;  %v1745_v16 = vadd.f32 %v1744_v11, %v1725_v8 }
 0x260   : > { %v993_v18 = vld [vmem:[%s3255_s23 + $0x1590] sm:$0xff]  ;;  %2149 = vmatpush.msra.mxu1 %v933_v17 }
 0x261   : > { %v1061_v19 = vld [vmem:[%s3255_s23 + $0x17b0] sm:$0xff]  ;;  %2170 = vmatpush.msra.mxu2 %v993_v18 }
 0x262   : > { %v2917_v20 = vld [vmem:[%s3274_s4 + $0x30] sm:$0xff]  ;;  %2189 = vmatpush.msra.mxu3 %v1061_v19  ;;  %v1764_v19 = vpop.f32.mrf.mxu1 }
 0x263   : > { %2103 = vmatmul.f32.vlgmr.msrb.gmra.mxu2 %v2917_v20  ;;  %v861_v21 = vld [vmem:[%s3255_s23 + $0x1170] sm:$0xff]  ;;  %v1765_v26 = vadd.f32 %v1764_v19, %v1745_v16 }
 0x264   : > { %v929_v22 = vld [vmem:[%s3255_s23 + $0x1390] sm:$0xff]  ;;  %2131 = vmatpush.msra.mxu0 %v861_v21 }
 0x265   : > { %v989_v23 = vld [vmem:[%s3255_s23 + $0x1570] sm:$0xff]  ;;  %2150 = vmatpush.msra.mxu1 %v929_v22  ;;  %v2921_v22 = vld [vmem:[%s3274_s4 + $0x40] sm:$0xff] }
 0x266   : > { %v1057_v25 = vld [vmem:[%s3255_s23 + $0x1790] sm:$0xff]  ;;  %2171 = vmatpush.msra.mxu2 %v989_v23 }
 0x267   : > { %v857_v27 = vld [vmem:[%s3255_s23 + $0x1150] sm:$0xff]  ;;  %2190 = vmatpush.msra.mxu3 %v1057_v25 }
 0x268   : > { %v925_v28 = vld [vmem:[%s3255_s23 + $0x1370] sm:$0xff]  ;;  %2132 = vmatpush.msra.mxu0 %v857_v27 }
 0x269   : > { %v985_v29 = vld [vmem:[%s3255_s23 + $0x1550] sm:$0xff]  ;;  %2151 = vmatpush.msra.mxu1 %v925_v28 }
 0x26a   : > { %v1053_v30 = vld [vmem:[%s3255_s23 + $0x1770] sm:$0xff]  ;;  %2172 = vmatpush.msra.mxu2 %v985_v29  ;;  %v1784_v29 = vpop.f32.mrf.mxu2 }
 0x26b   : > { %v853_v32 = vld [vmem:[%s3255_s23 + $0x1130] sm:$0xff]  ;;  %2191 = vmatpush.msra.mxu3 %v1053_v30  ;;  %v2923_v30 = vld [vmem:[%s3274_s4 + $0x48] sm:$0xff] }
 0x26c   : > { %v921_v33 = vld [vmem:[%s3255_s23 + $0x1350] sm:$0xff]  ;;  %2133 = vmatpush.msra.mxu0 %v853_v32 }
 0x26d   : > { %v981_v34 = vld [vmem:[%s3255_s23 + $0x1530] sm:$0xff]  ;;  %2152 = vmatpush.msra.mxu1 %v921_v33 }
 0x26e   : > { %v1049_v35 = vld [vmem:[%s3255_s23 + $0x1750] sm:$0xff]  ;;  %2173 = vmatpush.msra.mxu2 %v981_v34 }
 0x26f   : > { %v849_v36 = vld [vmem:[%s3255_s23 + $0x1110] sm:$0xff]  ;;  %2192 = vmatpush.msra.mxu3 %v1049_v35 }
 0x270   : > { %v917_v37 = vld [vmem:[%s3255_s23 + $0x1330] sm:$0xff]  ;;  %2134 = vmatpush.msra.mxu0 %v849_v36 }
 0x271   : > { %v977_v38 = vld [vmem:[%s3255_s23 + $0x1510] sm:$0xff]  ;;  %2153 = vmatpush.msra.mxu1 %v917_v37 }
 0x272   : > { %v1045_v39 = vld [vmem:[%s3255_s23 + $0x1730] sm:$0xff]  ;;  %2174 = vmatpush.msra.mxu2 %v977_v38  ;;  %v1785_v38 = vadd.f32 %v1784_v29, %v1765_v26  ;;  %v1864_v62 = vpop.f32.mrf.mxu2 }
 0x273   : > { %v845_v40 = vld [vmem:[%s3255_s23 + $0x10f0] sm:$0xff]  ;;  %2193 = vmatpush.msra.mxu3 %v1045_v39 }
 0x274   : > { %v913_v41 = vld [vmem:[%s3255_s23 + $0x1310] sm:$0xff]  ;;  %2135 = vmatpush.msra.mxu0 %v845_v40 }
 0x275   : > { %v973_v42 = vld [vmem:[%s3255_s23 + $0x14f0] sm:$0xff]  ;;  %2154 = vmatpush.msra.mxu1 %v913_v41  ;;  %v1804_v41 = vpop.f32.mrf.mxu3 }
 0x276   : > { %v1041_v43 = vld [vmem:[%s3255_s23 + $0x1710] sm:$0xff]  ;;  %2175 = vmatpush.msra.mxu2 %v973_v42  ;;  %v1805_v49 = vadd.f32 %v1804_v41, %v1785_v38  ;;  %v366_v41 = vld [vmem:[%s3255_s23 + $0x1f8] sm:$0xff] }
 0x277   : > { %v841_v45 = vld [vmem:[%s3255_s23 + $0x10d0] sm:$0xff]  ;;  %2194 = vmatpush.msra.mxu3 %v1041_v43 }
 0x278   : > { %v909_v46 = vld [vmem:[%s3255_s23 + $0x12f0] sm:$0xff]  ;;  %2136 = vmatpush.msra.mxu0 %v841_v45 }
 0x279   : > { %v969_v47 = vld [vmem:[%s3255_s23 + $0x14d0] sm:$0xff]  ;;  %2155 = vmatpush.msra.mxu1 %v909_v46  ;;  %v1824_v46 = vpop.f32.mrf.mxu0 }
 0x27a   : > { %v1037_v48 = vld [vmem:[%s3255_s23 + $0x16f0] sm:$0xff]  ;;  %2176 = vmatpush.msra.mxu2 %v969_v47 }
 0x27b   : > { %v837_v50 = vld [vmem:[%s3255_s23 + $0x10b0] sm:$0xff]  ;;  %2195 = vmatpush.msra.mxu3 %v1037_v48 }
 0x27c   : > { %v905_v51 = vld [vmem:[%s3255_s23 + $0x12d0] sm:$0xff]  ;;  %2137 = vmatpush.msra.mxu0 %v837_v50 }
 0x27d   : > { %v965_v53 = vld [vmem:[%s3255_s23 + $0x14b0] sm:$0xff]  ;;  %2156 = vmatpush.msra.mxu1 %v905_v51 }
 0x27e   : > { %v1033_v54 = vld [vmem:[%s3255_s23 + $0x16d0] sm:$0xff]  ;;  %2177 = vmatpush.msra.mxu2 %v965_v53 }
 0x27f   : > { %v833_v56 = vld [vmem:[%s3255_s23 + $0x1090] sm:$0xff]  ;;  %2196 = vmatpush.msra.mxu3 %v1033_v54  ;;  %v1825_v54 = vadd.f32 %v1824_v46, %v1805_v49 }
 0x280   : > { %v901_v57 = vld [vmem:[%s3255_s23 + $0x12b0] sm:$0xff]  ;;  %2138 = vmatpush.msra.mxu0 %v833_v56 }
 0x281   : > { %v961_v58 = vld [vmem:[%s3255_s23 + $0x1490] sm:$0xff]  ;;  %2157 = vmatpush.msra.mxu1 %v901_v57  ;;  %v1844_v57 = vpop.f32.mrf.mxu1 }
 0x282   : > { %v1029_v59 = vld [vmem:[%s3255_s23 + $0x16b0] sm:$0xff]  ;;  %2178 = vmatpush.msra.mxu2 %v961_v58  ;;  %v1845_v1 = vadd.f32 %v1844_v57, %v1825_v54  ;;  %v558_v54 = vld [vmem:[%s3255_s23 + $0x7f8] sm:$0xff] }
 0x283   : > { %v829_v60 = vld [vmem:[%s3255_s23 + $0x1070] sm:$0xff]  ;;  %2197 = vmatpush.msra.mxu3 %v1029_v59  ;;  %v358_v57 = vld [vmem:[%s3255_s23 + $0x1b8] sm:$0xff] }
 0x284   : > { %v897_v61 = vld [vmem:[%s3255_s23 + $0x1290] sm:$0xff]  ;;  %2139 = vmatpush.msra.mxu0 %v829_v60 }
 0x285   : > { %v957_v63 = vld [vmem:[%s3255_s23 + $0x1470] sm:$0xff]  ;;  %2158 = vmatpush.msra.mxu1 %v897_v61 }
 0x286   : > { %v1025_v0 = vld [vmem:[%s3255_s23 + $0x1690] sm:$0xff]  ;;  %2179 = vmatpush.msra.mxu2 %v957_v63 }
 0x287   : > { %v825_v2 = vld [vmem:[%s3255_s23 + $0x1050] sm:$0xff]  ;;  %2198 = vmatpush.msra.mxu3 %v1025_v0 }
 0x288   : > { %v893_v3 = vld [vmem:[%s3255_s23 + $0x1270] sm:$0xff]  ;;  %2140 = vmatpush.msra.mxu0 %v825_v2 }
 0x289   : > { %v953_v4 = vld [vmem:[%s3255_s23 + $0x1450] sm:$0xff]  ;;  %2159 = vmatpush.msra.mxu1 %v893_v3 }
 0x28a   : > { %v1021_v5 = vld [vmem:[%s3255_s23 + $0x1670] sm:$0xff]  ;;  %2180 = vmatpush.msra.mxu2 %v953_v4 }
 0x28b   : > { %v821_v6 = vld [vmem:[%s3255_s23 + $0x1030] sm:$0xff]  ;;  %2199 = vmatpush.msra.mxu3 %v1021_v5 }
 0x28c   : > { %v889_v7 = vld [vmem:[%s3255_s23 + $0x1250] sm:$0xff]  ;;  %2141 = vmatpush.msra.mxu0 %v821_v6  ;;  %v1865_v6 = vadd.f32 %v1864_v62, %v1845_v1  ;;  %v1924_v29 = vpop.f32.mrf.mxu1  ;;  %v422_v62 = vld [vmem:[%s3255_s23 + $0x3b8] sm:$0xff] }
 0x28d   : > { %v949_v9 = vld [vmem:[%s3255_s23 + $0x1430] sm:$0xff]  ;;  %2160 = vmatpush.msra.mxu1 %v889_v7  ;;  %v350_v1 = vld [vmem:[%s3255_s23 + $0x178] sm:$0xff] }
 0x28e   : > { %v1017_v10 = vld [vmem:[%s3255_s23 + $0x1650] sm:$0xff]  ;;  %2181 = vmatpush.msra.mxu2 %v949_v9  ;;  %v1884_v9 = vpop.f32.mrf.mxu3 }
 0x28f   : > { %v817_v12 = vld [vmem:[%s3255_s23 + $0x1010] sm:$0xff]  ;;  %2200 = vmatpush.msra.mxu3 %v1017_v10  ;;  %v1885_v16 = vadd.f32 %v1884_v9, %v1865_v6  ;;  %v414_v6 = vld [vmem:[%s3255_s23 + $0x378] sm:$0xff] }
 0x290   : > { %v885_v13 = vld [vmem:[%s3255_s23 + $0x1230] sm:$0xff]  ;;  %2142 = vmatpush.msra.mxu0 %v817_v12  ;;  %v342_v9 = vld [vmem:[%s3255_s23 + $0x138] sm:$0xff] }
 0x291   : > { %v945_v14 = vld [vmem:[%s3255_s23 + $0x1410] sm:$0xff]  ;;  %2161 = vmatpush.msra.mxu1 %v885_v13  ;;  %2143 = vmatmul.f32.vlgmr.msra.gmra.mxu0 %v2921_v22 }
 0x292   : > { %v1013_v15 = vld [vmem:[%s3255_s23 + $0x1630] sm:$0xff]  ;;  %2182 = vmatpush.msra.mxu2 %v945_v14 }
 0x293   : > { %v1133_v17 = vld [vmem:[%s3255_s23 + $0x19f0] sm:$0xff]  ;;  %2201 = vmatpush.msra.mxu3 %v1013_v15 }
 0x294   : > { %v1261_v18 = vld [vmem:[%s3255_s23 + $0x1df0] sm:$0xff]  ;;  %2207 = vmatpush.msrb.mxu0 %v1133_v17 }
 0x295   : > { %v881_v20 = vld [vmem:[%s3255_s23 + $0x1210] sm:$0xff]  ;;  %2247 = vmatpush.msrb.mxu2 %v1261_v18 }
 0x296   : > { %v1009_v21 = vld [vmem:[%s3255_s23 + $0x1610] sm:$0xff]  ;;  %2162 = vmatpush.msra.mxu1 %v881_v20 }
 0x297   : > { %v2922_v23 = vld [vmem:[%s3274_s4 + $0x50] sm:$0xff]  ;;  %2202 = vmatpush.msra.mxu3 %v1009_v21  ;;  %2163 = vmatmul.f32.vlgmr.msra.gmra.mxu1 %v2923_v30  ;;  %v1904_v21 = vpop.f32.mrf.mxu0 }
 0x298   : > { %2183 = vmatmul.f32.vlgmr.msra.gmra.mxu2 %v2922_v23  ;;  %v1129_v24 = vld [vmem:[%s3255_s23 + $0x19d0] sm:$0xff]  ;;  %2203 = vmatmul.f32.vlgmr.msra.gmra.mxu3 %v2924_v31 }
 0x299   : > { %v1197_v25 = vld [vmem:[%s3255_s23 + $0x1bf0] sm:$0xff]  ;;  %2208 = vmatpush.msrb.mxu0 %v1129_v24  ;;  %v1905_v24 = vadd.f32 %v1904_v21, %v1885_v16  ;;  %v534_v16 = vld [vmem:[%s3255_s23 + $0x738] sm:$0xff] }
 0x29a   : > { %v1257_v27 = vld [vmem:[%s3255_s23 + $0x1dd0] sm:$0xff]  ;;  %2227 = vmatpush.msrb.mxu1 %v1197_v25  ;;  %v330_v21 = vld [vmem:[%s3255_s23 + $0xd8] sm:$0xff] }
 0x29b   : > { %v1325_v28 = vld [vmem:[%s3255_s23 + $0x1ff0] sm:$0xff]  ;;  %2248 = vmatpush.msrb.mxu2 %v1257_v27 }
 0x29c   : > { %v1125_v32 = vld [vmem:[%s3255_s23 + $0x19b0] sm:$0xff]  ;;  %2267 = vmatpush.msrb.mxu3 %v1325_v28 }
 0x29d   : > { %v1193_v33 = vld [vmem:[%s3255_s23 + $0x1bd0] sm:$0xff]  ;;  %2209 = vmatpush.msrb.mxu0 %v1125_v32 }
 0x29e   : > { %v1253_v34 = vld [vmem:[%s3255_s23 + $0x1db0] sm:$0xff]  ;;  %2228 = vmatpush.msrb.mxu1 %v1193_v33 }
 0x29f   : > { %v1321_v35 = vld [vmem:[%s3255_s23 + $0x1fd0] sm:$0xff]  ;;  %2249 = vmatpush.msrb.mxu2 %v1253_v34  ;;  %v1925_v34 = vadd.f32 %v1924_v29, %v1905_v24  ;;  %v526_v24 = vld [vmem:[%s3255_s23 + $0x6f8] sm:$0xff] }
 0x2a0   : > { %v1121_v36 = vld [vmem:[%s3255_s23 + $0x1990] sm:$0xff]  ;;  %2268 = vmatpush.msrb.mxu3 %v1321_v35  ;;  %v322_v29 = vld [vmem:[%s3255_s23 + $0x98] sm:$0xff] }
 0x2a1   : > { %v1189_v37 = vld [vmem:[%s3255_s23 + $0x1bb0] sm:$0xff]  ;;  %2210 = vmatpush.msrb.mxu0 %v1121_v36 }
 0x2a2   : > { %v1249_v39 = vld [vmem:[%s3255_s23 + $0x1d90] sm:$0xff]  ;;  %2229 = vmatpush.msrb.mxu1 %v1189_v37  ;;  %v1944_v37 = vpop.f32.mrf.mxu2 }
 0x2a3   : > { %v1317_v40 = vld [vmem:[%s3255_s23 + $0x1fb0] sm:$0xff]  ;;  %2250 = vmatpush.msrb.mxu2 %v1249_v39 }
 0x2a4   : > { %v1117_v42 = vld [vmem:[%s3255_s23 + $0x1970] sm:$0xff]  ;;  %2269 = vmatpush.msrb.mxu3 %v1317_v40  ;;  %v1945_v40 = vadd.f32 %v1944_v37, %v1925_v34  ;;  %v386_v34 = vld [vmem:[%s3255_s23 + $0x298] sm:$0xff] }
 0x2a5   : > { %v1185_v43 = vld [vmem:[%s3255_s23 + $0x1b90] sm:$0xff]  ;;  %2211 = vmatpush.msrb.mxu0 %v1117_v42  ;;  %v494_v42 = vld [vmem:[%s3255_s23 + $0x5f8] sm:$0xff] }
 0x2a6   : > { %v1245_v44 = vld [vmem:[%s3255_s23 + $0x1d70] sm:$0xff]  ;;  %2230 = vmatpush.msrb.mxu1 %v1185_v43  ;;  %v284_v43 = vld [vmem:[#allocation2] sm:$0xff]  ;;  %v314_v37 = vld [vmem:[%s3255_s23 + $0x58] sm:$0xff] }
 0x2a7   : > { %v1313_v45 = vld [vmem:[%s3255_s23 + $0x1f90] sm:$0xff]  ;;  %2251 = vmatpush.msrb.mxu2 %v1245_v44  ;;  %v1964_v44 = vpop.f32.mrf.mxu3 }
 0x2a8   : > { %v1113_v47 = vld [vmem:[%s3255_s23 + $0x1950] sm:$0xff]  ;;  %2270 = vmatpush.msrb.mxu3 %v1313_v45 }
 0x2a9   : > { %v1181_v48 = vld [vmem:[%s3255_s23 + $0x1b70] sm:$0xff]  ;;  %2212 = vmatpush.msrb.mxu0 %v1113_v47  ;;  %v1965_v47 = vadd.f32 %v1964_v44, %v1945_v40  ;;  %v510_v40 = vld [vmem:[%s3255_s23 + $0x678] sm:$0xff] }
 0x2aa   : > { %v1241_v50 = vld [vmem:[%s3255_s23 + $0x1d50] sm:$0xff]  ;;  %2231 = vmatpush.msrb.mxu1 %v1181_v48  ;;  %v2925_v48 = vld [vmem:[%s3274_s4 + $0x60] sm:$0xff]  ;;  %v506_v44 = vld [vmem:[%s3255_s23 + $0x658] sm:$0xff] }
 0x2ab   : > { %v1309_v51 = vld [vmem:[%s3255_s23 + $0x1f70] sm:$0xff]  ;;  %2252 = vmatpush.msrb.mxu2 %v1241_v50  ;;  %v362_v50 = vld [vmem:[%s3255_s23 + $0x1d8] sm:$0xff] }
 0x2ac   : > { %v1109_v52 = vld [vmem:[%s3255_s23 + $0x1930] sm:$0xff]  ;;  %2271 = vmatpush.msrb.mxu3 %v1309_v51  ;;  %v430_v51 = vld [vmem:[%s3255_s23 + $0x3f8] sm:$0xff] }
 0x2ad   : > { %v1177_v53 = vld [vmem:[%s3255_s23 + $0x1b50] sm:$0xff]  ;;  %2213 = vmatpush.msrb.mxu0 %v1109_v52  ;;  %v2608_v52 = vadd.f32 %v1965_v47, %v284_v43  ;;  %v438_v43 = vld [vmem:[%s3255_s23 + $0x438] sm:$0xff] }
 0x2ae   : > { %v1237_v55 = vld [vmem:[%s3255_s23 + $0x1d30] sm:$0xff]  ;;  %2232 = vmatpush.msrb.mxu1 %v1177_v53  ;;  %v490_v53 = vld [vmem:[%s3255_s23 + $0x5d8] sm:$0xff] }
 0x2af   : > { %v1305_v56 = vld [vmem:[%s3255_s23 + $0x1f50] sm:$0xff]  ;;  %2253 = vmatpush.msrb.mxu2 %v1237_v55  ;;  %v2927_v55 = vld [vmem:[%s3274_s4 + $0x68] sm:$0xff]  ;;  %2612 = vst [vmem:[#allocation2] sm:$0xff] %v2608_v52  ;;  %v434_v47 = vld [vmem:[%s3255_s23 + $0x418] sm:$0xff] }
 0x2b0   : > { %v1105_v58 = vld [vmem:[%s3255_s23 + $0x1910] sm:$0xff]  ;;  %2272 = vmatpush.msrb.mxu3 %v1305_v56  ;;  %v2928_v56 = vld [vmem:[%s3274_s4 + $0x78] sm:$0xff] }
 0x2b1   : > { %v1173_v59 = vld [vmem:[%s3255_s23 + $0x1b30] sm:$0xff]  ;;  %2214 = vmatpush.msrb.mxu0 %v1105_v58  ;;  %v426_v58 = vld [vmem:[%s3255_s23 + $0x3d8] sm:$0xff] }
 0x2b2   : > { %v1233_v60 = vld [vmem:[%s3255_s23 + $0x1d10] sm:$0xff]  ;;  %2233 = vmatpush.msrb.mxu1 %v1173_v59  ;;  %v486_v59 = vld [vmem:[%s3255_s23 + $0x5b8] sm:$0xff] }
 0x2b3   : > { %v1301_v61 = vld [vmem:[%s3255_s23 + $0x1f30] sm:$0xff]  ;;  %2254 = vmatpush.msrb.mxu2 %v1233_v60  ;;  %v554_v60 = vld [vmem:[%s3255_s23 + $0x7d8] sm:$0xff] }
 0x2b4   : > { %v1101_v63 = vld [vmem:[%s3255_s23 + $0x18f0] sm:$0xff]  ;;  %2273 = vmatpush.msrb.mxu3 %v1301_v61  ;;  %v354_v61 = vld [vmem:[%s3255_s23 + $0x198] sm:$0xff] }
 0x2b5   : > { %v1169_v0 = vld [vmem:[%s3255_s23 + $0x1b10] sm:$0xff]  ;;  %2215 = vmatpush.msrb.mxu0 %v1101_v63  ;;  %v482_v63 = vld [vmem:[%s3255_s23 + $0x598] sm:$0xff] }
 0x2b6   : > { %v1229_v2 = vld [vmem:[%s3255_s23 + $0x1cf0] sm:$0xff]  ;;  %2234 = vmatpush.msrb.mxu1 %v1169_v0  ;;  %v550_v0 = vld [vmem:[%s3255_s23 + $0x7b8] sm:$0xff] }
 0x2b7   : > { %v1297_v3 = vld [vmem:[%s3255_s23 + $0x1f10] sm:$0xff]  ;;  %2255 = vmatpush.msrb.mxu2 %v1229_v2  ;;  %v418_v2 = vld [vmem:[%s3255_s23 + $0x398] sm:$0xff] }
 0x2b8   : > { %v1097_v4 = vld [vmem:[%s3255_s23 + $0x18d0] sm:$0xff]  ;;  %2274 = vmatpush.msrb.mxu3 %v1297_v3  ;;  %v478_v3 = vld [vmem:[%s3255_s23 + $0x578] sm:$0xff] }
 0x2b9   : > { %v1165_v5 = vld [vmem:[%s3255_s23 + $0x1af0] sm:$0xff]  ;;  %2216 = vmatpush.msrb.mxu0 %v1097_v4  ;;  %v546_v4 = vld [vmem:[%s3255_s23 + $0x798] sm:$0xff] }
 0x2ba   : > { %v1225_v7 = vld [vmem:[%s3255_s23 + $0x1cd0] sm:$0xff]  ;;  %2235 = vmatpush.msrb.mxu1 %v1165_v5  ;;  %v346_v5 = vld [vmem:[%s3255_s23 + $0x158] sm:$0xff] }
 0x2bb   : > { %v1293_v8 = vld [vmem:[%s3255_s23 + $0x1ef0] sm:$0xff]  ;;  %2256 = vmatpush.msrb.mxu2 %v1225_v7  ;;  %v474_v7 = vld [vmem:[%s3255_s23 + $0x558] sm:$0xff] }
 0x2bc   : > { %v1093_v10 = vld [vmem:[%s3255_s23 + $0x18b0] sm:$0xff]  ;;  %2275 = vmatpush.msrb.mxu3 %v1293_v8  ;;  %v542_v8 = vld [vmem:[%s3255_s23 + $0x778] sm:$0xff] }
 0x2bd   : > { %v1161_v11 = vld [vmem:[%s3255_s23 + $0x1ad0] sm:$0xff]  ;;  %2217 = vmatpush.msrb.mxu0 %v1093_v10  ;;  %v410_v10 = vld [vmem:[%s3255_s23 + $0x358] sm:$0xff] }
 0x2be   : > { %v1221_v12 = vld [vmem:[%s3255_s23 + $0x1cb0] sm:$0xff]  ;;  %2236 = vmatpush.msrb.mxu1 %v1161_v11  ;;  %v470_v11 = vld [vmem:[%s3255_s23 + $0x538] sm:$0xff] }
 0x2bf   : > { %v1289_v13 = vld [vmem:[%s3255_s23 + $0x1ed0] sm:$0xff]  ;;  %2257 = vmatpush.msrb.mxu2 %v1221_v12  ;;  %v538_v12 = vld [vmem:[%s3255_s23 + $0x758] sm:$0xff] }
 0x2c0   : > { %v1089_v14 = vld [vmem:[%s3255_s23 + $0x1890] sm:$0xff]  ;;  %2276 = vmatpush.msrb.mxu3 %v1289_v13  ;;  %v338_v13 = vld [vmem:[%s3255_s23 + $0x118] sm:$0xff] }
 0x2c1   : > { %v1157_v15 = vld [vmem:[%s3255_s23 + $0x1ab0] sm:$0xff]  ;;  %2218 = vmatpush.msrb.mxu0 %v1089_v14  ;;  %v406_v14 = vld [vmem:[%s3255_s23 + $0x338] sm:$0xff] }
 0x2c2   : > { %v1217_v17 = vld [vmem:[%s3255_s23 + $0x1c90] sm:$0xff]  ;;  %2237 = vmatpush.msrb.mxu1 %v1157_v15  ;;  %v466_v15 = vld [vmem:[%s3255_s23 + $0x518] sm:$0xff] }
 0x2c3   : > { %v1285_v18 = vld [vmem:[%s3255_s23 + $0x1eb0] sm:$0xff]  ;;  %2258 = vmatpush.msrb.mxu2 %v1217_v17  ;;  %v334_v17 = vld [vmem:[%s3255_s23 + $0xf8] sm:$0xff] }
 0x2c4   : > { %v1085_v19 = vld [vmem:[%s3255_s23 + $0x1870] sm:$0xff]  ;;  %2277 = vmatpush.msrb.mxu3 %v1285_v18  ;;  %v402_v18 = vld [vmem:[%s3255_s23 + $0x318] sm:$0xff] }
 0x2c5   : > { %v1153_v20 = vld [vmem:[%s3255_s23 + $0x1a90] sm:$0xff]  ;;  %2219 = vmatpush.msrb.mxu0 %v1085_v19  ;;  %v462_v19 = vld [vmem:[%s3255_s23 + $0x4f8] sm:$0xff] }
 0x2c6   : > { %v1213_v22 = vld [vmem:[%s3255_s23 + $0x1c70] sm:$0xff]  ;;  %2238 = vmatpush.msrb.mxu1 %v1153_v20  ;;  %v530_v20 = vld [vmem:[%s3255_s23 + $0x718] sm:$0xff] }
 0x2c7   : > { %v1281_v23 = vld [vmem:[%s3255_s23 + $0x1e90] sm:$0xff]  ;;  %2259 = vmatpush.msrb.mxu2 %v1213_v22  ;;  %v398_v22 = vld [vmem:[%s3255_s23 + $0x2f8] sm:$0xff] }
 0x2c8   : > { %v1081_v25 = vld [vmem:[%s3255_s23 + $0x1850] sm:$0xff]  ;;  %2278 = vmatpush.msrb.mxu3 %v1281_v23  ;;  %v458_v23 = vld [vmem:[%s3255_s23 + $0x4d8] sm:$0xff] }
 0x2c9   : > { %v1149_v26 = vld [vmem:[%s3255_s23 + $0x1a70] sm:$0xff]  ;;  %2220 = vmatpush.msrb.mxu0 %v1081_v25  ;;  %v326_v25 = vld [vmem:[%s3255_s23 + $0xb8] sm:$0xff] }
 0x2ca   : > { %v1209_v27 = vld [vmem:[%s3255_s23 + $0x1c50] sm:$0xff]  ;;  %2239 = vmatpush.msrb.mxu1 %v1149_v26  ;;  %v394_v26 = vld [vmem:[%s3255_s23 + $0x2d8] sm:$0xff] }
 0x2cb   : > { %v1277_v28 = vld [vmem:[%s3255_s23 + $0x1e70] sm:$0xff]  ;;  %2260 = vmatpush.msrb.mxu2 %v1209_v27  ;;  %v454_v27 = vld [vmem:[%s3255_s23 + $0x4b8] sm:$0xff] }
 0x2cc   : > { %v1077_v30 = vld [vmem:[%s3255_s23 + $0x1830] sm:$0xff]  ;;  %2279 = vmatpush.msrb.mxu3 %v1277_v28  ;;  %v522_v28 = vld [vmem:[%s3255_s23 + $0x6d8] sm:$0xff] }
 0x2cd   : > { %v1145_v31 = vld [vmem:[%s3255_s23 + $0x1a50] sm:$0xff]  ;;  %2221 = vmatpush.msrb.mxu0 %v1077_v30  ;;  %v390_v30 = vld [vmem:[%s3255_s23 + $0x2b8] sm:$0xff] }
 0x2ce   : > { %v1205_v32 = vld [vmem:[%s3255_s23 + $0x1c30] sm:$0xff]  ;;  %2240 = vmatpush.msrb.mxu1 %v1145_v31  ;;  %v450_v31 = vld [vmem:[%s3255_s23 + $0x498] sm:$0xff] }
 0x2cf   : > { %v1273_v33 = vld [vmem:[%s3255_s23 + $0x1e50] sm:$0xff]  ;;  %2261 = vmatpush.msrb.mxu2 %v1205_v32  ;;  %v518_v32 = vld [vmem:[%s3255_s23 + $0x6b8] sm:$0xff] }
 0x2d0   : > { %v1073_v35 = vld [vmem:[%s3255_s23 + $0x1810] sm:$0xff]  ;;  %2280 = vmatpush.msrb.mxu3 %v1273_v33  ;;  %v318_v33 = vld [vmem:[%s3255_s23 + $0x78] sm:$0xff] }
 0x2d1   : > { %v1141_v36 = vld [vmem:[%s3255_s23 + $0x1a30] sm:$0xff]  ;;  %2222 = vmatpush.msrb.mxu0 %v1073_v35  ;;  %v446_v35 = vld [vmem:[%s3255_s23 + $0x478] sm:$0xff] }
 0x2d2   : > { %v1201_v38 = vld [vmem:[%s3255_s23 + $0x1c10] sm:$0xff]  ;;  %2241 = vmatpush.msrb.mxu1 %v1141_v36  ;;  %2223 = vmatmul.f32.vlgmr.msrb.gmra.mxu0 %v2925_v48  ;;  %v514_v36 = vld [vmem:[%s3255_s23 + $0x698] sm:$0xff] }
 0x2d3   : > { %v1269_v39 = vld [vmem:[%s3255_s23 + $0x1e30] sm:$0xff]  ;;  %2262 = vmatpush.msrb.mxu2 %v1201_v38  ;;  %2287 = vmatpush.msra.mxu0 %v366_v41  ;;  %v382_v38 = vld [vmem:[%s3255_s23 + $0x278] sm:$0xff] }
 0x2d4   : > { %2281 = vmatpush.msrb.mxu3 %v1269_v39  ;;  %v1137_v45 = vld [vmem:[%s3255_s23 + $0x1a10] sm:$0xff]  ;;  %v442_v39 = vld [vmem:[%s3255_s23 + $0x458] sm:$0xff] }
 0x2d5   : > { %v1265_v46 = vld [vmem:[%s3255_s23 + $0x1e10] sm:$0xff]  ;;  %2327 = vmatpush.msra.mxu2 %v494_v42  ;;  %2242 = vmatpush.msrb.mxu1 %v1137_v45  ;;  %v310_v41 = vld [vmem:[%s3255_s23 + $0x38] sm:$0xff] }
 0x2d6   : > { %v2926_v49 = vld [vmem:[%s3274_s4 + $0x70] sm:$0xff]  ;;  %2282 = vmatpush.msrb.mxu3 %v1265_v46  ;;  %2243 = vmatmul.f32.vlgmr.msrb.gmra.mxu1 %v2927_v55  ;;  %v378_v42 = vld [vmem:[%s3255_s23 + $0x258] sm:$0xff] }
 0x2d7   : > { %2263 = vmatmul.f32.vlgmr.msrb.gmra.mxu2 %v2926_v49  ;;  %2283 = vmatmul.f32.vlgmr.msrb.gmra.mxu3 %v2928_v56  ;;  %v306_v45 = vld [vmem:[%s3255_s23 + $0x18] sm:$0xff] }
 0x2d8   : > { %2288 = vmatpush.msra.mxu0 %v362_v50  ;;  %2307 = vmatpush.msra.mxu1 %v430_v51  ;;  %v374_v46 = vld [vmem:[%s3255_s23 + $0x238] sm:$0xff] }
 0x2d9   : > { %2328 = vmatpush.msra.mxu2 %v490_v53  ;;  %2347 = vmatpush.msra.mxu3 %v558_v54  ;;  %v502_v48 = vld [vmem:[%s3255_s23 + $0x638] sm:$0xff] }
 0x2da   : > { %2289 = vmatpush.msra.mxu0 %v358_v57  ;;  %2308 = vmatpush.msra.mxu1 %v426_v58  ;;  %v622_v49 = vld [vmem:[%s3255_s23 + $0x9f8] sm:$0xff] }
 0x2db   : > { %2329 = vmatpush.msra.mxu2 %v486_v59  ;;  %2348 = vmatpush.msra.mxu3 %v554_v60  ;;  %v750_v50 = vld [vmem:[%s3255_s23 + $0xdf8] sm:$0xff] }
 0x2dc   : > { %2290 = vmatpush.msra.mxu0 %v354_v61  ;;  %2309 = vmatpush.msra.mxu1 %v422_v62  ;;  %v370_v51 = vld [vmem:[%s3255_s23 + $0x218] sm:$0xff] }
 0x2dd   : > { %2330 = vmatpush.msra.mxu2 %v482_v63  ;;  %2349 = vmatpush.msra.mxu3 %v550_v0  ;;  %v498_v52 = vld [vmem:[%s3255_s23 + $0x618] sm:$0xff] }
 0x2de   : > { %2291 = vmatpush.msra.mxu0 %v350_v1  ;;  %2310 = vmatpush.msra.mxu1 %v418_v2  ;;  %v618_v53 = vld [vmem:[%s3255_s23 + $0x9d8] sm:$0xff] }
 0x2df   : > { %2331 = vmatpush.msra.mxu2 %v478_v3  ;;  %2350 = vmatpush.msra.mxu3 %v546_v4  ;;  %v686_v54 = vld [vmem:[%s3255_s23 + $0xbf8] sm:$0xff] }
 0x2e0   : > { %2292 = vmatpush.msra.mxu0 %v346_v5  ;;  %2311 = vmatpush.msra.mxu1 %v414_v6  ;;  %v746_v55 = vld [vmem:[%s3255_s23 + $0xdd8] sm:$0xff] }
 0x2e1   : > { %2332 = vmatpush.msra.mxu2 %v474_v7  ;;  %2351 = vmatpush.msra.mxu3 %v542_v8  ;;  %v814_v56 = vld [vmem:[%s3255_s23 + $0xff8] sm:$0xff] }
 0x2e2   : > { %2293 = vmatpush.msra.mxu0 %v342_v9  ;;  %2312 = vmatpush.msra.mxu1 %v410_v10  ;;  %v614_v57 = vld [vmem:[%s3255_s23 + $0x9b8] sm:$0xff] }
 0x2e3   : > { %2333 = vmatpush.msra.mxu2 %v470_v11  ;;  %2352 = vmatpush.msra.mxu3 %v538_v12  ;;  %v682_v58 = vld [vmem:[%s3255_s23 + $0xbd8] sm:$0xff] }
 0x2e4   : > { %2294 = vmatpush.msra.mxu0 %v338_v13  ;;  %2313 = vmatpush.msra.mxu1 %v406_v14  ;;  %v742_v59 = vld [vmem:[%s3255_s23 + $0xdb8] sm:$0xff] }
 0x2e5   : > { %2334 = vmatpush.msra.mxu2 %v466_v15  ;;  %2353 = vmatpush.msra.mxu3 %v534_v16  ;;  %v810_v60 = vld [vmem:[%s3255_s23 + $0xfd8] sm:$0xff] }
 0x2e6   : > { %2295 = vmatpush.msra.mxu0 %v334_v17  ;;  %2314 = vmatpush.msra.mxu1 %v402_v18  ;;  %v610_v61 = vld [vmem:[%s3255_s23 + $0x998] sm:$0xff] }
 0x2e7   : > { %2335 = vmatpush.msra.mxu2 %v462_v19  ;;  %2354 = vmatpush.msra.mxu3 %v530_v20  ;;  %v678_v62 = vld [vmem:[%s3255_s23 + $0xbb8] sm:$0xff] }
 0x2e8   : > { %2296 = vmatpush.msra.mxu0 %v330_v21  ;;  %2315 = vmatpush.msra.mxu1 %v398_v22  ;;  %v738_v63 = vld [vmem:[%s3255_s23 + $0xd98] sm:$0xff] }
 0x2e9   : > { %2336 = vmatpush.msra.mxu2 %v458_v23  ;;  %2355 = vmatpush.msra.mxu3 %v526_v24  ;;  %v806_v0 = vld [vmem:[%s3255_s23 + $0xfb8] sm:$0xff] }
 0x2ea   : > { %2297 = vmatpush.msra.mxu0 %v326_v25  ;;  %2316 = vmatpush.msra.mxu1 %v394_v26  ;;  %v606_v1 = vld [vmem:[%s3255_s23 + $0x978] sm:$0xff] }
 0x2eb   : > { %2337 = vmatpush.msra.mxu2 %v454_v27  ;;  %2356 = vmatpush.msra.mxu3 %v522_v28  ;;  %v674_v2 = vld [vmem:[%s3255_s23 + $0xb98] sm:$0xff] }
 0x2ec   : > { %2298 = vmatpush.msra.mxu0 %v322_v29  ;;  %2317 = vmatpush.msra.mxu1 %v390_v30  ;;  %v734_v3 = vld [vmem:[%s3255_s23 + $0xd78] sm:$0xff] }
 0x2ed   : > { %2338 = vmatpush.msra.mxu2 %v450_v31  ;;  %2357 = vmatpush.msra.mxu3 %v518_v32  ;;  %v802_v4 = vld [vmem:[%s3255_s23 + $0xf98] sm:$0xff] }
 0x2ee   : > { %2299 = vmatpush.msra.mxu0 %v318_v33  ;;  %2318 = vmatpush.msra.mxu1 %v386_v34  ;;  %v602_v5 = vld [vmem:[%s3255_s23 + $0x958] sm:$0xff] }
 0x2ef   : > { %2339 = vmatpush.msra.mxu2 %v446_v35  ;;  %2358 = vmatpush.msra.mxu3 %v514_v36  ;;  %v670_v6 = vld [vmem:[%s3255_s23 + $0xb78] sm:$0xff] }
 0x2f0   : > { %2300 = vmatpush.msra.mxu0 %v314_v37  ;;  %2319 = vmatpush.msra.mxu1 %v382_v38  ;;  %v730_v7 = vld [vmem:[%s3255_s23 + $0xd58] sm:$0xff] }
 0x2f1   : > { %2340 = vmatpush.msra.mxu2 %v442_v39  ;;  %2359 = vmatpush.msra.mxu3 %v510_v40  ;;  %v798_v8 = vld [vmem:[%s3255_s23 + $0xf78] sm:$0xff] }
 0x2f2   : > { %2301 = vmatpush.msra.mxu0 %v310_v41  ;;  %2320 = vmatpush.msra.mxu1 %v378_v42  ;;  %v598_v9 = vld [vmem:[%s3255_s23 + $0x938] sm:$0xff] }
 0x2f3   : > { %2341 = vmatpush.msra.mxu2 %v438_v43  ;;  %2360 = vmatpush.msra.mxu3 %v506_v44  ;;  %v666_v10 = vld [vmem:[%s3255_s23 + $0xb58] sm:$0xff] }
 0x2f4   : > { %2302 = vmatpush.msra.mxu0 %v306_v45  ;;  %2321 = vmatpush.msra.mxu1 %v374_v46  ;;  %v726_v11 = vld [vmem:[%s3255_s23 + $0xd38] sm:$0xff] }
 0x2f5   : > { %2342 = vmatpush.msra.mxu2 %v434_v47  ;;  %2361 = vmatpush.msra.mxu3 %v502_v48  ;;  %v794_v12 = vld [vmem:[%s3255_s23 + $0xf58] sm:$0xff] }
 0x2f6   : > { %2367 = vmatpush.msrb.mxu0 %v622_v49  ;;  %2322 = vmatpush.msra.mxu1 %v370_v51  ;;  %v594_v13 = vld [vmem:[%s3255_s23 + $0x918] sm:$0xff]  ;;  %v2929_v49 = vld [vmem:[%s3274_s4 + $0x10] sm:$0xff] }
 0x2f7   : > { %2407 = vmatpush.msrb.mxu2 %v750_v50  ;;  %2362 = vmatpush.msra.mxu3 %v498_v52  ;;  %v662_v14 = vld [vmem:[%s3255_s23 + $0xb38] sm:$0xff] }
 0x2f8   : > { %2368 = vmatpush.msrb.mxu0 %v618_v53  ;;  %2387 = vmatpush.msrb.mxu1 %v686_v54  ;;  %v722_v15 = vld [vmem:[%s3255_s23 + $0xd18] sm:$0xff]  ;;  %v2930_v53 = vld [vmem:[%s3274_s4] sm:$0xff] }
 0x2f9   : > { %2408 = vmatpush.msrb.mxu2 %v746_v55  ;;  %2427 = vmatpush.msrb.mxu3 %v814_v56  ;;  %v790_v16 = vld [vmem:[%s3255_s23 + $0xf38] sm:$0xff] }
 0x2fa   : > { %2369 = vmatpush.msrb.mxu0 %v614_v57  ;;  %2388 = vmatpush.msrb.mxu1 %v682_v58  ;;  %v590_v17 = vld [vmem:[%s3255_s23 + $0x8f8] sm:$0xff] }
 0x2fb   : > { %2409 = vmatpush.msrb.mxu2 %v742_v59  ;;  %2428 = vmatpush.msrb.mxu3 %v810_v60  ;;  %v658_v18 = vld [vmem:[%s3255_s23 + $0xb18] sm:$0xff]  ;;  %v2932_v60 = vld [vmem:[%s3274_s4 + $0x8] sm:$0xff] }
 0x2fc   : > { %2370 = vmatpush.msrb.mxu0 %v610_v61  ;;  %2389 = vmatpush.msrb.mxu1 %v678_v62  ;;  %v718_v19 = vld [vmem:[%s3255_s23 + $0xcf8] sm:$0xff] }
 0x2fd   : > { %2410 = vmatpush.msrb.mxu2 %v738_v63  ;;  %2429 = vmatpush.msrb.mxu3 %v806_v0  ;;  %v786_v20 = vld [vmem:[%s3255_s23 + $0xf18] sm:$0xff] }
 0x2fe   : > { %2371 = vmatpush.msrb.mxu0 %v606_v1  ;;  %2390 = vmatpush.msrb.mxu1 %v674_v2  ;;  %v586_v21 = vld [vmem:[%s3255_s23 + $0x8d8] sm:$0xff] }
 0x2ff   : > { %2411 = vmatpush.msrb.mxu2 %v734_v3  ;;  %2430 = vmatpush.msrb.mxu3 %v802_v4  ;;  %v654_v22 = vld [vmem:[%s3255_s23 + $0xaf8] sm:$0xff] }
 0x300   : > { %2372 = vmatpush.msrb.mxu0 %v602_v5  ;;  %2391 = vmatpush.msrb.mxu1 %v670_v6  ;;  %v714_v23 = vld [vmem:[%s3255_s23 + $0xcd8] sm:$0xff]  ;;  %v2933_v5 = vld [vmem:[%s3274_s4 + $0x30] sm:$0xff] }
 0x301   : > { %2412 = vmatpush.msrb.mxu2 %v730_v7  ;;  %2431 = vmatpush.msrb.mxu3 %v798_v8  ;;  %v782_v24 = vld [vmem:[%s3255_s23 + $0xef8] sm:$0xff] }
 0x302   : > { %2373 = vmatpush.msrb.mxu0 %v598_v9  ;;  %2392 = vmatpush.msrb.mxu1 %v666_v10  ;;  %v582_v25 = vld [vmem:[%s3255_s23 + $0x8b8] sm:$0xff]  ;;  %v2934_v9 = vld [vmem:[%s3274_s4 + $0x20] sm:$0xff] }
 0x303   : > { %2413 = vmatpush.msrb.mxu2 %v726_v11  ;;  %2432 = vmatpush.msrb.mxu3 %v794_v12  ;;  %v650_v26 = vld [vmem:[%s3255_s23 + $0xad8] sm:$0xff] }
 0x304   : > { %2374 = vmatpush.msrb.mxu0 %v594_v13  ;;  %2393 = vmatpush.msrb.mxu1 %v662_v14  ;;  %v710_v27 = vld [vmem:[%s3255_s23 + $0xcb8] sm:$0xff] }
 0x305   : > { %2414 = vmatpush.msrb.mxu2 %v722_v15  ;;  %2433 = vmatpush.msrb.mxu3 %v790_v16  ;;  %v778_v28 = vld [vmem:[%s3255_s23 + $0xed8] sm:$0xff]  ;;  %v2936_v16 = vld [vmem:[%s3274_s4 + $0x28] sm:$0xff] }
 0x306   : > { %2375 = vmatpush.msrb.mxu0 %v590_v17  ;;  %2394 = vmatpush.msrb.mxu1 %v658_v18  ;;  %v578_v29 = vld [vmem:[%s3255_s23 + $0x898] sm:$0xff] }
 0x307   : > { %2415 = vmatpush.msrb.mxu2 %v718_v19  ;;  %2434 = vmatpush.msrb.mxu3 %v786_v20  ;;  %v646_v30 = vld [vmem:[%s3255_s23 + $0xab8] sm:$0xff] }
 0x308   : > { %2376 = vmatpush.msrb.mxu0 %v586_v21  ;;  %2395 = vmatpush.msrb.mxu1 %v654_v22  ;;  %v706_v31 = vld [vmem:[%s3255_s23 + $0xc98] sm:$0xff] }
 0x309   : > { %2416 = vmatpush.msrb.mxu2 %v714_v23  ;;  %2435 = vmatpush.msrb.mxu3 %v782_v24  ;;  %v774_v32 = vld [vmem:[%s3255_s23 + $0xeb8] sm:$0xff] }
 0x30a   : > { %2377 = vmatpush.msrb.mxu0 %v582_v25  ;;  %2396 = vmatpush.msrb.mxu1 %v650_v26  ;;  %v574_v33 = vld [vmem:[%s3255_s23 + $0x878] sm:$0xff] }
 0x30b   : > { %2417 = vmatpush.msrb.mxu2 %v710_v27  ;;  %2436 = vmatpush.msrb.mxu3 %v778_v28  ;;  %v642_v34 = vld [vmem:[%s3255_s23 + $0xa98] sm:$0xff] }
 0x30c   : > { %2378 = vmatpush.msrb.mxu0 %v578_v29  ;;  %2397 = vmatpush.msrb.mxu1 %v646_v30  ;;  %v702_v35 = vld [vmem:[%s3255_s23 + $0xc78] sm:$0xff]  ;;  %v2004_v29 = vpop.f32.mrf.mxu1 }
 0x30d   : > { %v770_v36 = vld [vmem:[%s3255_s23 + $0xe98] sm:$0xff]  ;;  %2418 = vmatpush.msrb.mxu2 %v706_v31  ;;  %2437 = vmatpush.msrb.mxu3 %v774_v32 }
 0x30e   : > { %v570_v37 = vld [vmem:[%s3255_s23 + $0x858] sm:$0xff]  ;;  %2379 = vmatpush.msrb.mxu0 %v574_v33  ;;  %2398 = vmatpush.msrb.mxu1 %v642_v34  ;;  %v1984_v34 = vpop.f32.mrf.mxu0 }
 0x30f   : > { %v638_v38 = vld [vmem:[%s3255_s23 + $0xa78] sm:$0xff]  ;;  %2419 = vmatpush.msrb.mxu2 %v702_v35  ;;  %2438 = vmatpush.msrb.mxu3 %v770_v36 }
 0x310   : > { %v698_v39 = vld [vmem:[%s3255_s23 + $0xc58] sm:$0xff]  ;;  %2380 = vmatpush.msrb.mxu0 %v570_v37  ;;  %2399 = vmatpush.msrb.mxu1 %v638_v38  ;;  %v2005_v37 = vadd.f32 %v2004_v29, %v1984_v34 }
 0x311   : > { %v766_v40 = vld [vmem:[%s3255_s23 + $0xe78] sm:$0xff]  ;;  %2420 = vmatpush.msrb.mxu2 %v698_v39  ;;  %2303 = vmatmul.f32.vlgmr.msra.gmra.mxu0 %v2930_v53 }
 0x312   : > { %v566_v41 = vld [vmem:[%s3255_s23 + $0x838] sm:$0xff]  ;;  %2439 = vmatpush.msrb.mxu3 %v766_v40  ;;  %2343 = vmatmul.f32.vlgmr.msra.gmra.mxu2 %v2929_v49  ;;  %v2024_v40 = vpop.f32.mrf.mxu2 }
 0x313   : > { %v634_v42 = vld [vmem:[%s3255_s23 + $0xa58] sm:$0xff]  ;;  %2381 = vmatpush.msrb.mxu0 %v566_v41  ;;  %2323 = vmatmul.f32.vlgmr.msra.gmra.mxu1 %v2932_v60 }
 0x314   : > { %v694_v43 = vld [vmem:[%s3255_s23 + $0xc38] sm:$0xff]  ;;  %2400 = vmatpush.msrb.mxu1 %v634_v42 }
 0x315   : > { %v762_v44 = vld [vmem:[%s3255_s23 + $0xe58] sm:$0xff]  ;;  %2421 = vmatpush.msrb.mxu2 %v694_v43 }
 0x316   : > { %v562_v45 = vld [vmem:[%s3255_s23 + $0x818] sm:$0xff]  ;;  %2440 = vmatpush.msrb.mxu3 %v762_v44  ;;  %v2064_v60 = vpop.f32.mrf.mxu0 }
 0x317   : > { %v630_v46 = vld [vmem:[%s3255_s23 + $0xa38] sm:$0xff]  ;;  %2382 = vmatpush.msrb.mxu0 %v562_v45 }
 0x318   : > { %v690_v47 = vld [vmem:[%s3255_s23 + $0xc18] sm:$0xff]  ;;  %2401 = vmatpush.msrb.mxu1 %v630_v46 }
 0x319   : > { %v758_v48 = vld [vmem:[%s3255_s23 + $0xe38] sm:$0xff]  ;;  %2422 = vmatpush.msrb.mxu2 %v690_v47  ;;  %2383 = vmatmul.f32.vlgmr.msrb.gmra.mxu0 %v2934_v9  ;;  %v2025_v47 = vadd.f32 %v2024_v40, %v2005_v37 }
 0x31a   : > { %v878_v50 = vld [vmem:[%s3255_s23 + $0x11f8] sm:$0xff]  ;;  %2441 = vmatpush.msrb.mxu3 %v758_v48  ;;  %2423 = vmatmul.f32.vlgmr.msrb.gmra.mxu2 %v2933_v5 }
 0x31b   : > { %v1006_v51 = vld [vmem:[%s3255_s23 + $0x15f8] sm:$0xff]  ;;  %2447 = vmatpush.msra.mxu0 %v878_v50  ;;  %v2044_v50 = vpop.f32.mrf.mxu3 }
 0x31c   : > { %v626_v52 = vld [vmem:[%s3255_s23 + $0xa18] sm:$0xff]  ;;  %2487 = vmatpush.msra.mxu2 %v1006_v51 }
 0x31d   : > { %v754_v54 = vld [vmem:[%s3255_s23 + $0xe18] sm:$0xff]  ;;  %2402 = vmatpush.msrb.mxu1 %v626_v52 }
 0x31e   : > { %v2931_v55 = vld [vmem:[%s3274_s4 + $0x18] sm:$0xff]  ;;  %2442 = vmatpush.msrb.mxu3 %v754_v54  ;;  %2403 = vmatmul.f32.vlgmr.msrb.gmra.mxu1 %v2936_v16 }
 0x31f   : > { %2363 = vmatmul.f32.vlgmr.msra.gmra.mxu3 %v2931_v55  ;;  %v874_v56 = vld [vmem:[%s3255_s23 + $0x11d8] sm:$0xff] }
 0x320   : > { %v942_v57 = vld [vmem:[%s3255_s23 + $0x13f8] sm:$0xff]  ;;  %2448 = vmatpush.msra.mxu0 %v874_v56 }
 0x321   : > { %v1002_v58 = vld [vmem:[%s3255_s23 + $0x15d8] sm:$0xff]  ;;  %2467 = vmatpush.msra.mxu1 %v942_v57  ;;  %v2045_v57 = vadd.f32 %v2044_v50, %v2025_v47 }
 0x322   : > { %v1070_v59 = vld [vmem:[%s3255_s23 + $0x17f8] sm:$0xff]  ;;  %2488 = vmatpush.msra.mxu2 %v1002_v58 }
 0x323   : > { %v870_v61 = vld [vmem:[%s3255_s23 + $0x11b8] sm:$0xff]  ;;  %2507 = vmatpush.msra.mxu3 %v1070_v59 }
 0x324   : > { %v938_v62 = vld [vmem:[%s3255_s23 + $0x13d8] sm:$0xff]  ;;  %2449 = vmatpush.msra.mxu0 %v870_v61 }
 0x325   : > { %v998_v63 = vld [vmem:[%s3255_s23 + $0x15b8] sm:$0xff]  ;;  %2468 = vmatpush.msra.mxu1 %v938_v62 }
 0x326   : > { %v1066_v0 = vld [vmem:[%s3255_s23 + $0x17d8] sm:$0xff]  ;;  %2489 = vmatpush.msra.mxu2 %v998_v63 }
 0x327   : > { %v866_v1 = vld [vmem:[%s3255_s23 + $0x1198] sm:$0xff]  ;;  %2508 = vmatpush.msra.mxu3 %v1066_v0 }
 0x328   : > { %v934_v2 = vld [vmem:[%s3255_s23 + $0x13b8] sm:$0xff]  ;;  %2450 = vmatpush.msra.mxu0 %v866_v1  ;;  %v2065_v1 = vadd.f32 %v2064_v60, %v2045_v57 }
 0x329   : > { %v994_v3 = vld [vmem:[%s3255_s23 + $0x1598] sm:$0xff]  ;;  %2469 = vmatpush.msra.mxu1 %v934_v2 }
 0x32a   : > { %v1062_v4 = vld [vmem:[%s3255_s23 + $0x17b8] sm:$0xff]  ;;  %2490 = vmatpush.msra.mxu2 %v994_v3 }
 0x32b   : > { %v862_v6 = vld [vmem:[%s3255_s23 + $0x1178] sm:$0xff]  ;;  %2509 = vmatpush.msra.mxu3 %v1062_v4  ;;  %v2084_v4 = vpop.f32.mrf.mxu1 }
 0x32c   : > { %v930_v7 = vld [vmem:[%s3255_s23 + $0x1398] sm:$0xff]  ;;  %2451 = vmatpush.msra.mxu0 %v862_v6 }
 0x32d   : > { %v990_v8 = vld [vmem:[%s3255_s23 + $0x1578] sm:$0xff]  ;;  %2470 = vmatpush.msra.mxu1 %v930_v7  ;;  %v2937_v7 = vld [vmem:[%s3274_s4 + $0x40] sm:$0xff] }
 0x32e   : > { %v1058_v10 = vld [vmem:[%s3255_s23 + $0x1798] sm:$0xff]  ;;  %2491 = vmatpush.msra.mxu2 %v990_v8  ;;  %v2938_v8 = vld [vmem:[%s3274_s4 + $0x50] sm:$0xff] }
 0x32f   : > { %v2935_v11 = vld [vmem:[%s3274_s4 + $0x38] sm:$0xff]  ;;  %2510 = vmatpush.msra.mxu3 %v1058_v10 }
 0x330   : > { %2443 = vmatmul.f32.vlgmr.msrb.gmra.mxu3 %v2935_v11  ;;  %v858_v12 = vld [vmem:[%s3255_s23 + $0x1158] sm:$0xff]  ;;  %v2085_v11 = vadd.f32 %v2084_v4, %v2065_v1 }
 0x331   : > { %v926_v13 = vld [vmem:[%s3255_s23 + $0x1378] sm:$0xff]  ;;  %2452 = vmatpush.msra.mxu0 %v858_v12 }
 0x332   : > { %v986_v14 = vld [vmem:[%s3255_s23 + $0x1558] sm:$0xff]  ;;  %2471 = vmatpush.msra.mxu1 %v926_v13 }
 0x333   : > { %v1054_v15 = vld [vmem:[%s3255_s23 + $0x1778] sm:$0xff]  ;;  %2492 = vmatpush.msra.mxu2 %v986_v14  ;;  %v2104_v14 = vpop.f32.mrf.mxu2 }
 0x334   : > { %v854_v17 = vld [vmem:[%s3255_s23 + $0x1138] sm:$0xff]  ;;  %2511 = vmatpush.msra.mxu3 %v1054_v15  ;;  %v2939_v15 = vld [vmem:[%s3274_s4 + $0x48] sm:$0xff] }
 0x335   : > { %v922_v18 = vld [vmem:[%s3255_s23 + $0x1358] sm:$0xff]  ;;  %2453 = vmatpush.msra.mxu0 %v854_v17 }
 0x336   : > { %v982_v19 = vld [vmem:[%s3255_s23 + $0x1538] sm:$0xff]  ;;  %2472 = vmatpush.msra.mxu1 %v922_v18 }
 0x337   : > { %v1050_v20 = vld [vmem:[%s3255_s23 + $0x1758] sm:$0xff]  ;;  %2493 = vmatpush.msra.mxu2 %v982_v19 }
 0x338   : > { %v850_v21 = vld [vmem:[%s3255_s23 + $0x1118] sm:$0xff]  ;;  %2512 = vmatpush.msra.mxu3 %v1050_v20 }
 0x339   : > { %v918_v22 = vld [vmem:[%s3255_s23 + $0x1338] sm:$0xff]  ;;  %2454 = vmatpush.msra.mxu0 %v850_v21 }
 0x33a   : > { %v978_v23 = vld [vmem:[%s3255_s23 + $0x1518] sm:$0xff]  ;;  %2473 = vmatpush.msra.mxu1 %v918_v22 }
 0x33b   : > { %v1046_v24 = vld [vmem:[%s3255_s23 + $0x1738] sm:$0xff]  ;;  %2494 = vmatpush.msra.mxu2 %v978_v23  ;;  %v2105_v23 = vadd.f32 %v2104_v14, %v2085_v11  ;;  %v2184_v47 = vpop.f32.mrf.mxu2 }
 0x33c   : > { %v846_v25 = vld [vmem:[%s3255_s23 + $0x10f8] sm:$0xff]  ;;  %2513 = vmatpush.msra.mxu3 %v1046_v24 }
 0x33d   : > { %v914_v26 = vld [vmem:[%s3255_s23 + $0x1318] sm:$0xff]  ;;  %2455 = vmatpush.msra.mxu0 %v846_v25 }
 0x33e   : > { %v974_v27 = vld [vmem:[%s3255_s23 + $0x14f8] sm:$0xff]  ;;  %2474 = vmatpush.msra.mxu1 %v914_v26  ;;  %v2124_v26 = vpop.f32.mrf.mxu3 }
 0x33f   : > { %v1042_v28 = vld [vmem:[%s3255_s23 + $0x1718] sm:$0xff]  ;;  %2495 = vmatpush.msra.mxu2 %v974_v27  ;;  %v2125_v34 = vadd.f32 %v2124_v26, %v2105_v23 }
 0x340   : > { %v842_v30 = vld [vmem:[%s3255_s23 + $0x10d8] sm:$0xff]  ;;  %2514 = vmatpush.msra.mxu3 %v1042_v28 }
 0x341   : > { %v910_v31 = vld [vmem:[%s3255_s23 + $0x12f8] sm:$0xff]  ;;  %2456 = vmatpush.msra.mxu0 %v842_v30 }
 0x342   : > { %v970_v32 = vld [vmem:[%s3255_s23 + $0x14d8] sm:$0xff]  ;;  %2475 = vmatpush.msra.mxu1 %v910_v31  ;;  %v2144_v31 = vpop.f32.mrf.mxu0 }
 0x343   : > { %v1038_v33 = vld [vmem:[%s3255_s23 + $0x16f8] sm:$0xff]  ;;  %2496 = vmatpush.msra.mxu2 %v970_v32 }
 0x344   : > { %v838_v35 = vld [vmem:[%s3255_s23 + $0x10b8] sm:$0xff]  ;;  %2515 = vmatpush.msra.mxu3 %v1038_v33 }
 0x345   : > { %v906_v36 = vld [vmem:[%s3255_s23 + $0x12d8] sm:$0xff]  ;;  %2457 = vmatpush.msra.mxu0 %v838_v35 }
 0x346   : > { %v966_v38 = vld [vmem:[%s3255_s23 + $0x14b8] sm:$0xff]  ;;  %2476 = vmatpush.msra.mxu1 %v906_v36 }
 0x347   : > { %v1034_v39 = vld [vmem:[%s3255_s23 + $0x16d8] sm:$0xff]  ;;  %2497 = vmatpush.msra.mxu2 %v966_v38 }
 0x348   : > { %v834_v41 = vld [vmem:[%s3255_s23 + $0x1098] sm:$0xff]  ;;  %2516 = vmatpush.msra.mxu3 %v1034_v39  ;;  %v2145_v39 = vadd.f32 %v2144_v31, %v2125_v34  ;;  %v2941_v31 = vld [vmem:[%s3274_s4 + $0x60] sm:$0xff]  ;;  %v2943_v34 = vld [vmem:[%s3274_s4 + $0x68] sm:$0xff] }
 0x349   : > { %v902_v42 = vld [vmem:[%s3255_s23 + $0x12b8] sm:$0xff]  ;;  %2458 = vmatpush.msra.mxu0 %v834_v41 }
 0x34a   : > { %v962_v43 = vld [vmem:[%s3255_s23 + $0x1498] sm:$0xff]  ;;  %2477 = vmatpush.msra.mxu1 %v902_v42  ;;  %v2164_v42 = vpop.f32.mrf.mxu1 }
 0x34b   : > { %v1030_v44 = vld [vmem:[%s3255_s23 + $0x16b8] sm:$0xff]  ;;  %2498 = vmatpush.msra.mxu2 %v962_v43  ;;  %v2165_v50 = vadd.f32 %v2164_v42, %v2145_v39 }
 0x34c   : > { %v830_v45 = vld [vmem:[%s3255_s23 + $0x1078] sm:$0xff]  ;;  %2517 = vmatpush.msra.mxu3 %v1030_v44 }
 0x34d   : > { %v898_v46 = vld [vmem:[%s3255_s23 + $0x1298] sm:$0xff]  ;;  %2459 = vmatpush.msra.mxu0 %v830_v45 }
 0x34e   : > { %v958_v48 = vld [vmem:[%s3255_s23 + $0x1478] sm:$0xff]  ;;  %2478 = vmatpush.msra.mxu1 %v898_v46 }
 0x34f   : > { %v1026_v49 = vld [vmem:[%s3255_s23 + $0x1698] sm:$0xff]  ;;  %2499 = vmatpush.msra.mxu2 %v958_v48 }
 0x350   : > { %v826_v51 = vld [vmem:[%s3255_s23 + $0x1058] sm:$0xff]  ;;  %2518 = vmatpush.msra.mxu3 %v1026_v49 }
 0x351   : > { %v894_v52 = vld [vmem:[%s3255_s23 + $0x1278] sm:$0xff]  ;;  %2460 = vmatpush.msra.mxu0 %v826_v51 }
 0x352   : > { %v954_v53 = vld [vmem:[%s3255_s23 + $0x1458] sm:$0xff]  ;;  %2479 = vmatpush.msra.mxu1 %v894_v52 }
 0x353   : > { %v1022_v54 = vld [vmem:[%s3255_s23 + $0x1678] sm:$0xff]  ;;  %2500 = vmatpush.msra.mxu2 %v954_v53  ;;  %v2244_v14 = vpop.f32.mrf.mxu1 }
 0x354   : > { %v822_v55 = vld [vmem:[%s3255_s23 + $0x1038] sm:$0xff]  ;;  %2519 = vmatpush.msra.mxu3 %v1022_v54 }
 0x355   : > { %v890_v56 = vld [vmem:[%s3255_s23 + $0x1258] sm:$0xff]  ;;  %2461 = vmatpush.msra.mxu0 %v822_v55  ;;  %v2185_v55 = vadd.f32 %v2184_v47, %v2165_v50 }
 0x356   : > { %v950_v58 = vld [vmem:[%s3255_s23 + $0x1438] sm:$0xff]  ;;  %2480 = vmatpush.msra.mxu1 %v890_v56 }
 0x357   : > { %v1018_v59 = vld [vmem:[%s3255_s23 + $0x1658] sm:$0xff]  ;;  %2501 = vmatpush.msra.mxu2 %v950_v58  ;;  %v2204_v58 = vpop.f32.mrf.mxu3 }
 0x358   : > { %v818_v61 = vld [vmem:[%s3255_s23 + $0x1018] sm:$0xff]  ;;  %2520 = vmatpush.msra.mxu3 %v1018_v59  ;;  %v2205_v1 = vadd.f32 %v2204_v58, %v2185_v55 }
 0x359   : > { %v886_v62 = vld [vmem:[%s3255_s23 + $0x1238] sm:$0xff]  ;;  %2462 = vmatpush.msra.mxu0 %v818_v61 }
 0x35a   : > { %v946_v63 = vld [vmem:[%s3255_s23 + $0x1418] sm:$0xff]  ;;  %2481 = vmatpush.msra.mxu1 %v886_v62  ;;  %2463 = vmatmul.f32.vlgmr.msra.gmra.mxu0 %v2937_v7 }
 0x35b   : > { %v1014_v0 = vld [vmem:[%s3255_s23 + $0x1638] sm:$0xff]  ;;  %2502 = vmatpush.msra.mxu2 %v946_v63 }
 0x35c   : > { %v1134_v2 = vld [vmem:[%s3255_s23 + $0x19f8] sm:$0xff]  ;;  %2521 = vmatpush.msra.mxu3 %v1014_v0  ;;  %2503 = vmatmul.f32.vlgmr.msra.gmra.mxu2 %v2938_v8 }
 0x35d   : > { %v1262_v3 = vld [vmem:[%s3255_s23 + $0x1df8] sm:$0xff]  ;;  %2527 = vmatpush.msrb.mxu0 %v1134_v2 }
 0x35e   : > { %v882_v5 = vld [vmem:[%s3255_s23 + $0x1218] sm:$0xff]  ;;  %2567 = vmatpush.msrb.mxu2 %v1262_v3 }
 0x35f   : > { %v1010_v6 = vld [vmem:[%s3255_s23 + $0x1618] sm:$0xff]  ;;  %2482 = vmatpush.msra.mxu1 %v882_v5 }
 0x360   : > { %v1130_v9 = vld [vmem:[%s3255_s23 + $0x19d8] sm:$0xff]  ;;  %2522 = vmatpush.msra.mxu3 %v1010_v6  ;;  %2483 = vmatmul.f32.vlgmr.msra.gmra.mxu1 %v2939_v15  ;;  %v2224_v6 = vpop.f32.mrf.mxu0 }
 0x361   : > { %v1198_v10 = vld [vmem:[%s3255_s23 + $0x1bf8] sm:$0xff]  ;;  %2528 = vmatpush.msrb.mxu0 %v1130_v9  ;;  %v2225_v9 = vadd.f32 %v2224_v6, %v2205_v1  ;;  %v286_v1 = vld [vmem:[#allocation2 + $0x8] sm:$0xff] }
 0x362   : > { %v1258_v12 = vld [vmem:[%s3255_s23 + $0x1dd8] sm:$0xff]  ;;  %2547 = vmatpush.msrb.mxu1 %v1198_v10 }
 0x363   : > { %v1326_v13 = vld [vmem:[%s3255_s23 + $0x1ff8] sm:$0xff]  ;;  %2568 = vmatpush.msrb.mxu2 %v1258_v12 }
 0x364   : > { %v2940_v16 = vld [vmem:[%s3274_s4 + $0x58] sm:$0xff]  ;;  %2587 = vmatpush.msrb.mxu3 %v1326_v13 }
 0x365   : > { %2523 = vmatmul.f32.vlgmr.msra.gmra.mxu3 %v2940_v16  ;;  %v1126_v17 = vld [vmem:[%s3255_s23 + $0x19b8] sm:$0xff] }
 0x366   : > { %v1194_v18 = vld [vmem:[%s3255_s23 + $0x1bd8] sm:$0xff]  ;;  %2529 = vmatpush.msrb.mxu0 %v1126_v17 }
 0x367   : > { %v1254_v19 = vld [vmem:[%s3255_s23 + $0x1db8] sm:$0xff]  ;;  %2548 = vmatpush.msrb.mxu1 %v1194_v18 }
 0x368   : > { %v1322_v20 = vld [vmem:[%s3255_s23 + $0x1fd8] sm:$0xff]  ;;  %2569 = vmatpush.msrb.mxu2 %v1254_v19  ;;  %v2245_v19 = vadd.f32 %v2244_v14, %v2225_v9 }
 0x369   : > { %v1122_v21 = vld [vmem:[%s3255_s23 + $0x1998] sm:$0xff]  ;;  %2588 = vmatpush.msrb.mxu3 %v1322_v20 }
 0x36a   : > { %v1190_v22 = vld [vmem:[%s3255_s23 + $0x1bb8] sm:$0xff]  ;;  %2530 = vmatpush.msrb.mxu0 %v1122_v21 }
 0x36b   : > { %v1250_v24 = vld [vmem:[%s3255_s23 + $0x1d98] sm:$0xff]  ;;  %2549 = vmatpush.msrb.mxu1 %v1190_v22  ;;  %v2264_v22 = vpop.f32.mrf.mxu2 }
 0x36c   : > { %v1318_v25 = vld [vmem:[%s3255_s23 + $0x1fb8] sm:$0xff]  ;;  %2570 = vmatpush.msrb.mxu2 %v1250_v24 }
 0x36d   : > { %v1118_v27 = vld [vmem:[%s3255_s23 + $0x1978] sm:$0xff]  ;;  %2589 = vmatpush.msrb.mxu3 %v1318_v25  ;;  %v2265_v25 = vadd.f32 %v2264_v22, %v2245_v19 }
 0x36e   : > { %v1186_v28 = vld [vmem:[%s3255_s23 + $0x1b98] sm:$0xff]  ;;  %2531 = vmatpush.msrb.mxu0 %v1118_v27 }
 0x36f   : > { %v1246_v29 = vld [vmem:[%s3255_s23 + $0x1d78] sm:$0xff]  ;;  %2550 = vmatpush.msrb.mxu1 %v1186_v28 }
 0x370   : > { %v1314_v30 = vld [vmem:[%s3255_s23 + $0x1f98] sm:$0xff]  ;;  %2571 = vmatpush.msrb.mxu2 %v1246_v29  ;;  %v2284_v29 = vpop.f32.mrf.mxu3 }
 0x371   : > { %v1114_v32 = vld [vmem:[%s3255_s23 + $0x1958] sm:$0xff]  ;;  %2590 = vmatpush.msrb.mxu3 %v1314_v30  ;;  %v2285_v30 = vadd.f32 %v2284_v29, %v2265_v25 }
 0x372   : > { %v1182_v33 = vld [vmem:[%s3255_s23 + $0x1b78] sm:$0xff]  ;;  %2532 = vmatpush.msrb.mxu0 %v1114_v32  ;;  %v2942_v32 = vld [vmem:[%s3274_s4 + $0x70] sm:$0xff] }
 0x373   : > { %v1242_v35 = vld [vmem:[%s3255_s23 + $0x1d58] sm:$0xff]  ;;  %2551 = vmatpush.msrb.mxu1 %v1182_v33 }
 0x374   : > { %v1310_v36 = vld [vmem:[%s3255_s23 + $0x1f78] sm:$0xff]  ;;  %2572 = vmatpush.msrb.mxu2 %v1242_v35 }
 0x375   : > { %v1110_v37 = vld [vmem:[%s3255_s23 + $0x1938] sm:$0xff]  ;;  %2591 = vmatpush.msrb.mxu3 %v1310_v36 }
 0x376   : > { %v1178_v38 = vld [vmem:[%s3255_s23 + $0x1b58] sm:$0xff]  ;;  %2533 = vmatpush.msrb.mxu0 %v1110_v37 }
 0x377   : > { %v1238_v40 = vld [vmem:[%s3255_s23 + $0x1d38] sm:$0xff]  ;;  %2552 = vmatpush.msrb.mxu1 %v1178_v38 }
 0x378   : > { %v1306_v41 = vld [vmem:[%s3255_s23 + $0x1f58] sm:$0xff]  ;;  %2573 = vmatpush.msrb.mxu2 %v1238_v40 }
 0x379   : > { %v1106_v43 = vld [vmem:[%s3255_s23 + $0x1918] sm:$0xff]  ;;  %2592 = vmatpush.msrb.mxu3 %v1306_v41 }
 0x37a   : > { %v1174_v44 = vld [vmem:[%s3255_s23 + $0x1b38] sm:$0xff]  ;;  %2534 = vmatpush.msrb.mxu0 %v1106_v43 }
 0x37b   : > { %v1234_v45 = vld [vmem:[%s3255_s23 + $0x1d18] sm:$0xff]  ;;  %2553 = vmatpush.msrb.mxu1 %v1174_v44 }
 0x37c   : > { %v1302_v46 = vld [vmem:[%s3255_s23 + $0x1f38] sm:$0xff]  ;;  %2574 = vmatpush.msrb.mxu2 %v1234_v45 }
 0x37d   : > { %v1102_v48 = vld [vmem:[%s3255_s23 + $0x18f8] sm:$0xff]  ;;  %2593 = vmatpush.msrb.mxu3 %v1302_v46 }
 0x37e   : > { %v1170_v49 = vld [vmem:[%s3255_s23 + $0x1b18] sm:$0xff]  ;;  %2535 = vmatpush.msrb.mxu0 %v1102_v48 }
 0x37f   : > { %v1230_v51 = vld [vmem:[%s3255_s23 + $0x1cf8] sm:$0xff]  ;;  %2554 = vmatpush.msrb.mxu1 %v1170_v49 }
 0x380   : > { %v1298_v52 = vld [vmem:[%s3255_s23 + $0x1f18] sm:$0xff]  ;;  %2575 = vmatpush.msrb.mxu2 %v1230_v51 }
 0x381   : > { %v1098_v53 = vld [vmem:[%s3255_s23 + $0x18d8] sm:$0xff]  ;;  %2594 = vmatpush.msrb.mxu3 %v1298_v52 }
 0x382   : > { %v1166_v54 = vld [vmem:[%s3255_s23 + $0x1af8] sm:$0xff]  ;;  %2536 = vmatpush.msrb.mxu0 %v1098_v53 }
 0x383   : > { %v1226_v56 = vld [vmem:[%s3255_s23 + $0x1cd8] sm:$0xff]  ;;  %2555 = vmatpush.msrb.mxu1 %v1166_v54 }
 0x384   : > { %v1294_v57 = vld [vmem:[%s3255_s23 + $0x1ef8] sm:$0xff]  ;;  %2576 = vmatpush.msrb.mxu2 %v1226_v56 }
 0x385   : > { %v1094_v59 = vld [vmem:[%s3255_s23 + $0x18b8] sm:$0xff]  ;;  %2595 = vmatpush.msrb.mxu3 %v1294_v57 }
 0x386   : > { %v1162_v60 = vld [vmem:[%s3255_s23 + $0x1ad8] sm:$0xff]  ;;  %2537 = vmatpush.msrb.mxu0 %v1094_v59 }
 0x387   : > { %v1222_v61 = vld [vmem:[%s3255_s23 + $0x1cb8] sm:$0xff]  ;;  %2556 = vmatpush.msrb.mxu1 %v1162_v60 }
 0x388   : > { %v1290_v62 = vld [vmem:[%s3255_s23 + $0x1ed8] sm:$0xff]  ;;  %2577 = vmatpush.msrb.mxu2 %v1222_v61 }
 0x389   : > { %v1090_v63 = vld [vmem:[%s3255_s23 + $0x1898] sm:$0xff]  ;;  %2596 = vmatpush.msrb.mxu3 %v1290_v62 }
 0x38a   : > { %v1158_v0 = vld [vmem:[%s3255_s23 + $0x1ab8] sm:$0xff]  ;;  %2538 = vmatpush.msrb.mxu0 %v1090_v63 }
 0x38b   : > { %v1218_v2 = vld [vmem:[%s3255_s23 + $0x1c98] sm:$0xff]  ;;  %2557 = vmatpush.msrb.mxu1 %v1158_v0 }
 0x38c   : > { %v1286_v3 = vld [vmem:[%s3255_s23 + $0x1eb8] sm:$0xff]  ;;  %2578 = vmatpush.msrb.mxu2 %v1218_v2 }
 0x38d   : > { %v1086_v4 = vld [vmem:[%s3255_s23 + $0x1878] sm:$0xff]  ;;  %2597 = vmatpush.msrb.mxu3 %v1286_v3 }
 0x38e   : > { %v1154_v5 = vld [vmem:[%s3255_s23 + $0x1a98] sm:$0xff]  ;;  %2539 = vmatpush.msrb.mxu0 %v1086_v4  ;;  %v2304_v37 = vpop.f32.mrf.mxu0 }
 0x38f   : > { %v1214_v7 = vld [vmem:[%s3255_s23 + $0x1c78] sm:$0xff]  ;;  %2558 = vmatpush.msrb.mxu1 %v1154_v5 }
 0x390   : > { %v1282_v8 = vld [vmem:[%s3255_s23 + $0x1e98] sm:$0xff]  ;;  %2579 = vmatpush.msrb.mxu2 %v1214_v7  ;;  %v2324_v36 = vpop.f32.mrf.mxu1 }
 0x391   : > { %v1082_v10 = vld [vmem:[%s3255_s23 + $0x1858] sm:$0xff]  ;;  %2598 = vmatpush.msrb.mxu3 %v1282_v8  ;;  %v2325_v38 = vadd.f32 %v2324_v36, %v2304_v37 }
 0x392   : > { %v1150_v11 = vld [vmem:[%s3255_s23 + $0x1a78] sm:$0xff]  ;;  %2540 = vmatpush.msrb.mxu0 %v1082_v10 }
 0x393   : > { %v1210_v12 = vld [vmem:[%s3255_s23 + $0x1c58] sm:$0xff]  ;;  %2559 = vmatpush.msrb.mxu1 %v1150_v11 }
 0x394   : > { %v1278_v13 = vld [vmem:[%s3255_s23 + $0x1e78] sm:$0xff]  ;;  %2580 = vmatpush.msrb.mxu2 %v1210_v12 }
 0x395   : > { %v1078_v15 = vld [vmem:[%s3255_s23 + $0x1838] sm:$0xff]  ;;  %2599 = vmatpush.msrb.mxu3 %v1278_v13  ;;  %v2344_v39 = vpop.f32.mrf.mxu2 }
 0x396   : > { %v1146_v16 = vld [vmem:[%s3255_s23 + $0x1a58] sm:$0xff]  ;;  %2541 = vmatpush.msrb.mxu0 %v1078_v15  ;;  %v2345_v40 = vadd.f32 %v2344_v39, %v2325_v38  ;;  %v2384_v43 = vpop.f32.mrf.mxu0 }
 0x397   : > { %v1206_v17 = vld [vmem:[%s3255_s23 + $0x1c38] sm:$0xff]  ;;  %2560 = vmatpush.msrb.mxu1 %v1146_v16 }
 0x398   : > { %v1274_v18 = vld [vmem:[%s3255_s23 + $0x1e58] sm:$0xff]  ;;  %2581 = vmatpush.msrb.mxu2 %v1206_v17 }
 0x399   : > { %v1074_v20 = vld [vmem:[%s3255_s23 + $0x1818] sm:$0xff]  ;;  %2600 = vmatpush.msrb.mxu3 %v1274_v18 }
 0x39a   : > { %v1142_v21 = vld [vmem:[%s3255_s23 + $0x1a38] sm:$0xff]  ;;  %2542 = vmatpush.msrb.mxu0 %v1074_v20 }
 0x39b   : > { %v1202_v23 = vld [vmem:[%s3255_s23 + $0x1c18] sm:$0xff]  ;;  %2561 = vmatpush.msrb.mxu1 %v1142_v21  ;;  %2543 = vmatmul.f32.vlgmr.msrb.gmra.mxu0 %v2941_v31  ;;  %v2404_v45 = vpop.f32.mrf.mxu1 }
 0x39c   : > { %v1270_v24 = vld [vmem:[%s3255_s23 + $0x1e38] sm:$0xff]  ;;  %2582 = vmatpush.msrb.mxu2 %v1202_v23 }
 0x39d   : > { %v1138_v26 = vld [vmem:[%s3255_s23 + $0x1a18] sm:$0xff]  ;;  %2601 = vmatpush.msrb.mxu3 %v1270_v24  ;;  %2583 = vmatmul.f32.vlgmr.msrb.gmra.mxu2 %v2942_v32  ;;  %v2424_v47 = vpop.f32.mrf.mxu2 }
 0x39e   : > { %v1266_v27 = vld [vmem:[%s3255_s23 + $0x1e18] sm:$0xff]  ;;  %2562 = vmatpush.msrb.mxu1 %v1138_v26 }
 0x39f   : > { %v285_v28 = vld [vmem:[#allocation2 + $0x18] sm:$0xff]  ;;  %2602 = vmatpush.msrb.mxu3 %v1266_v27  ;;  %2563 = vmatmul.f32.vlgmr.msrb.gmra.mxu1 %v2943_v34 }
 0x3a0   : > { %v2609_v33 = vadd.f32 %v2285_v30, %v285_v28  ;;  %v2944_v35 = vld [vmem:[%s3274_s4 + $0x78] sm:$0xff] }
 0x3a1   : > { %2603 = vmatmul.f32.vlgmr.msrb.gmra.mxu3 %v2944_v35 }
 0x3a2   : > { %2613 = vst [vmem:[#allocation2 + $0x18] sm:$0xff] %v2609_v33  ;;  %v2364_v41 = vpop.f32.mrf.mxu3 }
 0x3a3   : > { %v2365_v42 = vadd.f32 %v2364_v41, %v2345_v40 }
 0x3a5   : > { %v2385_v44 = vadd.f32 %v2384_v43, %v2365_v42 }
 0x3a7   : > { %v2405_v46 = vadd.f32 %v2404_v45, %v2385_v44 }
 0x3a9   : > { %v2425_v48 = vadd.f32 %v2424_v47, %v2405_v46 }
 0x3b3   : > { %v2444_v49 = vpop.f32.mrf.mxu3 }
 0x3b4   : > { %v2445_v51 = vadd.f32 %v2444_v49, %v2425_v48 }
 0x3d7   : > { %v2464_v50 = vpop.f32.mrf.mxu0 }
 0x3d8   : > { %v2465_v52 = vadd.f32 %v2464_v50, %v2445_v51 }
 0x3dd   : > { %v2484_v53 = vpop.f32.mrf.mxu1 }
 0x3de   : > { %v2485_v55 = vadd.f32 %v2484_v53, %v2465_v52 }
 0x3df   : > { %v2504_v54 = vpop.f32.mrf.mxu2 }
 0x3e0   : > { %v2505_v56 = vadd.f32 %v2504_v54, %v2485_v55 }
 0x3e8   : > { %v2524_v57 = vpop.f32.mrf.mxu3 }
 0x3e9   : > { %v2525_v58 = vadd.f32 %v2524_v57, %v2505_v56 }
 0x418   : > { %v2544_v59 = vpop.f32.mrf.mxu0 }
 0x419   : > { %v2545_v60 = vadd.f32 %v2544_v59, %v2525_v58 }
 0x41c   : > { %v2564_v61 = vpop.f32.mrf.mxu1 }
 0x41d   : > { %v2565_v62 = vadd.f32 %v2564_v61, %v2545_v60 }
 0x420   : > { %v2584_v63 = vpop.f32.mrf.mxu2 }
 0x421   : > { %v2585_v0 = vadd.f32 %v2584_v63, %v2565_v62 }
 0x424   : > { %v2604_v2 = vpop.f32.mrf.mxu3 }
 0x425   : > { %v2605_v3 = vadd.f32 %v2604_v2, %v2585_v0  ;;  %2618 = sbr.rel (%p2789_p9) target bundleno = 1079 (0x437), region = 48 }
 0x427   : > { %v2610_v4 = vadd.f32 %v2605_v3, %v286_v1 }
 0x429   : > { %2614 = vst [vmem:[#allocation2 + $0x8] sm:$0xff] %v2610_v4 }
 0x42a   : > { %v2619_v5 = vld [vmem:[#allocation2 + $0x10] sm:$0xff]  ;;  %v2623_v6 = vld [vmem:[%s226_s29] sm:$0xf]  ;;  %v2621_v10 = vld [vmem:[#allocation2 + $0x18] sm:$0xff] }
 0x42b   : > { %v2620_v7 = vld [vmem:[#allocation2] sm:$0xff]  ;;  %v2625_v8 = vperm.slane %v2623_v6, 0  ;;  %v2626_v9 = vperm.slane %v2623_v6, 1  ;;  %v2627_v11 = vperm.slane %v2623_v6, 2  ;;  %v2628_v13 = vperm.slane %v2623_v6, 3 }
 0x42d   : > { %v2633_v14 = vadd.f32 %v2625_v8, %v2619_v5  ;;  %v2634_v15 = vadd.f32 %v2626_v9, %v2620_v7  ;;  %v2635_v16 = vadd.f32 %v2627_v11, %v2621_v10 }
 0x42f   : > { %vm2637_vm0 = vcmp.ge.f32.partialorder %v2633_v14, 0.0  ;;  %v2641_v18 = vmul.f32 0.01, %v2633_v14  ;;  %vm2638_vm1 = vcmp.ge.f32.partialorder %v2634_v15, 0.0  ;;  %v2642_v19 = vmul.f32 0.01, %v2634_v15 }
 0x430   : > { %v2622_v12 = vld [vmem:[#allocation2 + $0x8] sm:$0xff]  ;;  %vm2639_vm2 = vcmp.ge.f32.partialorder %v2635_v16, 0.0  ;;  %v2643_v20 = vmul.f32 0.01, %v2635_v16 }
 0x431   : > { %v2636_v17 = vadd.f32 %v2628_v13, %v2622_v12  ;;  %v2645_v22 = vsel %vm2637_vm0, %v2633_v14, %v2641_v18  ;;  %v2646_v23 = vsel %vm2638_vm1, %v2634_v15, %v2642_v19 }
 0x432   : > { %2649 = vst [vmem:[%s3279_s11] sm:$0xff] %v2645_v22  ;;  %v2647_v24 = vsel %vm2639_vm2, %v2635_v16, %v2643_v20 }
 0x433   : > { %vm2640_vm3 = vcmp.ge.f32.partialorder %v2636_v17, 0.0  ;;  %v2644_v21 = vmul.f32 0.01, %v2636_v17  ;;  %2650 = vst [vmem:[%s3279_s11 + $0x8] sm:$0xff] %v2646_v23 }
 0x434   : > { %2651 = vst [vmem:[%s3279_s11 + $0x10] sm:$0xff] %v2647_v24 }
 0x435   : > { %v2648_v25 = vsel %vm2640_vm3, %v2636_v17, %v2644_v21 }
 0x436   : > { %2652 = vst [vmem:[%s3279_s11 + $0x18] sm:$0xff] %v2648_v25 }
 0x437 PF: > { %s19_s22 = sadd.s32 1, %s3099_s22   ;;  %s4423_s18 = smov %s3236_s15 }
 0x438   : > { %p16_p10 = scmp.ge.s32.totalorder %s19_s22, 10   ;;  %s4424_s23 = sld [smem:[#allocation9_spill]] }
 0x439   : > { %s4425_s25 = sld [smem:[#allocation10_spill]]  ;;  %s4426_s12 = smov %s3063_s13 }
 0x43a   : > { %s4427_s13 = smov %s3067_s14  ;;  %s4428_s14 = smov %s3231_s10 }
 0x43b   : > { %s4429_s15 = smov %s3075_s16  ;;  %s4430_s16 = smov %s3079_s17 }
 0x43c   : > { %s4431_s17 = smov %s4423_s18  ;;  %s4432_s18 = smov %s3091_s20 }
 0x43d   : > { %s4433_s19 = smov %s3095_s21  ;;  %18 = sbr.rel (!%p16_p10) target bundleno = 11 (0xb), region = 96 }
 0x43e   : > { %s4434_s20 = smov %s4424_s23 }
 0x43f   : > { %s4435_s21 = smov %s4425_s25 }
 0x442   :  { %2675 = vsyncpa [#allocation4], 1 }
 0x443   :  { %2677 = vsyncpa [#allocation4 + $0x1], 1 }
 0x444   :  { %2678 = vsyncpa [#allocation6], 1 }
 0x445   :  { %2680 = vsyncpa [#allocation6 + $0x1], 1 }

</bundles_post_ra>
